<compile_context>
chip_gen: v7x
topology: tpu7x:2x2x1
jax: 0.10.0
libtpu: 0.0.40
codegen_flags: <defaults>
</compile_context>

<pallas_src>
import numpy as np
import jax
import jax.numpy as jnp
from jax.experimental import pallas as pl
from jax.experimental.pallas import tpu as pltpu

# ------------------ small synthetic config ------------------
SAMPLE_RATE = 16000
WINDOW_SIZE = 64            # n_fft
HOP_SIZE = 32
MEL_BINS = 16
FMIN = 50.0
FMAX = 8000.0
CLASSES_NUM = 10
BACKBONE_CH = 8             # synthetic backbone stem channels (= classifier in_features)
AMIN = 1e-10
REF = 1.0
BN_EPS = 1e-5
FREQ_BINS = WINDOW_SIZE // 2 + 1            # 33
LANE = 128                                  # merged DFT basis lane width (cos|sin halves)
LOG_REF = 10.0 * float(np.log10(max(AMIN, REF)))   # == 0.0 for ref = 1


# ------------------ fixed-buffer construction (numpy, trace-time) ------------------
def _hz_to_mel(f):
    f = np.asarray(f, dtype=np.float64)
    f_sp = 200.0 / 3
    mels = f / f_sp
    min_log_hz = 1000.0
    min_log_mel = min_log_hz / f_sp
    logstep = np.log(6.4) / 27.0
    return np.where(f >= min_log_hz,
                    min_log_mel + np.log(np.maximum(f, 1e-10) / min_log_hz) / logstep,
                    mels)


def _mel_to_hz(m):
    m = np.asarray(m, dtype=np.float64)
    f_sp = 200.0 / 3
    freqs = f_sp * m
    min_log_hz = 1000.0
    min_log_mel = min_log_hz / f_sp
    logstep = np.log(6.4) / 27.0
    return np.where(m >= min_log_mel,
                    min_log_hz * np.exp(logstep * (m - min_log_mel)),
                    freqs)


def mel_filterbank(sr, n_fft, n_mels, fmin, fmax):
    """librosa.filters.mel (htk=False, norm='slaney'), returned as (freq_bins, n_mels)."""
    fftfreqs = np.linspace(0.0, sr / 2.0, 1 + n_fft // 2)
    mel_pts = np.linspace(_hz_to_mel(fmin), _hz_to_mel(fmax), n_mels + 2)
    hz_pts = _mel_to_hz(mel_pts)
    fdiff = np.diff(hz_pts)
    ramps = hz_pts[:, None] - fftfreqs[None, :]
    weights = np.zeros((n_mels, 1 + n_fft // 2))
    for i in range(n_mels):
        lower = -ramps[i] / fdiff[i]
        upper = ramps[i + 2] / fdiff[i + 1]
        weights[i] = np.maximum(0.0, np.minimum(lower, upper))
    enorm = 2.0 / (hz_pts[2:n_mels + 2] - hz_pts[:n_mels])
    weights *= enorm[:, None]
    return weights.T.astype(np.float32)          # (freq_bins, n_mels)


def dft_basis(n_fft):
    n = np.arange(n_fft)
    k = np.arange(n_fft // 2 + 1)
    ang = 2.0 * np.pi * np.outer(n, k) / n_fft   # (n_fft, freq_bins)
    return np.cos(ang).astype(np.float32), (-np.sin(ang)).astype(np.float32)


# ------------------ framing (XLA glue; tiny at L=256) ------------------
def frame_signal(x, n_fft, hop):
    """x: (B, L) -> hann-windowed frames (B, T, n_fft) with center/reflect pad."""
    B, L = x.shape
    pad = n_fft // 2
    xp = jnp.pad(x, ((0, 0), (pad, pad)), mode="reflect")
    T = L // hop + 1
    idx = hop * jnp.arange(T)[:, None] + jnp.arange(n_fft)[None, :]
    frames = xp[:, idx]                                            # (B, T, n_fft)
    window = (0.5 - 0.5 * jnp.cos(2.0 * jnp.pi * jnp.arange(n_fft) / n_fft)).astype(jnp.float32)
    return frames * window[None, None, :]


# ------------------ the fused Pallas kernel ------------------
def fused_forward_kernel(wtap_ref, frames_ref, cs_ref, mel2_ref, bias_ref, w2_ref, b2_ref,
                         o_ref, xpad_ref):
    """frames -> log-mel -> (BN-folded) 3x3 conv -> ReLU -> GAP -> classifier, all in VMEM.

    wtap_ref : SMEM (9*C,)   BN-scale-folded conv taps, index = (ki*3+kj)*C + o
    frames_ref: VMEM (B*T, n_fft) hann-windowed frames
    cs_ref   : VMEM (n_fft, 128)  cos in cols [0,F), sin in cols [64, 64+F)
    mel2_ref : VMEM (128, M)      mel weights duplicated at rows [0,F) and [64,64+F)
    bias_ref : VMEM (C, T, M)     spatially-varying bias (BN shift + conv bias, exact at borders)
    w2_ref   : VMEM (C, classes)  classifier weight^T
    b2_ref   : VMEM (1, classes)  classifier bias
    o_ref    : VMEM (B, classes)  logits
    xpad_ref : VMEM scratch (B, T+2, M+2) zero-padded log-mel
    """
    C, T, M = bias_ref.shape
    B = xpad_ref.shape[0]

    # ---- STFT power + mel + log10: two MXU matmuls (cos|sin merged, lane-dense) ----
    spec = jnp.dot(frames_ref[...], cs_ref[...], preferred_element_type=jnp.float32)   # (B*T, 128)
    mel = jnp.dot(spec * spec, mel2_ref[...], preferred_element_type=jnp.float32)       # (B*T, M)
    logmel = 10.0 * jnp.log10(jnp.maximum(mel, AMIN)) - LOG_REF

    # ---- zero-padded per-batch (T+2, M+2) map: conv input (BN folded away) ----
    xpad_ref[...] = jnp.zeros_like(xpad_ref)
    for b in range(B):                                            # static unroll, B tiny
        xpad_ref[b, 1:T + 1, 1:M + 1] = logmel[b * T:(b + 1) * T, :]

    # 9 shifted views built from the VMEM-resident log-mel (no HBM im2col tensor).
    shifts = [xpad_ref[:, ki:ki + T, kj:kj + M]                    # each (B, T, M)
              for ki in range(3) for kj in range(3)]

    # ---- 3x3 conv (9 shifted FMAs) + ReLU + global-avg-pool + classifier ----
    inv_tm = 1.0 / float(T * M)
    logits = b2_ref[...]                                           # (1, classes) -> broadcasts
    for o in range(C):                                             # static unroll, C = 8
        acc = bias_ref[o]                                          # (T, M) spatially-varying bias
        for tap in range(9):
            acc = acc + wtap_ref[tap * C + o] * shifts[tap]        # SMEM scalar * (B, T, M)
        h = jnp.maximum(acc, 0.0)                                  # (B, T, M)
        pooled = jnp.sum(jnp.sum(h, axis=2), axis=1, keepdims=True) * inv_tm   # (B, 1)
        logits = logits + pooled * w2_ref[o:o + 1, :]              # rank-1 update -> (B, classes)
    o_ref[...] = logits


def fused_forward_pallas(wtap, frames2, cs, mel2, bias_map, w2, b2, batch):
    BT, nfft = frames2.shape
    C, T, M = bias_map.shape
    ncls = w2.shape[1]
    return pl.pallas_call(
        fused_forward_kernel,
        out_shape=jax.ShapeDtypeStruct((batch, ncls), jnp.float32),
        grid=(1,),
        in_specs=[
            pl.BlockSpec(memory_space=pltpu.MemorySpace.SMEM),      # folded conv taps (scalars)
            pl.BlockSpec((BT, nfft), lambda i: (0, 0)),
            pl.BlockSpec((nfft, LANE), lambda i: (0, 0)),
            pl.BlockSpec((LANE, M), lambda i: (0, 0)),
            pl.BlockSpec((C, T, M), lambda i: (0, 0, 0)),
            pl.BlockSpec((C, ncls), lambda i: (0, 0)),
            pl.BlockSpec((1, ncls), lambda i: (0, 0)),
        ],
        out_specs=pl.BlockSpec((batch, ncls), lambda i: (0, 0)),
        scratch_shapes=[pltpu.VMEM((batch, T + 2, M + 2), jnp.float32)],
        compiler_params=pltpu.CompilerParams(dimension_semantics=("parallel",)),
    )(wtap, frames2, cs, mel2, bias_map, w2, b2)


# ------------------ full forward (trace-time folding + single kernel call) ------------------
def audio_classifier_forward(audio, cos_b, sin_b, mel_t,
                             bn_gamma, bn_beta, bn_mean, bn_var,
                             conv_w, conv_b, lin_w, lin_b):
    B = audio.shape[0]
    frames = frame_signal(audio, WINDOW_SIZE, HOP_SIZE)            # (B, T, n_fft)
    _, T, nfft = frames.shape
    frames2 = frames.reshape(B * T, nfft)                          # one MXU-friendly slab
    F_ = cos_b.shape[1]
    C = conv_w.shape[0]
    M = mel_t.shape[1]

    # merged lane-dense DFT basis: cos in [0,F), sin in [64,64+F); mel rows duplicated so
    # (spec*spec) @ mel2 == (real^2 + imag^2) @ mel  — no in-kernel lane slicing needed.
    cs = jnp.zeros((nfft, LANE), jnp.float32)
    cs = cs.at[:, :F_].set(cos_b).at[:, 64:64 + F_].set(sin_b)
    mel2 = jnp.zeros((LANE, M), jnp.float32)
    mel2 = mel2.at[:F_, :].set(mel_t).at[64:64 + F_, :].set(mel_t)

    # Fold eval-mode BatchNorm2d(3) applied to cat([x,x,x]) into the conv.
    scale = bn_gamma / jnp.sqrt(bn_var + BN_EPS)                   # (3,)
    shift = bn_beta - bn_mean * scale                              # (3,)
    w_eff = jnp.einsum('c,ocij->ijo', scale, conv_w)               # (3,3,C): scale folded
    w_sh = jnp.einsum('c,ocij->ijo', shift, conv_w)                # (3,3,C): shift per tap
    wtap = w_eff.reshape(9 * C).astype(jnp.float32)                # tap-major (tap*C + o)

    # Exact spatially-varying bias: zero padding happens AFTER BN, so border positions
    # receive the shift through fewer taps -> precompute a (C, T, M) bias map.
    ind = jnp.zeros((T + 2, M + 2), jnp.float32).at[1:T + 1, 1:M + 1].set(1.0)
    bias_map = jnp.zeros((C, T, M), jnp.float32)
    for i in range(3):
        for j in range(3):
            bias_map = bias_map + w_sh[i, j, :][:, None, None] * ind[i:i + T, j:j + M][None, :, :]
    bias_map = bias_map + conv_b[:, None, None]

    w2 = lin_w.T.astype(jnp.float32)                               # (C, classes)
    b2 = lin_b.reshape(1, -1).astype(jnp.float32)                  # (1, classes)

    return fused_forward_pallas(wtap, frames2, cs, mel2, bias_map, w2, b2, batch=B)


# ------------------ pure-JAX reference (unfolded path) ------------------
def reference_forward(audio, cos_b, sin_b, mel_t,
                      bn_gamma, bn_beta, bn_mean, bn_var,
                      conv_w, conv_b, lin_w, lin_b):
    frames = frame_signal(audio, WINDOW_SIZE, HOP_SIZE)
    real = jnp.einsum("btn,nf->btf", frames, cos_b)
    imag = jnp.einsum("btn,nf->btf", frames, sin_b)
    power = real * real + imag * imag
    mel = jnp.einsum("btf,fm->btm", power, mel_t)
    logmel = 10.0 * jnp.log10(jnp.maximum(mel, AMIN)) - 10.0 * jnp.log10(jnp.maximum(AMIN, REF))
    scale = bn_gamma / jnp.sqrt(bn_var + BN_EPS)
    shift = bn_beta - bn_mean * scale
    y = logmel[:, None, :, :] * scale[None, :, None, None] + shift[None, :, None, None]  # (B,3,T,M)
    h = jax.lax.conv_general_dilated(y, conv_w, window_strides=(1, 1), padding="SAME",
                                     dimension_numbers=("NCHW", "OIHW", "NCHW"))
    h = jnp.maximum(h + conv_b[None, :, None, None], 0.0)
    feats = h.mean(axis=(2, 3))
    return feats @ lin_w.T + lin_b


# ------------------ main ------------------
if __name__ == "__main__":
    B, L = 2, 256                       # batch, waveform length -> T = L//hop + 1 = 9 frames

    key = jax.random.PRNGKey(0)
    ks = jax.random.split(key, 8)
    audio = jax.random.normal(ks[0], (B, L), dtype=jnp.float32)

    # fixed (non-trainable) buffers
    cos_np, sin_np = dft_basis(WINDOW_SIZE)
    cos_b = jnp.asarray(cos_np)                       # (n_fft, freq_bins)
    sin_b = jnp.asarray(sin_np)
    mel_t = jnp.asarray(mel_filterbank(SAMPLE_RATE, WINDOW_SIZE, MEL_BINS, FMIN, FMAX))

    # BatchNorm2d(3) params / running stats (deterministic)
    bn_gamma = 1.0 + 0.1 * jax.random.normal(ks[1], (3,), dtype=jnp.float32)
    bn_beta = 0.1 * jax.random.normal(ks[2], (3,), dtype=jnp.float32)
    bn_mean = 0.1 * jax.random.normal(ks[3], (3,), dtype=jnp.float32)
    bn_var = 1.0 + 0.1 * jnp.abs(jax.random.normal(ks[4], (3,), dtype=jnp.float32))

    # synthetic backbone stem: Conv2d(3, C, 3, padding=1), PyTorch layout (Cout, Cin, kh, kw)
    conv_w = 0.1 * jax.random.normal(ks[5], (BACKBONE_CH, 3, 3, 3), dtype=jnp.float32)
    conv_b = 0.01 * jax.random.normal(ks[6], (BACKBONE_CH,), dtype=jnp.float32)

    # classifier Linear(in_feat=C, classes_num), PyTorch layout (classes, in_feat)
    lin_w = 0.1 * jax.random.normal(ks[7], (CLASSES_NUM, BACKBONE_CH), dtype=jnp.float32)
    lin_b = jnp.zeros((CLASSES_NUM,), dtype=jnp.float32)

    fwd = jax.jit(audio_classifier_forward)
    logits = fwd(audio, cos_b, sin_b, mel_t,
                 bn_gamma, bn_beta, bn_mean, bn_var,
                 conv_w, conv_b, lin_w, lin_b)
    jax.block_until_ready(logits)

    ref = reference_forward(audio, cos_b, sin_b, mel_t,
                            bn_gamma, bn_beta, bn_mean, bn_var,
                            conv_w, conv_b, lin_w, lin_b)

    assert logits.shape == (B, CLASSES_NUM)
    assert bool(jnp.all(jnp.isfinite(logits)))
    assert jnp.allclose(logits, ref, rtol=1e-2, atol=1e-2)
    print("KERNEL_OK")
</pallas_src>

<mosaic_0001>
module attributes {stable_mosaic.version = 11 : i64} {
  func.func @fused_forward_kernel(%arg0: i32, %arg1: memref<72xf32, #tpu.memory_space<smem>>, %arg2: memref<18x64xf32, #tpu.memory_space<vmem>>, %arg3: memref<64x128xf32, #tpu.memory_space<vmem>>, %arg4: memref<128x16xf32, #tpu.memory_space<vmem>>, %arg5: memref<8x9x16xf32, #tpu.memory_space<vmem>>, %arg6: memref<8x10xf32, #tpu.memory_space<vmem>>, %arg7: memref<1x10xf32, #tpu.memory_space<vmem>>, %arg8: memref<2x10xf32, #tpu.memory_space<vmem>>, %arg9: memref<2x11x18xf32, #tpu.memory_space<vmem>>) attributes {dimension_semantics = [#tpu.dimension_semantics<parallel>], iteration_bounds = array<i64: 1>, scalar_prefetch = 0 : i64, scratch_operands = 1 : i64, tpu.core_type = #tpu.core_type<tc>, window_params = [{transform_indices = @transform_0, window_bounds = array<i64: 72>}, {pipeline_mode = #tpu.pipeline_mode<synchronous>, transform_indices = @transform_1, window_bounds = array<i64: 18, 64>}, {pipeline_mode = #tpu.pipeline_mode<synchronous>, transform_indices = @transform_2, window_bounds = array<i64: 64, 128>}, {pipeline_mode = #tpu.pipeline_mode<synchronous>, transform_indices = @transform_3, window_bounds = array<i64: 128, 16>}, {pipeline_mode = #tpu.pipeline_mode<synchronous>, transform_indices = @transform_4, window_bounds = array<i64: 8, 9, 16>}, {pipeline_mode = #tpu.pipeline_mode<synchronous>, transform_indices = @transform_5, window_bounds = array<i64: 8, 10>}, {pipeline_mode = #tpu.pipeline_mode<synchronous>, transform_indices = @transform_6, window_bounds = array<i64: 1, 10>}, {pipeline_mode = #tpu.pipeline_mode<synchronous>, transform_indices = @transform_7, window_bounds = array<i64: 2, 10>}]} {
    %c0 = arith.constant 0 : index
    %c0_0 = arith.constant 0 : index
    %0 = vector.load %arg2[%c0, %c0_0] : memref<18x64xf32, #tpu.memory_space<vmem>>, vector<18x64xf32>
    %c0_1 = arith.constant 0 : index
    %c0_2 = arith.constant 0 : index
    %1 = vector.load %arg3[%c0_1, %c0_2] : memref<64x128xf32, #tpu.memory_space<vmem>>, vector<64x128xf32>
    %cst = arith.constant dense<0.000000e+00> : vector<18x128xf32>
    %2 = tpu.matmul %0, %1, %cst {dimension_numbers = #tpu.dot_dimension_numbers<[1], [0], [0], [1], [0, 0, 1, 1], [], []>} : vector<18x64xf32>, vector<64x128xf32>, vector<18x128xf32> -> vector<18x128xf32>
    %3 = arith.mulf %2, %2 : vector<18x128xf32>
    %c0_3 = arith.constant 0 : index
    %c0_4 = arith.constant 0 : index
    %4 = vector.load %arg4[%c0_3, %c0_4] : memref<128x16xf32, #tpu.memory_space<vmem>>, vector<128x16xf32>
    %cst_5 = arith.constant dense<0.000000e+00> : vector<18x16xf32>
    %5 = tpu.matmul %3, %4, %cst_5 {dimension_numbers = #tpu.dot_dimension_numbers<[1], [0], [0], [1], [0, 0, 1, 1], [], []>} : vector<18x128xf32>, vector<128x16xf32>, vector<18x16xf32> -> vector<18x16xf32>
    %cst_6 = arith.constant 1.000000e-10 : f32
    %6 = vector.broadcast %cst_6 : f32 to vector<18x16xf32>
    %7 = arith.maximumf %5, %6 : vector<18x16xf32>
    %8 = math.log %7 : vector<18x16xf32>
    %cst_7 = arith.constant 0.434294492 : f32
    %9 = vector.broadcast %cst_7 : f32 to vector<18x16xf32>
    %10 = arith.mulf %8, %9 : vector<18x16xf32>
    %cst_8 = arith.constant 1.000000e+01 : f32
    %11 = vector.broadcast %cst_8 : f32 to vector<18x16xf32>
    %12 = arith.mulf %11, %10 : vector<18x16xf32>
    %cst_9 = arith.constant 0.000000e+00 : f32
    %13 = vector.broadcast %cst_9 : f32 to vector<18x16xf32>
    %14 = arith.subf %12, %13 : vector<18x16xf32>
    %cst_10 = arith.constant 0.000000e+00 : f32
    %15 = vector.broadcast %cst_10 : f32 to vector<2x11x18xf32>
    %c0_11 = arith.constant 0 : index
    %c0_12 = arith.constant 0 : index
    %c0_13 = arith.constant 0 : index
    %16 = vector.load %arg9[%c0_11, %c0_12, %c0_13] : memref<2x11x18xf32, #tpu.memory_space<vmem>>, vector<2x11x18xf32>
    tpu.vector_store %arg9[%c0_11, %c0_12, %c0_13], %15 {strides = array<i32>} : memref<2x11x18xf32, #tpu.memory_space<vmem>>, vector<2x11x18xf32>,
    %17 = vector.extract_strided_slice %14 {offsets = [0, 0], sizes = [9, 16], strides = [1, 1]} : vector<18x16xf32> to vector<9x16xf32>
    %c0_14 = arith.constant 0 : index
    %c1 = arith.constant 1 : index
    %c1_15 = arith.constant 1 : index
    %18 = vector.load %arg9[%c0_14, %c1, %c1_15] : memref<2x11x18xf32, #tpu.memory_space<vmem>>, vector<1x9x16xf32>
    %19 = vector.shape_cast %18 : vector<1x9x16xf32> to vector<9x16xf32>
    %20 = vector.shape_cast %17 : vector<9x16xf32> to vector<1x9x16xf32>
    tpu.vector_store %arg9[%c0_14, %c1, %c1_15], %20 {strides = array<i32>} : memref<2x11x18xf32, #tpu.memory_space<vmem>>, vector<1x9x16xf32>,
    %21 = vector.extract_strided_slice %14 {offsets = [9, 0], sizes = [9, 16], strides = [1, 1]} : vector<18x16xf32> to vector<9x16xf32>
    %c1_16 = arith.constant 1 : index
    %c1_17 = arith.constant 1 : index
    %c1_18 = arith.constant 1 : index
    %22 = vector.load %arg9[%c1_16, %c1_17, %c1_18] : memref<2x11x18xf32, #tpu.memory_space<vmem>>, vector<1x9x16xf32>
    %23 = vector.shape_cast %22 : vector<1x9x16xf32> to vector<9x16xf32>
    %24 = vector.shape_cast %21 : vector<9x16xf32> to vector<1x9x16xf32>
    tpu.vector_store %arg9[%c1_16, %c1_17, %c1_18], %24 {strides = array<i32>} : memref<2x11x18xf32, #tpu.memory_space<vmem>>, vector<1x9x16xf32>,
    %c0_19 = arith.constant 0 : index
    %c0_20 = arith.constant 0 : index
    %c0_21 = arith.constant 0 : index
    %25 = vector.load %arg9[%c0_19, %c0_20, %c0_21] : memref<2x11x18xf32, #tpu.memory_space<vmem>>, vector<2x9x16xf32>
    %c0_22 = arith.constant 0 : index
    %c0_23 = arith.constant 0 : index
    %c1_24 = arith.constant 1 : index
    %26 = vector.load %arg9[%c0_22, %c0_23, %c1_24] : memref<2x11x18xf32, #tpu.memory_space<vmem>>, vector<2x9x16xf32>
    %c0_25 = arith.constant 0 : index
    %c0_26 = arith.constant 0 : index
    %c2 = arith.constant 2 : index
    %27 = vector.load %arg9[%c0_25, %c0_26, %c2] : memref<2x11x18xf32, #tpu.memory_space<vmem>>, vector<2x9x16xf32>
    %c0_27 = arith.constant 0 : index
    %c1_28 = arith.constant 1 : index
    %c0_29 = arith.constant 0 : index
    %28 = vector.load %arg9[%c0_27, %c1_28, %c0_29] : memref<2x11x18xf32, #tpu.memory_space<vmem>>, vector<2x9x16xf32>
    %c0_30 = arith.constant 0 : index
    %c1_31 = arith.constant 1 : index
    %c1_32 = arith.constant 1 : index
    %29 = vector.load %arg9[%c0_30, %c1_31, %c1_32] : memref<2x11x18xf32, #tpu.memory_space<vmem>>, vector<2x9x16xf32>
    %c0_33 = arith.constant 0 : index
    %c1_34 = arith.constant 1 : index
    %c2_35 = arith.constant 2 : index
    %30 = vector.load %arg9[%c0_33, %c1_34, %c2_35] : memref<2x11x18xf32, #tpu.memory_space<vmem>>, vector<2x9x16xf32>
    %c0_36 = arith.constant 0 : index
    %c2_37 = arith.constant 2 : index
    %c0_38 = arith.constant 0 : index
    %31 = vector.load %arg9[%c0_36, %c2_37, %c0_38] : memref<2x11x18xf32, #tpu.memory_space<vmem>>, vector<2x9x16xf32>
    %c0_39 = arith.constant 0 : index
    %c2_40 = arith.constant 2 : index
    %c1_41 = arith.constant 1 : index
    %32 = vector.load %arg9[%c0_39, %c2_40, %c1_41] : memref<2x11x18xf32, #tpu.memory_space<vmem>>, vector<2x9x16xf32>
    %c0_42 = arith.constant 0 : index
    %c2_43 = arith.constant 2 : index
    %c2_44 = arith.constant 2 : index
    %33 = vector.load %arg9[%c0_42, %c2_43, %c2_44] : memref<2x11x18xf32, #tpu.memory_space<vmem>>, vector<2x9x16xf32>
    %c0_45 = arith.constant 0 : index
    %c0_46 = arith.constant 0 : index
    %34 = vector.load %arg7[%c0_45, %c0_46] : memref<1x10xf32, #tpu.memory_space<vmem>>, vector<1x10xf32>
    %c0_47 = arith.constant 0 : index
    %c0_48 = arith.constant 0 : index
    %c0_49 = arith.constant 0 : index
    %35 = vector.load %arg5[%c0_47, %c0_48, %c0_49] : memref<8x9x16xf32, #tpu.memory_space<vmem>>, vector<1x9x16xf32>
    %36 = vector.shape_cast %35 : vector<1x9x16xf32> to vector<9x16xf32>
    %c0_50 = arith.constant 0 : index
    %37 = memref.load %arg1[%c0_50] : memref<72xf32, #tpu.memory_space<smem>>
    %38 = vector.broadcast %37 : f32 to vector<2x9x16xf32>
    %39 = arith.mulf %38, %25 : vector<2x9x16xf32>
    %40 = vector.shape_cast %36 : vector<9x16xf32> to vector<1x9x16xf32>
    %41 = vector.broadcast %40 : vector<1x9x16xf32> to vector<2x9x16xf32>
    %42 = arith.addf %41, %39 : vector<2x9x16xf32>
    %c8 = arith.constant 8 : index
    %43 = memref.load %arg1[%c8] : memref<72xf32, #tpu.memory_space<smem>>
    %44 = vector.broadcast %43 : f32 to vector<2x9x16xf32>
    %45 = arith.mulf %44, %26 : vector<2x9x16xf32>
    %46 = arith.addf %42, %45 : vector<2x9x16xf32>
    %c16 = arith.constant 16 : index
    %47 = memref.load %arg1[%c16] : memref<72xf32, #tpu.memory_space<smem>>
    %48 = vector.broadcast %47 : f32 to vector<2x9x16xf32>
    %49 = arith.mulf %48, %27 : vector<2x9x16xf32>
    %50 = arith.addf %46, %49 : vector<2x9x16xf32>
    %c24 = arith.constant 24 : index
    %51 = memref.load %arg1[%c24] : memref<72xf32, #tpu.memory_space<smem>>
    %52 = vector.broadcast %51 : f32 to vector<2x9x16xf32>
    %53 = arith.mulf %52, %28 : vector<2x9x16xf32>
    %54 = arith.addf %50, %53 : vector<2x9x16xf32>
    %c32 = arith.constant 32 : index
    %55 = memref.load %arg1[%c32] : memref<72xf32, #tpu.memory_space<smem>>
    %56 = vector.broadcast %55 : f32 to vector<2x9x16xf32>
    %57 = arith.mulf %56, %29 : vector<2x9x16xf32>
    %58 = arith.addf %54, %57 : vector<2x9x16xf32>
    %c40 = arith.constant 40 : index
    %59 = memref.load %arg1[%c40] : memref<72xf32, #tpu.memory_space<smem>>
    %60 = vector.broadcast %59 : f32 to vector<2x9x16xf32>
    %61 = arith.mulf %60, %30 : vector<2x9x16xf32>
    %62 = arith.addf %58, %61 : vector<2x9x16xf32>
    %c48 = arith.constant 48 : index
    %63 = memref.load %arg1[%c48] : memref<72xf32, #tpu.memory_space<smem>>
    %64 = vector.broadcast %63 : f32 to vector<2x9x16xf32>
    %65 = arith.mulf %64, %31 : vector<2x9x16xf32>
    %66 = arith.addf %62, %65 : vector<2x9x16xf32>
    %c56 = arith.constant 56 : index
    %67 = memref.load %arg1[%c56] : memref<72xf32, #tpu.memory_space<smem>>
    %68 = vector.broadcast %67 : f32 to vector<2x9x16xf32>
    %69 = arith.mulf %68, %32 : vector<2x9x16xf32>
    %70 = arith.addf %66, %69 : vector<2x9x16xf32>
    %c64 = arith.constant 64 : index
    %71 = memref.load %arg1[%c64] : memref<72xf32, #tpu.memory_space<smem>>
    %72 = vector.broadcast %71 : f32 to vector<2x9x16xf32>
    %73 = arith.mulf %72, %33 : vector<2x9x16xf32>
    %74 = arith.addf %70, %73 : vector<2x9x16xf32>
    %cst_51 = arith.constant 0.000000e+00 : f32
    %75 = vector.broadcast %cst_51 : f32 to vector<2x9x16xf32>
    %76 = arith.maximumf %74, %75 : vector<2x9x16xf32>
    %cst_52 = arith.constant dense<0.000000e+00> : vector<2x9xf32>
    %77 = vector.multi_reduction <add>, %76, %cst_52 [2] : vector<2x9x16xf32> to vector<2x9xf32>
    %cst_53 = arith.constant dense<0.000000e+00> : vector<2xf32>
    %78 = vector.multi_reduction <add>, %77, %cst_53 [1] : vector<2x9xf32> to vector<2xf32>
    %79 = vector.shape_cast %78 : vector<2xf32> to vector<2x1xf32>
    %cst_54 = arith.constant 0.0069444445 : f32
    %80 = vector.broadcast %cst_54 : f32 to vector<2x1xf32>
    %81 = arith.mulf %79, %80 : vector<2x1xf32>
    %c0_55 = arith.constant 0 : index
    %c0_56 = arith.constant 0 : index
    %82 = vector.load %arg6[%c0_55, %c0_56] : memref<8x10xf32, #tpu.memory_space<vmem>>, vector<1x10xf32>
    %83 = vector.broadcast %81 : vector<2x1xf32> to vector<2x10xf32>
    %84 = vector.broadcast %82 : vector<1x10xf32> to vector<2x10xf32>
    %85 = arith.mulf %83, %84 : vector<2x10xf32>
    %86 = vector.broadcast %34 : vector<1x10xf32> to vector<2x10xf32>
    %87 = arith.addf %86, %85 : vector<2x10xf32>
    %c1_57 = arith.constant 1 : index
    %c0_58 = arith.constant 0 : index
    %c0_59 = arith.constant 0 : index
    %88 = vector.load %arg5[%c1_57, %c0_58, %c0_59] : memref<8x9x16xf32, #tpu.memory_space<vmem>>, vector<1x9x16xf32>
    %89 = vector.shape_cast %88 : vector<1x9x16xf32> to vector<9x16xf32>
    %c1_60 = arith.constant 1 : index
    %90 = memref.load %arg1[%c1_60] : memref<72xf32, #tpu.memory_space<smem>>
    %91 = vector.broadcast %90 : f32 to vector<2x9x16xf32>
    %92 = arith.mulf %91, %25 : vector<2x9x16xf32>
    %93 = vector.shape_cast %89 : vector<9x16xf32> to vector<1x9x16xf32>
    %94 = vector.broadcast %93 : vector<1x9x16xf32> to vector<2x9x16xf32>
    %95 = arith.addf %94, %92 : vector<2x9x16xf32>
    %c9 = arith.constant 9 : index
    %96 = memref.load %arg1[%c9] : memref<72xf32, #tpu.memory_space<smem>>
    %97 = vector.broadcast %96 : f32 to vector<2x9x16xf32>
    %98 = arith.mulf %97, %26 : vector<2x9x16xf32>
    %99 = arith.addf %95, %98 : vector<2x9x16xf32>
    %c17 = arith.constant 17 : index
    %100 = memref.load %arg1[%c17] : memref<72xf32, #tpu.memory_space<smem>>
    %101 = vector.broadcast %100 : f32 to vector<2x9x16xf32>
    %102 = arith.mulf %101, %27 : vector<2x9x16xf32>
    %103 = arith.addf %99, %102 : vector<2x9x16xf32>
    %c25 = arith.constant 25 : index
    %104 = memref.load %arg1[%c25] : memref<72xf32, #tpu.memory_space<smem>>
    %105 = vector.broadcast %104 : f32 to vector<2x9x16xf32>
    %106 = arith.mulf %105, %28 : vector<2x9x16xf32>
    %107 = arith.addf %103, %106 : vector<2x9x16xf32>
    %c33 = arith.constant 33 : index
    %108 = memref.load %arg1[%c33] : memref<72xf32, #tpu.memory_space<smem>>
    %109 = vector.broadcast %108 : f32 to vector<2x9x16xf32>
    %110 = arith.mulf %109, %29 : vector<2x9x16xf32>
    %111 = arith.addf %107, %110 : vector<2x9x16xf32>
    %c41 = arith.constant 41 : index
    %112 = memref.load %arg1[%c41] : memref<72xf32, #tpu.memory_space<smem>>
    %113 = vector.broadcast %112 : f32 to vector<2x9x16xf32>
    %114 = arith.mulf %113, %30 : vector<2x9x16xf32>
    %115 = arith.addf %111, %114 : vector<2x9x16xf32>
    %c49 = arith.constant 49 : index
    %116 = memref.load %arg1[%c49] : memref<72xf32, #tpu.memory_space<smem>>
    %117 = vector.broadcast %116 : f32 to vector<2x9x16xf32>
    %118 = arith.mulf %117, %31 : vector<2x9x16xf32>
    %119 = arith.addf %115, %118 : vector<2x9x16xf32>
    %c57 = arith.constant 57 : index
    %120 = memref.load %arg1[%c57] : memref<72xf32, #tpu.memory_space<smem>>
    %121 = vector.broadcast %120 : f32 to vector<2x9x16xf32>
    %122 = arith.mulf %121, %32 : vector<2x9x16xf32>
    %123 = arith.addf %119, %122 : vector<2x9x16xf32>
    %c65 = arith.constant 65 : index
    %124 = memref.load %arg1[%c65] : memref<72xf32, #tpu.memory_space<smem>>
    %125 = vector.broadcast %124 : f32 to vector<2x9x16xf32>
    %126 = arith.mulf %125, %33 : vector<2x9x16xf32>
    %127 = arith.addf %123, %126 : vector<2x9x16xf32>
    %cst_61 = arith.constant 0.000000e+00 : f32
    %128 = vector.broadcast %cst_61 : f32 to vector<2x9x16xf32>
    %129 = arith.maximumf %127, %128 : vector<2x9x16xf32>
    %cst_62 = arith.constant dense<0.000000e+00> : vector<2x9xf32>
    %130 = vector.multi_reduction <add>, %129, %cst_62 [2] : vector<2x9x16xf32> to vector<2x9xf32>
    %cst_63 = arith.constant dense<0.000000e+00> : vector<2xf32>
    %131 = vector.multi_reduction <add>, %130, %cst_63 [1] : vector<2x9xf32> to vector<2xf32>
    %132 = vector.shape_cast %131 : vector<2xf32> to vector<2x1xf32>
    %cst_64 = arith.constant 0.0069444445 : f32
    %133 = vector.broadcast %cst_64 : f32 to vector<2x1xf32>
    %134 = arith.mulf %132, %133 : vector<2x1xf32>
    %c1_65 = arith.constant 1 : index
    %c0_66 = arith.constant 0 : index
    %135 = vector.load %arg6[%c1_65, %c0_66] : memref<8x10xf32, #tpu.memory_space<vmem>>, vector<1x10xf32>
    %136 = vector.broadcast %134 : vector<2x1xf32> to vector<2x10xf32>
    %137 = vector.broadcast %135 : vector<1x10xf32> to vector<2x10xf32>
    %138 = arith.mulf %136, %137 : vector<2x10xf32>
    %139 = arith.addf %87, %138 : vector<2x10xf32>
    %c2_67 = arith.constant 2 : index
    %c0_68 = arith.constant 0 : index
    %c0_69 = arith.constant 0 : index
    %140 = vector.load %arg5[%c2_67, %c0_68, %c0_69] : memref<8x9x16xf32, #tpu.memory_space<vmem>>, vector<1x9x16xf32>
    %141 = vector.shape_cast %140 : vector<1x9x16xf32> to vector<9x16xf32>
    %c2_70 = arith.constant 2 : index
    %142 = memref.load %arg1[%c2_70] : memref<72xf32, #tpu.memory_space<smem>>
    %143 = vector.broadcast %142 : f32 to vector<2x9x16xf32>
    %144 = arith.mulf %143, %25 : vector<2x9x16xf32>
    %145 = vector.shape_cast %141 : vector<9x16xf32> to vector<1x9x16xf32>
    %146 = vector.broadcast %145 : vector<1x9x16xf32> to vector<2x9x16xf32>
    %147 = arith.addf %146, %144 : vector<2x9x16xf32>
    %c10 = arith.constant 10 : index
    %148 = memref.load %arg1[%c10] : memref<72xf32, #tpu.memory_space<smem>>
    %149 = vector.broadcast %148 : f32 to vector<2x9x16xf32>
    %150 = arith.mulf %149, %26 : vector<2x9x16xf32>
    %151 = arith.addf %147, %150 : vector<2x9x16xf32>
    %c18 = arith.constant 18 : index
    %152 = memref.load %arg1[%c18] : memref<72xf32, #tpu.memory_space<smem>>
    %153 = vector.broadcast %152 : f32 to vector<2x9x16xf32>
    %154 = arith.mulf %153, %27 : vector<2x9x16xf32>
    %155 = arith.addf %151, %154 : vector<2x9x16xf32>
    %c26 = arith.constant 26 : index
    %156 = memref.load %arg1[%c26] : memref<72xf32, #tpu.memory_space<smem>>
    %157 = vector.broadcast %156 : f32 to vector<2x9x16xf32>
    %158 = arith.mulf %157, %28 : vector<2x9x16xf32>
    %159 = arith.addf %155, %158 : vector<2x9x16xf32>
    %c34 = arith.constant 34 : index
    %160 = memref.load %arg1[%c34] : memref<72xf32, #tpu.memory_space<smem>>
    %161 = vector.broadcast %160 : f32 to vector<2x9x16xf32>
    %162 = arith.mulf %161, %29 : vector<2x9x16xf32>
    %163 = arith.addf %159, %162 : vector<2x9x16xf32>
    %c42 = arith.constant 42 : index
    %164 = memref.load %arg1[%c42] : memref<72xf32, #tpu.memory_space<smem>>
    %165 = vector.broadcast %164 : f32 to vector<2x9x16xf32>
    %166 = arith.mulf %165, %30 : vector<2x9x16xf32>
    %167 = arith.addf %163, %166 : vector<2x9x16xf32>
    %c50 = arith.constant 50 : index
    %168 = memref.load %arg1[%c50] : memref<72xf32, #tpu.memory_space<smem>>
    %169 = vector.broadcast %168 : f32 to vector<2x9x16xf32>
    %170 = arith.mulf %169, %31 : vector<2x9x16xf32>
    %171 = arith.addf %167, %170 : vector<2x9x16xf32>
    %c58 = arith.constant 58 : index
    %172 = memref.load %arg1[%c58] : memref<72xf32, #tpu.memory_space<smem>>
    %173 = vector.broadcast %172 : f32 to vector<2x9x16xf32>
    %174 = arith.mulf %173, %32 : vector<2x9x16xf32>
    %175 = arith.addf %171, %174 : vector<2x9x16xf32>
    %c66 = arith.constant 66 : index
    %176 = memref.load %arg1[%c66] : memref<72xf32, #tpu.memory_space<smem>>
    %177 = vector.broadcast %176 : f32 to vector<2x9x16xf32>
    %178 = arith.mulf %177, %33 : vector<2x9x16xf32>
    %179 = arith.addf %175, %178 : vector<2x9x16xf32>
    %cst_71 = arith.constant 0.000000e+00 : f32
    %180 = vector.broadcast %cst_71 : f32 to vector<2x9x16xf32>
    %181 = arith.maximumf %179, %180 : vector<2x9x16xf32>
    %cst_72 = arith.constant dense<0.000000e+00> : vector<2x9xf32>
    %182 = vector.multi_reduction <add>, %181, %cst_72 [2] : vector<2x9x16xf32> to vector<2x9xf32>
    %cst_73 = arith.constant dense<0.000000e+00> : vector<2xf32>
    %183 = vector.multi_reduction <add>, %182, %cst_73 [1] : vector<2x9xf32> to vector<2xf32>
    %184 = vector.shape_cast %183 : vector<2xf32> to vector<2x1xf32>
    %cst_74 = arith.constant 0.0069444445 : f32
    %185 = vector.broadcast %cst_74 : f32 to vector<2x1xf32>
    %186 = arith.mulf %184, %185 : vector<2x1xf32>
    %c2_75 = arith.constant 2 : index
    %c0_76 = arith.constant 0 : index
    %187 = vector.load %arg6[%c2_75, %c0_76] : memref<8x10xf32, #tpu.memory_space<vmem>>, vector<1x10xf32>
    %188 = vector.broadcast %186 : vector<2x1xf32> to vector<2x10xf32>
    %189 = vector.broadcast %187 : vector<1x10xf32> to vector<2x10xf32>
    %190 = arith.mulf %188, %189 : vector<2x10xf32>
    %191 = arith.addf %139, %190 : vector<2x10xf32>
    %c3 = arith.constant 3 : index
    %c0_77 = arith.constant 0 : index
    %c0_78 = arith.constant 0 : index
    %192 = vector.load %arg5[%c3, %c0_77, %c0_78] : memref<8x9x16xf32, #tpu.memory_space<vmem>>, vector<1x9x16xf32>
    %193 = vector.shape_cast %192 : vector<1x9x16xf32> to vector<9x16xf32>
    %c3_79 = arith.constant 3 : index
    %194 = memref.load %arg1[%c3_79] : memref<72xf32, #tpu.memory_space<smem>>
    %195 = vector.broadcast %194 : f32 to vector<2x9x16xf32>
    %196 = arith.mulf %195, %25 : vector<2x9x16xf32>
    %197 = vector.shape_cast %193 : vector<9x16xf32> to vector<1x9x16xf32>
    %198 = vector.broadcast %197 : vector<1x9x16xf32> to vector<2x9x16xf32>
    %199 = arith.addf %198, %196 : vector<2x9x16xf32>
    %c11 = arith.constant 11 : index
    %200 = memref.load %arg1[%c11] : memref<72xf32, #tpu.memory_space<smem>>
    %201 = vector.broadcast %200 : f32 to vector<2x9x16xf32>
    %202 = arith.mulf %201, %26 : vector<2x9x16xf32>
    %203 = arith.addf %199, %202 : vector<2x9x16xf32>
    %c19 = arith.constant 19 : index
    %204 = memref.load %arg1[%c19] : memref<72xf32, #tpu.memory_space<smem>>
    %205 = vector.broadcast %204 : f32 to vector<2x9x16xf32>
    %206 = arith.mulf %205, %27 : vector<2x9x16xf32>
    %207 = arith.addf %203, %206 : vector<2x9x16xf32>
    %c27 = arith.constant 27 : index
    %208 = memref.load %arg1[%c27] : memref<72xf32, #tpu.memory_space<smem>>
    %209 = vector.broadcast %208 : f32 to vector<2x9x16xf32>
    %210 = arith.mulf %209, %28 : vector<2x9x16xf32>
    %211 = arith.addf %207, %210 : vector<2x9x16xf32>
    %c35 = arith.constant 35 : index
    %212 = memref.load %arg1[%c35] : memref<72xf32, #tpu.memory_space<smem>>
    %213 = vector.broadcast %212 : f32 to vector<2x9x16xf32>
    %214 = arith.mulf %213, %29 : vector<2x9x16xf32>
    %215 = arith.addf %211, %214 : vector<2x9x16xf32>
    %c43 = arith.constant 43 : index
    %216 = memref.load %arg1[%c43] : memref<72xf32, #tpu.memory_space<smem>>
    %217 = vector.broadcast %216 : f32 to vector<2x9x16xf32>
    %218 = arith.mulf %217, %30 : vector<2x9x16xf32>
    %219 = arith.addf %215, %218 : vector<2x9x16xf32>
    %c51 = arith.constant 51 : index
    %220 = memref.load %arg1[%c51] : memref<72xf32, #tpu.memory_space<smem>>
    %221 = vector.broadcast %220 : f32 to vector<2x9x16xf32>
    %222 = arith.mulf %221, %31 : vector<2x9x16xf32>
    %223 = arith.addf %219, %222 : vector<2x9x16xf32>
    %c59 = arith.constant 59 : index
    %224 = memref.load %arg1[%c59] : memref<72xf32, #tpu.memory_space<smem>>
    %225 = vector.broadcast %224 : f32 to vector<2x9x16xf32>
    %226 = arith.mulf %225, %32 : vector<2x9x16xf32>
    %227 = arith.addf %223, %226 : vector<2x9x16xf32>
    %c67 = arith.constant 67 : index
    %228 = memref.load %arg1[%c67] : memref<72xf32, #tpu.memory_space<smem>>
    %229 = vector.broadcast %228 : f32 to vector<2x9x16xf32>
    %230 = arith.mulf %229, %33 : vector<2x9x16xf32>
    %231 = arith.addf %227, %230 : vector<2x9x16xf32>
    %cst_80 = arith.constant 0.000000e+00 : f32
    %232 = vector.broadcast %cst_80 : f32 to vector<2x9x16xf32>
    %233 = arith.maximumf %231, %232 : vector<2x9x16xf32>
    %cst_81 = arith.constant dense<0.000000e+00> : vector<2x9xf32>
    %234 = vector.multi_reduction <add>, %233, %cst_81 [2] : vector<2x9x16xf32> to vector<2x9xf32>
    %cst_82 = arith.constant dense<0.000000e+00> : vector<2xf32>
    %235 = vector.multi_reduction <add>, %234, %cst_82 [1] : vector<2x9xf32> to vector<2xf32>
    %236 = vector.shape_cast %235 : vector<2xf32> to vector<2x1xf32>
    %cst_83 = arith.constant 0.0069444445 : f32
    %237 = vector.broadcast %cst_83 : f32 to vector<2x1xf32>
    %238 = arith.mulf %236, %237 : vector<2x1xf32>
    %c3_84 = arith.constant 3 : index
    %c0_85 = arith.constant 0 : index
    %239 = vector.load %arg6[%c3_84, %c0_85] : memref<8x10xf32, #tpu.memory_space<vmem>>, vector<1x10xf32>
    %240 = vector.broadcast %238 : vector<2x1xf32> to vector<2x10xf32>
    %241 = vector.broadcast %239 : vector<1x10xf32> to vector<2x10xf32>
    %242 = arith.mulf %240, %241 : vector<2x10xf32>
    %243 = arith.addf %191, %242 : vector<2x10xf32>
    %c4 = arith.constant 4 : index
    %c0_86 = arith.constant 0 : index
    %c0_87 = arith.constant 0 : index
    %244 = vector.load %arg5[%c4, %c0_86, %c0_87] : memref<8x9x16xf32, #tpu.memory_space<vmem>>, vector<1x9x16xf32>
    %245 = vector.shape_cast %244 : vector<1x9x16xf32> to vector<9x16xf32>
    %c4_88 = arith.constant 4 : index
    %246 = memref.load %arg1[%c4_88] : memref<72xf32, #tpu.memory_space<smem>>
    %247 = vector.broadcast %246 : f32 to vector<2x9x16xf32>
    %248 = arith.mulf %247, %25 : vector<2x9x16xf32>
    %249 = vector.shape_cast %245 : vector<9x16xf32> to vector<1x9x16xf32>
    %250 = vector.broadcast %249 : vector<1x9x16xf32> to vector<2x9x16xf32>
    %251 = arith.addf %250, %248 : vector<2x9x16xf32>
    %c12 = arith.constant 12 : index
    %252 = memref.load %arg1[%c12] : memref<72xf32, #tpu.memory_space<smem>>
    %253 = vector.broadcast %252 : f32 to vector<2x9x16xf32>
    %254 = arith.mulf %253, %26 : vector<2x9x16xf32>
    %255 = arith.addf %251, %254 : vector<2x9x16xf32>
    %c20 = arith.constant 20 : index
    %256 = memref.load %arg1[%c20] : memref<72xf32, #tpu.memory_space<smem>>
    %257 = vector.broadcast %256 : f32 to vector<2x9x16xf32>
    %258 = arith.mulf %257, %27 : vector<2x9x16xf32>
    %259 = arith.addf %255, %258 : vector<2x9x16xf32>
    %c28 = arith.constant 28 : index
    %260 = memref.load %arg1[%c28] : memref<72xf32, #tpu.memory_space<smem>>
    %261 = vector.broadcast %260 : f32 to vector<2x9x16xf32>
    %262 = arith.mulf %261, %28 : vector<2x9x16xf32>
    %263 = arith.addf %259, %262 : vector<2x9x16xf32>
    %c36 = arith.constant 36 : index
    %264 = memref.load %arg1[%c36] : memref<72xf32, #tpu.memory_space<smem>>
    %265 = vector.broadcast %264 : f32 to vector<2x9x16xf32>
    %266 = arith.mulf %265, %29 : vector<2x9x16xf32>
    %267 = arith.addf %263, %266 : vector<2x9x16xf32>
    %c44 = arith.constant 44 : index
    %268 = memref.load %arg1[%c44] : memref<72xf32, #tpu.memory_space<smem>>
    %269 = vector.broadcast %268 : f32 to vector<2x9x16xf32>
    %270 = arith.mulf %269, %30 : vector<2x9x16xf32>
    %271 = arith.addf %267, %270 : vector<2x9x16xf32>
    %c52 = arith.constant 52 : index
    %272 = memref.load %arg1[%c52] : memref<72xf32, #tpu.memory_space<smem>>
    %273 = vector.broadcast %272 : f32 to vector<2x9x16xf32>
    %274 = arith.mulf %273, %31 : vector<2x9x16xf32>
    %275 = arith.addf %271, %274 : vector<2x9x16xf32>
    %c60 = arith.constant 60 : index
    %276 = memref.load %arg1[%c60] : memref<72xf32, #tpu.memory_space<smem>>
    %277 = vector.broadcast %276 : f32 to vector<2x9x16xf32>
    %278 = arith.mulf %277, %32 : vector<2x9x16xf32>
    %279 = arith.addf %275, %278 : vector<2x9x16xf32>
    %c68 = arith.constant 68 : index
    %280 = memref.load %arg1[%c68] : memref<72xf32, #tpu.memory_space<smem>>
    %281 = vector.broadcast %280 : f32 to vector<2x9x16xf32>
    %282 = arith.mulf %281, %33 : vector<2x9x16xf32>
    %283 = arith.addf %279, %282 : vector<2x9x16xf32>
    %cst_89 = arith.constant 0.000000e+00 : f32
    %284 = vector.broadcast %cst_89 : f32 to vector<2x9x16xf32>
    %285 = arith.maximumf %283, %284 : vector<2x9x16xf32>
    %cst_90 = arith.constant dense<0.000000e+00> : vector<2x9xf32>
    %286 = vector.multi_reduction <add>, %285, %cst_90 [2] : vector<2x9x16xf32> to vector<2x9xf32>
    %cst_91 = arith.constant dense<0.000000e+00> : vector<2xf32>
    %287 = vector.multi_reduction <add>, %286, %cst_91 [1] : vector<2x9xf32> to vector<2xf32>
    %288 = vector.shape_cast %287 : vector<2xf32> to vector<2x1xf32>
    %cst_92 = arith.constant 0.0069444445 : f32
    %289 = vector.broadcast %cst_92 : f32 to vector<2x1xf32>
    %290 = arith.mulf %288, %289 : vector<2x1xf32>
    %c4_93 = arith.constant 4 : index
    %c0_94 = arith.constant 0 : index
    %291 = vector.load %arg6[%c4_93, %c0_94] : memref<8x10xf32, #tpu.memory_space<vmem>>, vector<1x10xf32>
    %292 = vector.broadcast %290 : vector<2x1xf32> to vector<2x10xf32>
    %293 = vector.broadcast %291 : vector<1x10xf32> to vector<2x10xf32>
    %294 = arith.mulf %292, %293 : vector<2x10xf32>
    %295 = arith.addf %243, %294 : vector<2x10xf32>
    %c5 = arith.constant 5 : index
    %c0_95 = arith.constant 0 : index
    %c0_96 = arith.constant 0 : index
    %296 = vector.load %arg5[%c5, %c0_95, %c0_96] : memref<8x9x16xf32, #tpu.memory_space<vmem>>, vector<1x9x16xf32>
    %297 = vector.shape_cast %296 : vector<1x9x16xf32> to vector<9x16xf32>
    %c5_97 = arith.constant 5 : index
    %298 = memref.load %arg1[%c5_97] : memref<72xf32, #tpu.memory_space<smem>>
    %299 = vector.broadcast %298 : f32 to vector<2x9x16xf32>
    %300 = arith.mulf %299, %25 : vector<2x9x16xf32>
    %301 = vector.shape_cast %297 : vector<9x16xf32> to vector<1x9x16xf32>
    %302 = vector.broadcast %301 : vector<1x9x16xf32> to vector<2x9x16xf32>
    %303 = arith.addf %302, %300 : vector<2x9x16xf32>
    %c13 = arith.constant 13 : index
    %304 = memref.load %arg1[%c13] : memref<72xf32, #tpu.memory_space<smem>>
    %305 = vector.broadcast %304 : f32 to vector<2x9x16xf32>
    %306 = arith.mulf %305, %26 : vector<2x9x16xf32>
    %307 = arith.addf %303, %306 : vector<2x9x16xf32>
    %c21 = arith.constant 21 : index
    %308 = memref.load %arg1[%c21] : memref<72xf32, #tpu.memory_space<smem>>
    %309 = vector.broadcast %308 : f32 to vector<2x9x16xf32>
    %310 = arith.mulf %309, %27 : vector<2x9x16xf32>
    %311 = arith.addf %307, %310 : vector<2x9x16xf32>
    %c29 = arith.constant 29 : index
    %312 = memref.load %arg1[%c29] : memref<72xf32, #tpu.memory_space<smem>>
    %313 = vector.broadcast %312 : f32 to vector<2x9x16xf32>
    %314 = arith.mulf %313, %28 : vector<2x9x16xf32>
    %315 = arith.addf %311, %314 : vector<2x9x16xf32>
    %c37 = arith.constant 37 : index
    %316 = memref.load %arg1[%c37] : memref<72xf32, #tpu.memory_space<smem>>
    %317 = vector.broadcast %316 : f32 to vector<2x9x16xf32>
    %318 = arith.mulf %317, %29 : vector<2x9x16xf32>
    %319 = arith.addf %315, %318 : vector<2x9x16xf32>
    %c45 = arith.constant 45 : index
    %320 = memref.load %arg1[%c45] : memref<72xf32, #tpu.memory_space<smem>>
    %321 = vector.broadcast %320 : f32 to vector<2x9x16xf32>
    %322 = arith.mulf %321, %30 : vector<2x9x16xf32>
    %323 = arith.addf %319, %322 : vector<2x9x16xf32>
    %c53 = arith.constant 53 : index
    %324 = memref.load %arg1[%c53] : memref<72xf32, #tpu.memory_space<smem>>
    %325 = vector.broadcast %324 : f32 to vector<2x9x16xf32>
    %326 = arith.mulf %325, %31 : vector<2x9x16xf32>
    %327 = arith.addf %323, %326 : vector<2x9x16xf32>
    %c61 = arith.constant 61 : index
    %328 = memref.load %arg1[%c61] : memref<72xf32, #tpu.memory_space<smem>>
    %329 = vector.broadcast %328 : f32 to vector<2x9x16xf32>
    %330 = arith.mulf %329, %32 : vector<2x9x16xf32>
    %331 = arith.addf %327, %330 : vector<2x9x16xf32>
    %c69 = arith.constant 69 : index
    %332 = memref.load %arg1[%c69] : memref<72xf32, #tpu.memory_space<smem>>
    %333 = vector.broadcast %332 : f32 to vector<2x9x16xf32>
    %334 = arith.mulf %333, %33 : vector<2x9x16xf32>
    %335 = arith.addf %331, %334 : vector<2x9x16xf32>
    %cst_98 = arith.constant 0.000000e+00 : f32
    %336 = vector.broadcast %cst_98 : f32 to vector<2x9x16xf32>
    %337 = arith.maximumf %335, %336 : vector<2x9x16xf32>
    %cst_99 = arith.constant dense<0.000000e+00> : vector<2x9xf32>
    %338 = vector.multi_reduction <add>, %337, %cst_99 [2] : vector<2x9x16xf32> to vector<2x9xf32>
    %cst_100 = arith.constant dense<0.000000e+00> : vector<2xf32>
    %339 = vector.multi_reduction <add>, %338, %cst_100 [1] : vector<2x9xf32> to vector<2xf32>
    %340 = vector.shape_cast %339 : vector<2xf32> to vector<2x1xf32>
    %cst_101 = arith.constant 0.0069444445 : f32
    %341 = vector.broadcast %cst_101 : f32 to vector<2x1xf32>
    %342 = arith.mulf %340, %341 : vector<2x1xf32>
    %c5_102 = arith.constant 5 : index
    %c0_103 = arith.constant 0 : index
    %343 = vector.load %arg6[%c5_102, %c0_103] : memref<8x10xf32, #tpu.memory_space<vmem>>, vector<1x10xf32>
    %344 = vector.broadcast %342 : vector<2x1xf32> to vector<2x10xf32>
    %345 = vector.broadcast %343 : vector<1x10xf32> to vector<2x10xf32>
    %346 = arith.mulf %344, %345 : vector<2x10xf32>
    %347 = arith.addf %295, %346 : vector<2x10xf32>
    %c6 = arith.constant 6 : index
    %c0_104 = arith.constant 0 : index
    %c0_105 = arith.constant 0 : index
    %348 = vector.load %arg5[%c6, %c0_104, %c0_105] : memref<8x9x16xf32, #tpu.memory_space<vmem>>, vector<1x9x16xf32>
    %349 = vector.shape_cast %348 : vector<1x9x16xf32> to vector<9x16xf32>
    %c6_106 = arith.constant 6 : index
    %350 = memref.load %arg1[%c6_106] : memref<72xf32, #tpu.memory_space<smem>>
    %351 = vector.broadcast %350 : f32 to vector<2x9x16xf32>
    %352 = arith.mulf %351, %25 : vector<2x9x16xf32>
    %353 = vector.shape_cast %349 : vector<9x16xf32> to vector<1x9x16xf32>
    %354 = vector.broadcast %353 : vector<1x9x16xf32> to vector<2x9x16xf32>
    %355 = arith.addf %354, %352 : vector<2x9x16xf32>
    %c14 = arith.constant 14 : index
    %356 = memref.load %arg1[%c14] : memref<72xf32, #tpu.memory_space<smem>>
    %357 = vector.broadcast %356 : f32 to vector<2x9x16xf32>
    %358 = arith.mulf %357, %26 : vector<2x9x16xf32>
    %359 = arith.addf %355, %358 : vector<2x9x16xf32>
    %c22 = arith.constant 22 : index
    %360 = memref.load %arg1[%c22] : memref<72xf32, #tpu.memory_space<smem>>
    %361 = vector.broadcast %360 : f32 to vector<2x9x16xf32>
    %362 = arith.mulf %361, %27 : vector<2x9x16xf32>
    %363 = arith.addf %359, %362 : vector<2x9x16xf32>
    %c30 = arith.constant 30 : index
    %364 = memref.load %arg1[%c30] : memref<72xf32, #tpu.memory_space<smem>>
    %365 = vector.broadcast %364 : f32 to vector<2x9x16xf32>
    %366 = arith.mulf %365, %28 : vector<2x9x16xf32>
    %367 = arith.addf %363, %366 : vector<2x9x16xf32>
    %c38 = arith.constant 38 : index
    %368 = memref.load %arg1[%c38] : memref<72xf32, #tpu.memory_space<smem>>
    %369 = vector.broadcast %368 : f32 to vector<2x9x16xf32>
    %370 = arith.mulf %369, %29 : vector<2x9x16xf32>
    %371 = arith.addf %367, %370 : vector<2x9x16xf32>
    %c46 = arith.constant 46 : index
    %372 = memref.load %arg1[%c46] : memref<72xf32, #tpu.memory_space<smem>>
    %373 = vector.broadcast %372 : f32 to vector<2x9x16xf32>
    %374 = arith.mulf %373, %30 : vector<2x9x16xf32>
    %375 = arith.addf %371, %374 : vector<2x9x16xf32>
    %c54 = arith.constant 54 : index
    %376 = memref.load %arg1[%c54] : memref<72xf32, #tpu.memory_space<smem>>
    %377 = vector.broadcast %376 : f32 to vector<2x9x16xf32>
    %378 = arith.mulf %377, %31 : vector<2x9x16xf32>
    %379 = arith.addf %375, %378 : vector<2x9x16xf32>
    %c62 = arith.constant 62 : index
    %380 = memref.load %arg1[%c62] : memref<72xf32, #tpu.memory_space<smem>>
    %381 = vector.broadcast %380 : f32 to vector<2x9x16xf32>
    %382 = arith.mulf %381, %32 : vector<2x9x16xf32>
    %383 = arith.addf %379, %382 : vector<2x9x16xf32>
    %c70 = arith.constant 70 : index
    %384 = memref.load %arg1[%c70] : memref<72xf32, #tpu.memory_space<smem>>
    %385 = vector.broadcast %384 : f32 to vector<2x9x16xf32>
    %386 = arith.mulf %385, %33 : vector<2x9x16xf32>
    %387 = arith.addf %383, %386 : vector<2x9x16xf32>
    %cst_107 = arith.constant 0.000000e+00 : f32
    %388 = vector.broadcast %cst_107 : f32 to vector<2x9x16xf32>
    %389 = arith.maximumf %387, %388 : vector<2x9x16xf32>
    %cst_108 = arith.constant dense<0.000000e+00> : vector<2x9xf32>
    %390 = vector.multi_reduction <add>, %389, %cst_108 [2] : vector<2x9x16xf32> to vector<2x9xf32>
    %cst_109 = arith.constant dense<0.000000e+00> : vector<2xf32>
    %391 = vector.multi_reduction <add>, %390, %cst_109 [1] : vector<2x9xf32> to vector<2xf32>
    %392 = vector.shape_cast %391 : vector<2xf32> to vector<2x1xf32>
    %cst_110 = arith.constant 0.0069444445 : f32
    %393 = vector.broadcast %cst_110 : f32 to vector<2x1xf32>
    %394 = arith.mulf %392, %393 : vector<2x1xf32>
    %c6_111 = arith.constant 6 : index
    %c0_112 = arith.constant 0 : index
    %395 = vector.load %arg6[%c6_111, %c0_112] : memref<8x10xf32, #tpu.memory_space<vmem>>, vector<1x10xf32>
    %396 = vector.broadcast %394 : vector<2x1xf32> to vector<2x10xf32>
    %397 = vector.broadcast %395 : vector<1x10xf32> to vector<2x10xf32>
    %398 = arith.mulf %396, %397 : vector<2x10xf32>
    %399 = arith.addf %347, %398 : vector<2x10xf32>
    %c7 = arith.constant 7 : index
    %c0_113 = arith.constant 0 : index
    %c0_114 = arith.constant 0 : index
    %400 = vector.load %arg5[%c7, %c0_113, %c0_114] : memref<8x9x16xf32, #tpu.memory_space<vmem>>, vector<1x9x16xf32>
    %401 = vector.shape_cast %400 : vector<1x9x16xf32> to vector<9x16xf32>
    %c7_115 = arith.constant 7 : index
    %402 = memref.load %arg1[%c7_115] : memref<72xf32, #tpu.memory_space<smem>>
    %403 = vector.broadcast %402 : f32 to vector<2x9x16xf32>
    %404 = arith.mulf %403, %25 : vector<2x9x16xf32>
    %405 = vector.shape_cast %401 : vector<9x16xf32> to vector<1x9x16xf32>
    %406 = vector.broadcast %405 : vector<1x9x16xf32> to vector<2x9x16xf32>
    %407 = arith.addf %406, %404 : vector<2x9x16xf32>
    %c15 = arith.constant 15 : index
    %408 = memref.load %arg1[%c15] : memref<72xf32, #tpu.memory_space<smem>>
    %409 = vector.broadcast %408 : f32 to vector<2x9x16xf32>
    %410 = arith.mulf %409, %26 : vector<2x9x16xf32>
    %411 = arith.addf %407, %410 : vector<2x9x16xf32>
    %c23 = arith.constant 23 : index
    %412 = memref.load %arg1[%c23] : memref<72xf32, #tpu.memory_space<smem>>
    %413 = vector.broadcast %412 : f32 to vector<2x9x16xf32>
    %414 = arith.mulf %413, %27 : vector<2x9x16xf32>
    %415 = arith.addf %411, %414 : vector<2x9x16xf32>
    %c31 = arith.constant 31 : index
    %416 = memref.load %arg1[%c31] : memref<72xf32, #tpu.memory_space<smem>>
    %417 = vector.broadcast %416 : f32 to vector<2x9x16xf32>
    %418 = arith.mulf %417, %28 : vector<2x9x16xf32>
    %419 = arith.addf %415, %418 : vector<2x9x16xf32>
    %c39 = arith.constant 39 : index
    %420 = memref.load %arg1[%c39] : memref<72xf32, #tpu.memory_space<smem>>
    %421 = vector.broadcast %420 : f32 to vector<2x9x16xf32>
    %422 = arith.mulf %421, %29 : vector<2x9x16xf32>
    %423 = arith.addf %419, %422 : vector<2x9x16xf32>
    %c47 = arith.constant 47 : index
    %424 = memref.load %arg1[%c47] : memref<72xf32, #tpu.memory_space<smem>>
    %425 = vector.broadcast %424 : f32 to vector<2x9x16xf32>
    %426 = arith.mulf %425, %30 : vector<2x9x16xf32>
    %427 = arith.addf %423, %426 : vector<2x9x16xf32>
    %c55 = arith.constant 55 : index
    %428 = memref.load %arg1[%c55] : memref<72xf32, #tpu.memory_space<smem>>
    %429 = vector.broadcast %428 : f32 to vector<2x9x16xf32>
    %430 = arith.mulf %429, %31 : vector<2x9x16xf32>
    %431 = arith.addf %427, %430 : vector<2x9x16xf32>
    %c63 = arith.constant 63 : index
    %432 = memref.load %arg1[%c63] : memref<72xf32, #tpu.memory_space<smem>>
    %433 = vector.broadcast %432 : f32 to vector<2x9x16xf32>
    %434 = arith.mulf %433, %32 : vector<2x9x16xf32>
    %435 = arith.addf %431, %434 : vector<2x9x16xf32>
    %c71 = arith.constant 71 : index
    %436 = memref.load %arg1[%c71] : memref<72xf32, #tpu.memory_space<smem>>
    %437 = vector.broadcast %436 : f32 to vector<2x9x16xf32>
    %438 = arith.mulf %437, %33 : vector<2x9x16xf32>
    %439 = arith.addf %435, %438 : vector<2x9x16xf32>
    %cst_116 = arith.constant 0.000000e+00 : f32
    %440 = vector.broadcast %cst_116 : f32 to vector<2x9x16xf32>
    %441 = arith.maximumf %439, %440 : vector<2x9x16xf32>
    %cst_117 = arith.constant dense<0.000000e+00> : vector<2x9xf32>
    %442 = vector.multi_reduction <add>, %441, %cst_117 [2] : vector<2x9x16xf32> to vector<2x9xf32>
    %cst_118 = arith.constant dense<0.000000e+00> : vector<2xf32>
    %443 = vector.multi_reduction <add>, %442, %cst_118 [1] : vector<2x9xf32> to vector<2xf32>
    %444 = vector.shape_cast %443 : vector<2xf32> to vector<2x1xf32>
    %cst_119 = arith.constant 0.0069444445 : f32
    %445 = vector.broadcast %cst_119 : f32 to vector<2x1xf32>
    %446 = arith.mulf %444, %445 : vector<2x1xf32>
    %c7_120 = arith.constant 7 : index
    %c0_121 = arith.constant 0 : index
    %447 = vector.load %arg6[%c7_120, %c0_121] : memref<8x10xf32, #tpu.memory_space<vmem>>, vector<1x10xf32>
    %448 = vector.broadcast %446 : vector<2x1xf32> to vector<2x10xf32>
    %449 = vector.broadcast %447 : vector<1x10xf32> to vector<2x10xf32>
    %450 = arith.mulf %448, %449 : vector<2x10xf32>
    %451 = arith.addf %399, %450 : vector<2x10xf32>
    %c0_122 = arith.constant 0 : index
    %c0_123 = arith.constant 0 : index
    %452 = vector.load %arg8[%c0_122, %c0_123] : memref<2x10xf32, #tpu.memory_space<vmem>>, vector<2x10xf32>
    tpu.vector_store %arg8[%c0_122, %c0_123], %451 {strides = array<i32>} : memref<2x10xf32, #tpu.memory_space<vmem>>, vector<2x10xf32>,
    return
  }
  func.func @transform_0(%arg0: i32) -> i32 {
    %c0_i32 = arith.constant 0 : i32
    %c0_i32_0 = arith.constant 0 : i32
    return %c0_i32 : i32
  }
  func.func @transform_1(%arg0: i32) -> (i32, i32) {
    %c0_i32 = arith.constant 0 : i32
    %c0_i32_0 = arith.constant 0 : i32
    %c0_i32_1 = arith.constant 0 : i32
    return %c0_i32, %c0_i32_0 : i32, i32
  }
  func.func @transform_2(%arg0: i32) -> (i32, i32) {
    %c0_i32 = arith.constant 0 : i32
    %c0_i32_0 = arith.constant 0 : i32
    %c0_i32_1 = arith.constant 0 : i32
    return %c0_i32, %c0_i32_0 : i32, i32
  }
  func.func @transform_3(%arg0: i32) -> (i32, i32) {
    %c0_i32 = arith.constant 0 : i32
    %c0_i32_0 = arith.constant 0 : i32
    %c0_i32_1 = arith.constant 0 : i32
    return %c0_i32, %c0_i32_0 : i32, i32
  }
  func.func @transform_4(%arg0: i32) -> (i32, i32, i32) {
    %c0_i32 = arith.constant 0 : i32
    %c0_i32_0 = arith.constant 0 : i32
    %c0_i32_1 = arith.constant 0 : i32
    %c0_i32_2 = arith.constant 0 : i32
    return %c0_i32, %c0_i32_0, %c0_i32_1 : i32, i32, i32
  }
  func.func @transform_5(%arg0: i32) -> (i32, i32) {
    %c0_i32 = arith.constant 0 : i32
    %c0_i32_0 = arith.constant 0 : i32
    %c0_i32_1 = arith.constant 0 : i32
    return %c0_i32, %c0_i32_0 : i32, i32
  }
  func.func @transform_6(%arg0: i32) -> (i32, i32) {
    %c0_i32 = arith.constant 0 : i32
    %c0_i32_0 = arith.constant 0 : i32
    %c0_i32_1 = arith.constant 0 : i32
    return %c0_i32, %c0_i32_0 : i32, i32
  }
  func.func @transform_7(%arg0: i32) -> (i32, i32) {
    %c0_i32 = arith.constant 0 : i32
    %c0_i32_0 = arith.constant 0 : i32
    %c0_i32_1 = arith.constant 0 : i32
    return %c0_i32, %c0_i32_0 : i32, i32
  }
}

</mosaic_0001>

<bundles_post_ra>
// kernel: audio_classifier_forward.1
= control target key start
LH: loop header
LB: loop body
LE: loop exit
PB: predicated region body
PF: predicated region fallthrough
CT: control target
= control target key end

     0   :  { %12 = vsyncpa [#allocation5], 0  ;;  %s4461_s0 = inlined_call_operand.vmem [shape: f32[72], index: 0, kind: input, shape index: {}]   ;;  %s4462_s1 = inlined_call_operand.vmem [shape: f32[18,64], index: 1, kind: input, shape index: {}]   ;;  %s4463_s2 = inlined_call_operand.vmem [shape: f32[64,128], index: 2, kind: input, shape index: {}]   ;;  %s4464_s3 = inlined_call_operand.vmem [shape: f32[128,16], index: 3, kind: input, shape index: {}]   ;;  %s4465_s4 = inlined_call_operand.vmem [shape: f32[8,9,16], index: 4, kind: input, shape index: {}]   ;;  %s4466_s5 = inlined_call_operand.vmem [shape: f32[8,10], index: 5, kind: input, shape index: {}]   ;;  %s4467_s6 = inlined_call_operand.vmem [shape: f32[1,10], index: 6, kind: input, shape index: {}]   ;;  %s4468_s7 = inlined_call_operand.hbm [shape: f32[2,10], index: 7, kind: output, shape index: {}]  }
   0x1   :  { %13 = vsyncpa [#allocation4], 0  ;;  %s20_s26 = sshll.u32 %s4461_s0, 4  ;;  %s21_s26 = int_to_ptr.vmem [resolvable:$true] %s20_s26 }
   0x2   :  { %s2495_s27 = scalar_lea.vmem %s21_s26, 16  ;;  %p2500_p1 = scmp.lt.s32.totalorder %s21_s26, %s21_s26 }
   0x3   :  { %p2496_p0 = scmp.ne.s32.totalorder %s21_s26, %s2495_s27  ;;  %p2501_p2 = scmp.lt.s32.totalorder %s2495_s27, %s2495_s27 }
   0x5   :  { %p2502_p3 = por %p2501_p2, %p2500_p1 }
   0x7   :  { %p2503_p4 = pnand %p2502_p3, %p2496_p0 }
   0x9   :  { %2506 = shalt.err (!%p2503_p4)
}
   0xa   :  { %s2533_s28 = smov [#allocation3]  }
   0xb   :  { %23 = dma.vmem_to_smem %s21_s26, 16, %s2533_s28, [#allocation5]  }
   0xc   :  { %2529 = dma.done.wait [#allocation5], 16  }
   0xd   :  { %2530 = vsyncadd [#allocation5], 4294967280 }
   0xe   :  { %39 = sfence }
   0xf   :  { %v43_v0 = vld [vmem:[%s4463_s2] sm:$0xff]  ;;  %v44_v1 = vld [vmem:[%s4463_s2 + $0x8] sm:$0xff]  ;;  %v45_v2 = vld [vmem:[%s4463_s2 + $0x10] sm:$0xff]  ;;  %v2534_v3 = vmov 0.0|0.0   ;;  %vm2535_vm0 = vmmov 0   ;;  %v2536_v6 = vmov 0.0  }
  0x10   :  { %2438 = vmatprep.subr.bf16.mxu0 %v2534_v3  ;;  %v2439_v4 = vpack.c.bf16 %v44_v1, %v43_v0  ;;  %v46_v5 = vld [vmem:[%s4463_s2 + $0x18] sm:$0xff]  ;;  %2388 = vmatprep.mubr.msk.f32.mxu0 %vm2535_vm0, %v2536_v6  ;;  %vm257_vm1 = vcmask 141312   ;;  %v47_v8 = vld [vmem:[%s4463_s2 + $0x20] sm:$0xff]  ;;  %v48_v9 = vld [vmem:[%s4463_s2 + $0x28] sm:$0xff]  ;;  %vm51_vm2 = vcmask 523264   ;;  %s2254_s0 = sld [smem:[#allocation3 + $0x38]] }
  0x11   :  { %258 = vst.msk [vmem:[#allocation2 + $0x8] sm:$0x7] %vm257_vm1, %v2536_v6  ;;  %260 = vst.msk [vmem:[#allocation2 + $0x18] sm:$0x7] %vm257_vm1, %v2536_v6  ;;  %2450 = vmatprep.subr.bf16.mxu1 %v2534_v3  ;;  %2429 = vmatprep.mubr.msk.f32.mxu1 %vm2535_vm0, %v2536_v6  ;;  %v2442_v7 = vpack.c.bf16 %v46_v5, %v45_v2  ;;  %v144_v10 = vld [vmem:[%s4464_s3] sm:$0xff]  ;;  %v145_v11 = vld [vmem:[%s4464_s3 + $0x8] sm:$0xff]  ;;  %v2445_v15 = vpack.c.bf16 %v48_v9, %v47_v8 }
  0x12   :  { %2440 = vmatpush3.bf16.msra.mxu0 %v2439_v4  ;;  %v146_v12 = vld [vmem:[%s4464_s3 + $0x10] sm:$0xff]  ;;  %v147_v13 = vld [vmem:[%s4464_s3 + $0x18] sm:$0xff]  ;;  %v2451_v14 = vpack.c.bf16 %v145_v11, %v144_v10  ;;  %v148_v19 = vld [vmem:[%s4464_s3 + $0x20] sm:$0xff]  ;;  %s2537_s10 = smov 127   ;;  %s2538_s11 = smov 126   ;;  %vm255_vm3 = vcmask 146432  }
  0x13   :  { %2441 = vmatprep.subr.bf16.mxu0 %v2534_v3  ;;  %v49_v16 = vld [vmem:[%s4463_s2 + $0x30] sm:$0xff]  ;;  %v2454_v17 = vpack.c.bf16 %v147_v13, %v146_v12  ;;  %v50_v18 = vld [vmem:[%s4463_s2 + $0x38] sm:$0xff]  ;;  %v149_v20 = vld [vmem:[%s4464_s3 + $0x28] sm:$0xff]  ;;  %s2255_s2 = sld [smem:[#allocation3 + $0x40]]  ;;  %s2280_s12 = sld [smem:[#allocation3 + $0x42]]  ;;  %256 = vst.msk [vmem:[#allocation2] sm:$0xff] %vm255_vm3, %v2536_v6 }
  0x14   :  { %2452 = vmatpush3.bf16.msra.mxu1 %v2451_v14  ;;  %v2448_v21 = vpack.c.bf16 %v50_v18, %v49_v16  ;;  %v2457_v22 = vpack.c.bf16 %v149_v20, %v148_v19  ;;  %v150_v23 = vld [vmem:[%s4464_s3 + $0x30] sm:$0xff]  ;;  %v151_v24 = vld [vmem:[%s4464_s3 + $0x38] sm:$0xff]  ;;  %v40_v25 = vld [vmem:[%s4462_s1] sm:$0xff]  ;;  %s2303_s13 = sld [smem:[#allocation3 + $0x3c]]  ;;  %s2267_s15 = sld [smem:[#allocation3 + $0x39]]  ;;  %259 = vst.msk [vmem:[#allocation2 + $0x10] sm:$0xff] %vm255_vm3, %v2536_v6 }
  0x15   :  { %2453 = vmatprep.subr.bf16.mxu1 %v2534_v3  ;;  %v2460_v26 = vpack.c.bf16 %v151_v24, %v150_v23  ;;  %v152_v27 = vld [vmem:[%s4464_s3 + $0x40] sm:$0xff]  ;;  %v153_v28 = vld [vmem:[%s4464_s3 + $0x48] sm:$0xff]  ;;  %v154_v31 = vld [vmem:[%s4464_s3 + $0x50] sm:$0xff]  ;;  %s2304_s14 = sld [smem:[#allocation3 + $0x44]]  ;;  %s2268_s16 = sld [smem:[#allocation3 + $0x41]]  ;;  %vm269_vm4 = vcmask 138248  }
  0x16   :  { %2443 = vmatpush3.bf16.msra.mxu0 %v2442_v7  ;;  %v41_v29 = vld [vmem:[%s4462_s1 + $0x8] sm:$0xff]  ;;  %v2463_v30 = vpack.c.bf16 %v153_v28, %v152_v27  ;;  %v155_v32 = vld [vmem:[%s4464_s3 + $0x58] sm:$0xff]  ;;  %v42_v33 = vld [vmem:[%s4462_s1 + $0x10] sm:$0x3]  ;;  %v2694_v43 = vstv %s2254_s0  ;;  %s2291_s17 = sld [smem:[#allocation3 + $0x3b]]  ;;  %s2315_s19 = sld [smem:[#allocation3 + $0x3d]] }
  0x17   :  { %2444 = vmatprep.subr.bf16.mxu0 %v2534_v3  ;;  %v2466_v34 = vpack.c.bf16 %v155_v32, %v154_v31  ;;  %v156_v35 = vld [vmem:[%s4464_s3 + $0x60] sm:$0xff]  ;;  %v157_v36 = vld [vmem:[%s4464_s3 + $0x68] sm:$0xff]  ;;  %v158_v38 = vld [vmem:[%s4464_s3 + $0x70] sm:$0xff]  ;;  %s2292_s18 = sld [smem:[#allocation3 + $0x43]]  ;;  %s2316_s20 = sld [smem:[#allocation3 + $0x45]]  ;;  %vm271_vm5 = vcmask 131080  }
  0x18   :  { %2455 = vmatpush3.bf16.msra.mxu1 %v2454_v17  ;;  %v2469_v37 = vpack.c.bf16 %v157_v36, %v156_v35  ;;  %v159_v39 = vld [vmem:[%s4464_s3 + $0x78] sm:$0xff]  ;;  %v2690_v41 = vld [vmem:[#allocation2 + $0xa] sm:$0x1]  ;;  %s2279_s3 = sld [smem:[#allocation3 + $0x3a]]  ;;  %s2327_s21 = sld [smem:[#allocation3 + $0x3e]]  ;;  %vm278_vm6 = vcmask 138249  }
  0x19   :  { %2456 = vmatprep.subr.bf16.mxu1 %v2534_v3  ;;  %v2472_v40 = vpack.c.bf16 %v159_v39, %v158_v38  ;;  %v2692_v42 = vld [vmem:[#allocation2 + $0x1a] sm:$0x1]  ;;  %v434_v44 = vmul.f32 %v2694_v43, %v2690_v41  ;;  %v2701_v46 = vstv %s2255_s2  ;;  %v2717_v52 = vstv %s2280_s12  ;;  %s2328_s22 = sld [smem:[#allocation3 + $0x46]]  ;;  %s2339_s23 = sld [smem:[#allocation3 + $0x3f]] }
  0x1a   :  { %2446 = vmatpush3.bf16.msra.mxu0 %v2445_v15  ;;  %v436_v45 = vmul.f32 %v2694_v43, %v2692_v42  ;;  %v460_v47 = vmul.f32 %v2701_v46, %v2690_v41  ;;  %v462_v48 = vmul.f32 %v2701_v46, %v2692_v42  ;;  %v954_v53 = vmul.f32 %v2717_v52, %v2690_v41  ;;  %s2340_s24 = sld [smem:[#allocation3 + $0x47]]  ;;  %s2539_s25 = smov 1  }
  0x1b   :  { %2447 = vmatprep.subr.bf16.mxu0 %v2534_v3  ;;  %443 = vrot.lane.b32.xlu0 %v434_v44, %s2537_s10  ;;  %v956_v54 = vmul.f32 %v2717_v52, %v2692_v42  ;;  %v2730_v0 = vstv %s2303_s13  ;;  %v2748_v7 = vstv %s2267_s15  ;;  %v2755_v10 = vstv %s2268_s16  ;;  %s2248_s26 = sld [smem:[#allocation3 + $0x8]]  ;;  %s2261_s28 = sld [smem:[#allocation3 + $0x9]] }
  0x1c   :  { %2458 = vmatpush3.bf16.msra.mxu1 %v2457_v22  ;;  %4531 = vst [vmem:[#allocation9_spill] sm:$0xff] %v2730_v0  ;;  %v1408_v1 = vmul.f32 %v2730_v0, %v2690_v41  ;;  %v1410_v2 = vmul.f32 %v2730_v0, %v2692_v42  ;;  %v688_v8 = vmul.f32 %v2748_v7, %v2690_v41  ;;  %v2763_v12 = vstv %s2291_s17  ;;  %s2249_s27 = sld [smem:[#allocation3 + $0x10]]  ;;  %s2262_s1 = sld [smem:[#allocation3 + $0x11]] }
  0x1d   :  { %2459 = vmatprep.subr.bf16.mxu1 %v2534_v3  ;;  %v690_v9 = vmul.f32 %v2748_v7, %v2692_v42  ;;  %v714_v11 = vmul.f32 %v2755_v10, %v2690_v41  ;;  %4533 = vst [vmem:[#allocation11_spill] sm:$0xff] %v2763_v12  ;;  %v1168_v13 = vmul.f32 %v2763_v12, %v2690_v41  ;;  %v2771_v15 = vstv %s2292_s18  ;;  %s2251_s29 = sld [smem:[#allocation3 + $0x20]]  ;;  %s2264_s8 = sld [smem:[#allocation3 + $0x21]] }
  0x1e   :  { %2449 = vmatpush3.bf16.msra.mxu0 %v2448_v21  ;;  %v2709_v49 = vstv %s2279_s3  ;;  %697 = vrot.lane.b32.xlu1 %v688_v8, %s2537_s10  ;;  %v1170_v14 = vmul.f32 %v2763_v12, %v2692_v42  ;;  %4534 = vst [vmem:[#allocation12_spill] sm:$0xff] %v2771_v15  ;;  %v1194_v16 = vmul.f32 %v2771_v15, %v2690_v41  ;;  %v2779_v18 = vstv %s2315_s19  ;;  %s2252_s30 = sld [smem:[#allocation3 + $0x28]]  ;;  %s2265_s9 = sld [smem:[#allocation3 + $0x29]] }
  0x1f   :  { %447 = vrot.lane.b32.xlu0 %v436_v45, %s2537_s10  ;;  %v928_v50 = vmul.f32 %v2709_v49, %v2690_v41  ;;  %v930_v51 = vmul.f32 %v2709_v49, %v2692_v42  ;;  %v1196_v17 = vmul.f32 %v2771_v15, %v2692_v42  ;;  %4535 = vst [vmem:[#allocation13_spill] sm:$0xff] %v2779_v18  ;;  %v2787_v21 = vstv %s2316_s20  ;;  %s2273_s0 = sld [smem:[#allocation3 + $0xa]]  ;;  %s2310_s2 = sld [smem:[#allocation3 + $0x15]] }
  0x20   :  { %2461 = vmatpush3.bf16.msra.mxu1 %v2460_v26  ;;  %v1648_v19 = vmul.f32 %v2779_v18, %v2690_v41  ;;  %v1650_v20 = vmul.f32 %v2779_v18, %v2692_v42  ;;  %4536 = vst [vmem:[#allocation14_spill] sm:$0xff] %v2787_v21  ;;  %v1674_v22 = vmul.f32 %v2787_v21, %v2690_v41  ;;  %v2795_v24 = vstv %s2327_s21  ;;  %s2274_s3 = sld [smem:[#allocation3 + $0x12]]  ;;  %s2321_s12 = sld [smem:[#allocation3 + $0xe]] }
  0x21   :  { %2389 = vmatmul.mubr.msk.f32.vlgmr.msra.gmra.mrb[0].mxu0 %vm51_vm2, %v40_v25  ;;  %2462 = vmatprep.subr.bf16.mxu1 %v2534_v3  ;;  %v1676_v23 = vmul.f32 %v2787_v21, %v2692_v42  ;;  %4537 = vst [vmem:[#allocation15_spill] sm:$0xff] %v2795_v24  ;;  %v1888_v25 = vmul.f32 %v2795_v24, %v2690_v41  ;;  %v2803_v27 = vstv %s2328_s22  ;;  %vm280_vm7 = vcmask 132104   ;;  %s2309_s13 = sld [smem:[#allocation3 + $0xd]]  ;;  %s2333_s15 = sld [smem:[#allocation3 + $0xf]] }
  0x22   :  { %2391 = vmatprep.mubr.msk.f32.mxu0 %vm2535_vm0, %v2536_v6  ;;  %701 = vrot.lane.b32.xlu1 %v690_v9, %s2537_s10  ;;  %v1890_v26 = vmul.f32 %v2795_v24, %v2692_v42  ;;  %4538 = vst [vmem:[#allocation16_spill] sm:$0xff] %v2803_v27  ;;  %v1914_v28 = vmul.f32 %v2803_v27, %v2690_v41  ;;  %s2939_s16 = sld [smem:[#allocation3 + $0x17]]  ;;  %s2941_s17 = sld [smem:[#allocation3 + $0x2d]]  ;;  %vm491_vm8 = vcmask 122880   ;;  %vm487_vm9 = vcmask 130048  }
  0x23   :  { %469 = vrot.lane.b32.xlu0 %v460_v47, %s2538_s11  ;;  %s2947_s18 = sld [smem:[#allocation3 + $0xb]]  ;;  %s2951_s19 = sld [smem:[#allocation3 + $0x22]]  ;;  %vm527_vm10 = vcmask 1041409   ;;  %vm516_vm11 = vcmask 130112   ;;  %vm530_vm12 = vcmask 66560   ;;  %vm2228_vm13 = vcmask 74752  }
  0x24   :  { %2464 = vmatpush3.bf16.msra.mxu1 %v2463_v30  ;;  %v2811_v30 = vstv %s2339_s23  ;;  %s2953_s20 = sld [smem:[#allocation3 + $0x26]]  ;;  %s2963_s22 = sld [smem:[#allocation3 + $0x27]] }
  0x25   :  { %2392 = vmatmul.mubr.msk.f32.gmra.mrb[2].mxu0 %vm51_vm2, %v41_v29  ;;  %2465 = vmatprep.subr.bf16.mxu1 %v2534_v3  ;;  %v1916_v29 = vmul.f32 %v2803_v27, %v2692_v42  ;;  %4539 = vst [vmem:[#allocation17_spill] sm:$0xff] %v2811_v30  ;;  %v2128_v31 = vmul.f32 %v2811_v30, %v2690_v41  ;;  %s2957_s21 = sld [smem:[#allocation3 + $0x2e]]  ;;  %s2965_s23 = sld [smem:[#allocation3 + $0x2f]] }
  0x26   :  { %2394 = vmatprep.mubr.msk.f32.mxu0 %vm2535_vm0, %v2536_v6  ;;  %723 = vrot.lane.b32.xlu1 %v714_v11, %s2538_s11  ;;  %v2130_v32 = vmul.f32 %v2811_v30, %v2692_v42 }
  0x27   :  { %473 = vrot.lane.b32.xlu0 %v462_v48, %s2538_s11 }
  0x28   :  { %2467 = vmatpush3.bf16.msra.mxu1 %v2466_v34 }
  0x29   :  { %2395 = vmatmul.mubr.msk.f32.gmra.mrb[4].mxu0 %vm51_vm2, %v42_v33  ;;  %2468 = vmatprep.subr.bf16.mxu1 %v2534_v3  ;;  %v2819_v33 = vstv %s2340_s24  ;;  %s2981_s24 = sld [smem:[#allocation3 + $0x13]] }
  0x2a   :  { %4540 = vst [vmem:[#allocation18_spill] sm:$0xff] %v2819_v33  ;;  %v2154_v34 = vmul.f32 %v2819_v33, %v2690_v41 }
  0x2b   :  { %937 = vrot.lane.b32.xlu0 %v928_v50, %s2537_s10 }
  0x2c   :  { %2470 = vmatpush3.bf16.msra.mxu1 %v2469_v37 }
  0x2d   :  { %2471 = vmatprep.subr.bf16.mxu1 %v2534_v3  ;;  %v2738_v3 = vstv %s2304_s14  ;;  %s2322_s14 = sld [smem:[#allocation3 + $0x16]] }
  0x2e   :  { %4532 = vst [vmem:[#allocation10_spill] sm:$0xff] %v2738_v3  ;;  %v1434_v4 = vmul.f32 %v2738_v3, %v2690_v41  ;;  %v1436_v5 = vmul.f32 %v2738_v3, %v2692_v42 }
  0x2f   :  { %941 = vrot.lane.b32.xlu0 %v930_v51, %s2537_s10 }
  0x30   :  { %2473 = vmatpush3.bf16.msra.mxu1 %v2472_v40 }
  0x33   :  { %963 = vrot.lane.b32.xlu0 %v954_v53, %s2538_s11 }
  0x37   :  { %967 = vrot.lane.b32.xlu0 %v956_v54, %s2538_s11 }
  0x3b   :  { %1417 = vrot.lane.b32.xlu0 %v1408_v1, %s2537_s10 }
  0x3f   :  { %1421 = vrot.lane.b32.xlu0 %v1410_v2, %s2537_s10 }
  0x43   :  { %1443 = vrot.lane.b32.xlu0 %v1434_v4, %s2538_s11 }
  0x47   :  { %1447 = vrot.lane.b32.xlu0 %v1436_v5, %s2538_s11 }
  0x8d   :  { %v2837_v4 = vpop.permute.xlu0 %443 }
  0x8e   :  { %4547 = vst [vmem:[#allocation25_spill] sm:$0xff] %v2837_v4 }
  0x91   :  { %v2841_v8 = vpop.permute.xlu0 %447 }
  0x92   :  { %4549 = vst [vmem:[#allocation27_spill] sm:$0xff] %v2841_v8 }
  0x95   :  { %v2845_v11 = vpop.permute.xlu0 %469 }
  0x96   :  { %4551 = vst [vmem:[#allocation29_spill] sm:$0xff] %v2845_v11 }
  0xf4   :  { %v127_v55 = vpop.f32.mrb[0].mxu0 }
  0xf5   :  { %v141_v56 = vmul.f32 %v127_v55, %v127_v55  ;;  %v2390_v57 = vpop.f32.mrb[1].mxu0 }
  0xf7   :  { %2430 = vmatmul.mubr.f32.vlgmr.msra.gmra.mrb[0].mxu1 %v141_v56 }
  0xf8   :  { %v132_v58 = vpop.f32.mrb[2].mxu0  ;;  %2432 = vmatprep.mubr.msk.f32.mxu1 %vm2535_vm0, %v2536_v6 }
  0xf9   :  { %v142_v59 = vmul.f32 %v132_v58, %v132_v58  ;;  %v2393_v60 = vpop.f32.mrb[3].mxu0 }
  0xfa   :  { %v2825_v60 = vpop.permute.xlu1 %697 }
  0xfb   :  { %2433 = vmatmul.mubr.f32.gmra.mrb[2].mxu1 %v142_v59  ;;  %4541 = vst [vmem:[#allocation19_spill] sm:$0xff] %v2825_v60 }
  0xfc   :  { %v137_v61 = vpop.f32.mrb[4].mxu0  ;;  %2435 = vmatprep.mubr.msk.f32.mxu1 %vm2535_vm0, %v2536_v6  ;;  %v716_v6 = vmul.f32 %v2755_v10, %v2692_v42 }
  0xfd   :  { %v143_v62 = vmul.f32 %v137_v61, %v137_v61  ;;  %v2396_v63 = vpop.f32.mrb[5].mxu0 }
  0xfe   :  { %727 = vrot.lane.b32.xlu1 %v716_v6, %s2538_s11  ;;  %v2827_v61 = vpop.permute.xlu1 %701 }
  0xff   :  { %2436 = vmatmul.mubr.f32.gmra.mrb[4].mxu1 %v143_v62  ;;  %4542 = vst [vmem:[#allocation20_spill] sm:$0xff] %v2827_v61  ;;  %v3034_v61 = vstv %s2953_s20  ;;  %s3243_s20 = sld [smem:[#allocation3 + $0x1d]] }
 0x102   :  { %1177 = vrot.lane.b32.xlu1 %v1168_v13, %s2537_s10  ;;  %v2829_v62 = vpop.permute.xlu1 %723  ;;  %v2849_v13 = vpop.permute.xlu0 %473 }
 0x103   :  { %4543 = vst [vmem:[#allocation21_spill] sm:$0xff] %v2829_v62  ;;  %4553 = vst [vmem:[#allocation31_spill] sm:$0xff] %v2849_v13  ;;  %v3009_v13 = vstv %s2941_s17  ;;  %s3207_s17 = sld [smem:[#allocation3 + $0x5]] }
 0x106   :  { %1181 = vrot.lane.b32.xlu1 %v1170_v14, %s2537_s10 }
 0x10a   :  { %1203 = vrot.lane.b32.xlu1 %v1194_v16, %s2538_s11  ;;  %v2853_v16 = vpop.permute.xlu0 %937 }
 0x10b   :  { %4555 = vst [vmem:[#allocation33_spill] sm:$0xff] %v2853_v16 }
 0x10e   :  { %1207 = vrot.lane.b32.xlu1 %v1196_v17, %s2538_s11 }
 0x112   :  { %1657 = vrot.lane.b32.xlu1 %v1648_v19, %s2537_s10  ;;  %v2857_v19 = vpop.permute.xlu0 %941 }
 0x113   :  { %4557 = vst [vmem:[#allocation35_spill] sm:$0xff] %v2857_v19 }
 0x116   :  { %1661 = vrot.lane.b32.xlu1 %v1650_v20, %s2537_s10 }
 0x11a   :  { %1683 = vrot.lane.b32.xlu1 %v1674_v22, %s2538_s11  ;;  %v2861_v22 = vpop.permute.xlu0 %963 }
 0x11b   :  { %4559 = vst [vmem:[#allocation37_spill] sm:$0xff] %v2861_v22 }
 0x11e   :  { %1687 = vrot.lane.b32.xlu1 %v1676_v23, %s2538_s11 }
 0x122   :  { %1897 = vrot.lane.b32.xlu1 %v1888_v25, %s2537_s10  ;;  %v2865_v25 = vpop.permute.xlu0 %967 }
 0x123   :  { %4561 = vst [vmem:[#allocation39_spill] sm:$0xff] %v2865_v25 }
 0x126   :  { %1901 = vrot.lane.b32.xlu1 %v1890_v26, %s2537_s10 }
 0x12a   :  { %1923 = vrot.lane.b32.xlu1 %v1914_v28, %s2538_s11  ;;  %v2869_v28 = vpop.permute.xlu0 %1417 }
 0x12b   :  { %4563 = vst [vmem:[#allocation41_spill] sm:$0xff] %v2869_v28 }
 0x12e   :  { %1927 = vrot.lane.b32.xlu1 %v1916_v29, %s2538_s11 }
 0x132   :  { %2137 = vrot.lane.b32.xlu1 %v2128_v31, %s2537_s10  ;;  %v2873_v31 = vpop.permute.xlu0 %1421 }
 0x133   :  { %4565 = vst [vmem:[#allocation43_spill] sm:$0xff] %v2873_v31  ;;  %v2995_v31 = vstv %s2333_s15  ;;  %s3157_s15 = sld [smem:[#allocation3 + $0x1b]] }
 0x136   :  { %2141 = vrot.lane.b32.xlu1 %v2130_v32, %s2537_s10 }
 0x13a   :  { %2163 = vrot.lane.b32.xlu1 %v2154_v34, %s2538_s11  ;;  %v2877_v34 = vpop.permute.xlu0 %1443 }
 0x13b   :  { %4567 = vst [vmem:[#allocation45_spill] sm:$0xff] %v2877_v34 }
 0x170   :  { %v2831_v63 = vpop.permute.xlu1 %727 }
 0x171   :  { %4544 = vst [vmem:[#allocation22_spill] sm:$0xff] %v2831_v63  ;;  %v3028_v63 = vstv %s2947_s18  ;;  %s3223_s18 = sld [smem:[#allocation3 + $0x1c]] }
 0x172   :  { %4579 = vst [vmem:[#allocation57_spill] sm:$0xff] %v3028_v63 }
 0x174   :  { %v2833_v1 = vpop.permute.xlu1 %1177 }
 0x175   :  { %4545 = vst [vmem:[#allocation23_spill] sm:$0xff] %v2833_v1  ;;  %v3068_v1 = vstv %s2981_s24 }
 0x176   :  { %4584 = vst [vmem:[#allocation62_spill] sm:$0xff] %v3068_v1 }
 0x178   :  { %v2835_v2 = vpop.permute.xlu1 %1181 }
 0x179   :  { %4546 = vst [vmem:[#allocation24_spill] sm:$0xff] %v2835_v2  ;;  %v3031_v2 = vstv %s2951_s19  ;;  %s3225_s19 = sld [smem:[#allocation3 + $0x6]] }
 0x17c   :  { %v2839_v5 = vpop.permute.xlu1 %1203 }
 0x17d   :  { %4548 = vst [vmem:[#allocation26_spill] sm:$0xff] %v2839_v5 }
 0x180   :  { %v2843_v9 = vpop.permute.xlu1 %1207 }
 0x181   :  { %4550 = vst [vmem:[#allocation28_spill] sm:$0xff] %v2843_v9 }
 0x184   :  { %v2847_v6 = vpop.permute.xlu1 %1657 }
 0x185   :  { %4552 = vst [vmem:[#allocation30_spill] sm:$0xff] %v2847_v6  ;;  %v3049_v6 = vstv %s2965_s23 }
 0x188   :  { %v2851_v14 = vpop.permute.xlu1 %1661 }
 0x189   :  { %4554 = vst [vmem:[#allocation32_spill] sm:$0xff] %v2851_v14 }
 0x18c   :  { %v2855_v17 = vpop.permute.xlu1 %1683 }
 0x18d   :  { %4556 = vst [vmem:[#allocation34_spill] sm:$0xff] %v2855_v17 }
 0x190   :  { %v2859_v20 = vpop.permute.xlu1 %1687 }
 0x191   :  { %4558 = vst [vmem:[#allocation36_spill] sm:$0xff] %v2859_v20  ;;  %v2985_v20 = vstv %s2309_s13  ;;  %s3149_s13 = sld [smem:[#allocation3 + $0x3]] }
 0x194   :  { %v2863_v23 = vpop.permute.xlu1 %1897 }
 0x195   :  { %4560 = vst [vmem:[#allocation38_spill] sm:$0xff] %v2863_v23  ;;  %v3046_v23 = vstv %s2963_s22  ;;  %s2290_s22 = sld [smem:[#allocation3 + $0x33]] }
 0x198   :  { %v2867_v26 = vpop.permute.xlu1 %1901 }
 0x199   :  { %4562 = vst [vmem:[#allocation40_spill] sm:$0xff] %v2867_v26  ;;  %v2987_v26 = vstv %s2322_s14  ;;  %s3155_s14 = sld [smem:[#allocation3 + $0x1a]] }
 0x19c   :  { %v2871_v29 = vpop.permute.xlu1 %1923 }
 0x19d   :  { %4564 = vst [vmem:[#allocation42_spill] sm:$0xff] %v2871_v29  ;;  %v3039_v29 = vstv %s2957_s21  ;;  %s3274_s21 = sld [smem:[#allocation3 + $0x1e]] }
 0x1a0   :  { %v2875_v32 = vpop.permute.xlu1 %1927 }
 0x1a1   :  { %4566 = vst [vmem:[#allocation44_spill] sm:$0xff] %v2875_v32 }
 0x1ca   :  { %v226_v35 = vpop.f32.mrb[0].mxu1 }
 0x1cb   :  { %v240_v36 = vmax.f32 %v226_v35, 1e-10  ;;  %v2431_v37 = vpop.f32.mrb[1].mxu1  ;;  %v2879_v35 = vpop.permute.xlu1 %2137 }
 0x1cc   :  { %4568 = vst [vmem:[#allocation46_spill] sm:$0xff] %v2879_v35 }
 0x1cd   :  { %2482 = vlog2.f32 %v240_v36  ;;  %v2881_v36 = vpop.permute.xlu0 %1447 }
 0x1ce   :  { %v231_v38 = vpop.f32.mrb[2].mxu1  ;;  %4569 = vst [vmem:[#allocation47_spill] sm:$0xff] %v2881_v36 }
 0x1cf   :  { %v241_v39 = vmax.f32 %v231_v38, 1e-10  ;;  %v2434_v40 = vpop.f32.mrb[3].mxu1  ;;  %v2883_v37 = vpop.permute.xlu1 %2141 }
 0x1d0   :  { %4570 = vst [vmem:[#allocation48_spill] sm:$0xff] %v2883_v37  ;;  %v2979_v37 = vstv %s2274_s3  ;;  %s3141_s3 = sld [smem:[#allocation3 + $0x19]] }
 0x1d1   :  { %2484 = vlog2.f32 %v241_v39 }
 0x1d2   :  { %v236_v44 = vpop.f32.mrb[4].mxu1 }
 0x1d3   :  { %v242_v45 = vmax.f32 %v236_v44, 1e-10  ;;  %v2437_v42 = vpop.f32.mrb[5].mxu1  ;;  %v2885_v39 = vpop.permute.xlu1 %2163  ;;  %v2887_v44 = vstv %s2248_s26  ;;  %s2288_s26 = sld [smem:[#allocation3 + $0x23]] }
 0x1d4   :  { %4571 = vst [vmem:[#allocation49_spill] sm:$0xff] %v2885_v39  ;;  %v3006_v39 = vstv %s2939_s16  ;;  %s3169_s16 = sld [smem:[#allocation3 + $0x4]] }
 0x1d5   :  { %2486 = vlog2.f32 %v242_v45 }
 0x1d7   :  { %v2483_v47 = vpop.eup %2482 }
 0x1d8   :  { %v244_v48 = vmul.f32 0.6931472, %v2483_v47 }
 0x1d9   :  { %v3079_v11 = vstv %s2288_s26 }
 0x1da   :  { %v249_v50 = vmul.f32 0.4342945, %v244_v48  ;;  %4585 = vst [vmem:[#allocation63_spill] sm:$0xff] %v3079_v11 }
 0x1db   :  { %v2485_v51 = vpop.eup %2484 }
 0x1dc   :  { %v246_v53 = vmul.f32 0.6931472, %v2485_v51  ;;  %v252_v41 = vmul.f32 10.0, %v249_v50  ;;  %v2897_v51 = vstv %s2249_s27  ;;  %s2289_s27 = sld [smem:[#allocation3 + $0x2b]] }
 0x1de   :  { %v250_v54 = vmul.f32 0.4342945, %v246_v53  ;;  %263 = vrot.lane.b32.xlu0 %v252_v41, %s2539_s25 }
 0x1df   :  { %v2487_v55 = vpop.eup %2486 }
 0x1e0   :  { %v253_v56 = vmul.f32 10.0, %v250_v54  ;;  %v248_v57 = vmul.f32 0.6931472, %v2487_v55  ;;  %v2907_v55 = vstv %s2261_s28  ;;  %s2297_s28 = sld [smem:[#allocation3 + $0xc]] }
 0x1e2   :  { %265 = vrot.lane.b32.xlu0 %v253_v56, %s2539_s25  ;;  %v251_v58 = vmul.f32 0.4342945, %v248_v57  ;;  %v2909_v56 = vstv %s2251_s29  ;;  %s2300_s29 = sld [smem:[#allocation3 + $0x24]] }
 0x1e4   :  { %v254_v59 = vmul.f32 10.0, %v251_v58 }
 0x1e6   :  { %274 = vrot.lane.b32.xlu1 %v254_v59, %s2539_s25  ;;  %v2917_v59 = vstv %s2262_s1  ;;  %s2983_s25 = sld [smem:[#allocation3 + $0x2a]]  ;;  %s2301_s1 = sld [smem:[#allocation3 + $0x2c]]  ;;  %v3095_v4 = vstv %s2297_s28 }
 0x1e7   :  { %4587 = vst [vmem:[#allocation65_spill] sm:$0xff] %v3095_v4  ;;  %s2540_s28 = smov [#allocation6]  }
 0x1e8   :  { %v3101_v30 = vstv %s2300_s29  ;;  %s2236_s29 = sshll.u32 %s2540_s28, 4  ;;  %s2237_s29 = int_to_ptr.vmem [resolvable:$true] %s2236_s29 }
 0x1e9   :  { %4589 = vst [vmem:[#allocation67_spill] sm:$0xff] %v3101_v30  ;;  %p2512_p6 = scmp.lt.s32.totalorder %s2237_s29, %s2237_s29 }
 0x1ec   :  { %v3071_v22 = vstv %s2983_s25  ;;  %v3109_v27 = vstv %s2301_s1  ;;  %s2302_s25 = sld [smem:[#allocation3 + $0x34]]  ;;  %s2332_s1 = sld [smem:[#allocation3 + $0x7]] }
 0x1ed   :  { %4591 = vst [vmem:[#allocation69_spill] sm:$0xff] %v3109_v27 }
 0x250   :  { %v264_v38 = vpop.permute.xlu0 %263 }
 0x251   :  { %270 = vst.msk [vmem:[#allocation2 + $0x1] sm:$0xff] %vm269_vm4, %v264_v38  ;;  %v2919_v38 = vstv %s2252_s30  ;;  %s2298_s30 = sld [smem:[#allocation3 + $0x14]] }
 0x254   :  { %v266_v40 = vpop.permute.xlu0 %265 }
 0x255   :  { %272 = vst.msk [vmem:[#allocation2 + $0x9] sm:$0x1] %vm271_vm5, %v266_v40 }
 0x256   :  { %279 = vst.msk [vmem:[#allocation2 + $0x10] sm:$0xfe] %vm278_vm6, %v266_v40 }
 0x257   :  { %v3115_v24 = vstv %s2298_s30  ;;  %s2335_s30 = sld [smem:[#allocation3 + $0x1f]] }
 0x258   :  { %v2889_v45 = vld [vmem:[#allocation2] sm:$0xff]  ;;  %v2891_v42 = vld [vmem:[#allocation2 + $0x8] sm:$0x1]  ;;  %v275_v47 = vpop.permute.xlu1 %274  ;;  %4593 = vst [vmem:[#allocation71_spill] sm:$0xff] %v3115_v24 }
 0x259   :  { %v310_v48 = vmul.f32 %v2887_v44, %v2891_v42  ;;  %v309_v50 = vmul.f32 %v2887_v44, %v2889_v45  ;;  %281 = vst.msk [vmem:[#allocation2 + $0x18] sm:$0x3] %vm280_vm7, %v275_v47  ;;  %v336_v53 = vmul.f32 %v2897_v51, %v2891_v42  ;;  %v335_v41 = vmul.f32 %v2897_v51, %v2889_v45  ;;  %v2905_v54 = vld [vmem:[#allocation2 + $0x1] sm:$0xff] }
 0x25a   :  { %v564_v57 = vmul.f32 %v2907_v55, %v2891_v42  ;;  %v371_v58 = vmul.f32 %v2909_v56, %v2905_v54  ;;  %v589_v40 = vmul.f32 %v2917_v59, %v2889_v45  ;;  %v397_v47 = vmul.f32 %v2919_v38, %v2905_v54 }
 0x25b   :  { %319 = vrot.lane.b32.xlu0 %v310_v48, %s2537_s10  ;;  %317 = vrot.lane.b32.xlu1 %v309_v50, %s2537_s10  ;;  %v2927_v48 = vstv %s2264_s8  ;;  %v829_v9 = vmul.f32 %v2979_v37, %v2889_v45  ;;  %v1044_v5 = vmul.f32 %v3028_v63, %v2891_v42  ;;  %v1069_v16 = vmul.f32 %v3068_v1, %v2889_v45  ;;  %s2312_s8 = sld [smem:[#allocation3 + $0x25]] }
 0x25c   :  { %v625_v50 = vmul.f32 %v2927_v48, %v2905_v54  ;;  %v2977_v36 = vld [vmem:[#allocation2 + $0x9] sm:$0x1]  ;;  %v891_v62 = vmul.f32 %v3071_v22, %v2905_v54  ;;  %v1105_v60 = vmul.f32 %v3079_v11, %v2905_v54  ;;  %v1523_v0 = vmul.f32 %v2985_v20, %v2889_v45 }
 0x25d   :  { %v3025_v35 = vmul.f32 %v3009_v13, %v2977_v36  ;;  %v3043_v17 = vmul.f32 %v3034_v61, %v2977_v36  ;;  %v3053_v34 = vmul.f32 %v3039_v29, %v2977_v36  ;;  %v3065_v28 = vmul.f32 %v3049_v6, %v2977_v36 }
 0x25f   :  { %345 = vrot.lane.b32.xlu0 %v336_v53, %s2538_s11  ;;  %343 = vrot.lane.b32.xlu1 %v335_v41, %s2538_s11  ;;  %v563_v53 = vmul.f32 %v2907_v55, %v2889_v45  ;;  %v2935_v41 = vstv %s2265_s9  ;;  %4578 = vst [vmem:[#allocation56_spill] sm:$0xff] %v3025_v35  ;;  %4580 = vst [vmem:[#allocation58_spill] sm:$0xff] %v3043_v17  ;;  %s3123_s9 = sld [smem:[#allocation3]] }
 0x260   :  { %4581 = vst [vmem:[#allocation59_spill] sm:$0xff] %v3053_v34  ;;  %4583 = vst [vmem:[#allocation61_spill] sm:$0xff] %v3065_v28  ;;  %v3097_v33 = vld [vmem:[#allocation2 + $0x11] sm:$0xff]  ;;  %v1284_v28 = vmul.f32 %v3095_v4, %v2891_v42  ;;  %v3137_v21 = vld [vmem:[#allocation2 + $0x19] sm:$0x1] }
 0x261   :  { %4588 = vst [vmem:[#allocation66_spill] sm:$0xff] %v3097_v33  ;;  %v3135_v34 = vstv %s2312_s8  ;;  %v3215_v18 = vmul.f32 %v3046_v23, %v3097_v33 }
 0x263   :  { %573 = vrot.lane.b32.xlu0 %v564_v57, %s2537_s10  ;;  %379 = vrot.lane.b32.xlu1 %v371_v58, %s2537_s10  ;;  %v651_v57 = vmul.f32 %v2935_v41, %v2905_v54  ;;  %v590_v58 = vmul.f32 %v2917_v59, %v2891_v42  ;;  %4609 = vst [vmem:[#allocation87_spill] sm:$0xff] %v3215_v18 }
 0x265   :  { %v3232_v18 = vstv %s3123_s9 }
 0x267   :  { %597 = vrot.lane.b32.xlu0 %v589_v40, %s2538_s11  ;;  %405 = vrot.lane.b32.xlu1 %v397_v47, %s2538_s11  ;;  %v2949_v40 = vstv %s2273_s0  ;;  %v2959_v47 = vld [vmem:[#allocation2 + $0x10] sm:$0xff]  ;;  %s3125_s0 = sld [smem:[#allocation3 + $0x1]] }
 0x268   :  { %v804_v32 = vmul.f32 %v2949_v40, %v2891_v42  ;;  %v2999_v14 = vmul.f32 %v2987_v26, %v2959_v47  ;;  %v3003_v19 = vmul.f32 %v2985_v20, %v2959_v47  ;;  %v3021_v8 = vmul.f32 %v3006_v39, %v2959_v47 }
 0x26a   :  { %4574 = vst [vmem:[#allocation52_spill] sm:$0xff] %v2999_v14  ;;  %4575 = vst [vmem:[#allocation53_spill] sm:$0xff] %v3003_v19  ;;  %v3267_v19 = vstv %s3157_s15  ;;  %v3272_v14 = vstv %s3169_s16  ;;  %s2266_s16 = sld [smem:[#allocation3 + $0x31]] }
 0x26b   :  { %633 = vrot.lane.b32.xlu0 %v625_v50, %s2537_s10  ;;  %571 = vrot.lane.b32.xlu1 %v563_v53, %s2537_s10  ;;  %v2961_v50 = vstv %s2310_s2  ;;  %v803_v53 = vmul.f32 %v2949_v40, %v2889_v45  ;;  %4577 = vst [vmem:[#allocation55_spill] sm:$0xff] %v3021_v8  ;;  %s3139_s2 = sld [smem:[#allocation3 + $0x18]]  ;;  %v3261_v8 = vstv %s3149_s13  ;;  %4614 = vst [vmem:[#allocation92_spill] sm:$0xff] %v3267_v19 }
 0x26c   :  { %4615 = vst [vmem:[#allocation93_spill] sm:$0xff] %v3272_v14  ;;  %s2253_s13 = sld [smem:[#allocation3 + $0x30]] }
 0x26f   :  { %659 = vrot.lane.b32.xlu0 %v651_v57, %s2538_s11  ;;  %599 = vrot.lane.b32.xlu1 %v590_v58, %s2538_s11  ;;  %v2971_v57 = vstv %s2321_s12  ;;  %v2975_v58 = vmul.f32 %v2961_v50, %v2959_v47  ;;  %s3147_s12 = sld [smem:[#allocation3 + $0x2]] }
 0x270   :  { %v2991_v25 = vmul.f32 %v2971_v57, %v2959_v47 }
 0x271   :  { %4572 = vst [vmem:[#allocation50_spill] sm:$0xff] %v2975_v58  ;;  %v1763_v58 = vmul.f32 %v2971_v57, %v2889_v45 }
 0x272   :  { %4573 = vst [vmem:[#allocation51_spill] sm:$0xff] %v2991_v25 }
 0x273   :  { %811 = vrot.lane.b32.xlu0 %v803_v53, %s2537_s10  ;;  %813 = vrot.lane.b32.xlu1 %v804_v32, %s2537_s10  ;;  %v3013_v32 = vmul.f32 %v2995_v31, %v2959_v47  ;;  %v830_v53 = vmul.f32 %v2979_v37, %v2891_v42 }
 0x275   :  { %4576 = vst [vmem:[#allocation54_spill] sm:$0xff] %v3013_v32  ;;  %v3258_v35 = vstv %s3147_s12  ;;  %v3264_v32 = vstv %s3155_s14  ;;  %s2338_s12 = sld [smem:[#allocation3 + $0x37]] }
 0x277   :  { %839 = vrot.lane.b32.xlu0 %v830_v53, %s2538_s11  ;;  %837 = vrot.lane.b32.xlu1 %v829_v9, %s2538_s11  ;;  %v865_v9 = vmul.f32 %v3031_v2, %v2905_v54  ;;  %v3061_v53 = vmul.f32 %v3046_v23, %v2977_v36 }
 0x279   :  { %4582 = vst [vmem:[#allocation60_spill] sm:$0xff] %v3061_v53  ;;  %v3113_v53 = vmul.f32 %v3101_v30, %v3097_v33 }
 0x27b   :  { %1053 = vrot.lane.b32.xlu0 %v1044_v5, %s2537_s10  ;;  %873 = vrot.lane.b32.xlu1 %v865_v9, %s2537_s10  ;;  %v1043_v5 = vmul.f32 %v3028_v63, %v2889_v45  ;;  %v3087_v9 = vstv %s2289_s27  ;;  %4592 = vst [vmem:[#allocation70_spill] sm:$0xff] %v3113_v53 }
 0x27c   :  { %4586 = vst [vmem:[#allocation64_spill] sm:$0xff] %v3087_v9 }
 0x27f   :  { %1077 = vrot.lane.b32.xlu0 %v1069_v16, %s2538_s11  ;;  %899 = vrot.lane.b32.xlu1 %v891_v62, %s2538_s11  ;;  %v1131_v16 = vmul.f32 %v3087_v9, %v2905_v54  ;;  %v1070_v62 = vmul.f32 %v3068_v1, %v2891_v42  ;;  %v3347_v9 = vstv %s3225_s19  ;;  %s2278_s19 = sld [smem:[#allocation3 + $0x32]] }
 0x280   :  { %4626 = vst [vmem:[#allocation104_spill] sm:$0xff] %v3347_v9 }
 0x283   :  { %1113 = vrot.lane.b32.xlu0 %v1105_v60, %s2537_s10  ;;  %1051 = vrot.lane.b32.xlu1 %v1043_v5, %s2537_s10  ;;  %v3103_v60 = vld [vmem:[#allocation2 + $0x18] sm:$0x1]  ;;  %v1283_v5 = vmul.f32 %v3095_v4, %v2889_v45 }
 0x284   :  { %4590 = vst [vmem:[#allocation68_spill] sm:$0xff] %v3103_v60  ;;  %v3133_v53 = vmul.f32 %v3115_v24, %v3103_v60  ;;  %v3177_v17 = vmul.f32 %v2985_v20, %v3103_v60  ;;  %v302_v25 = vmul.f32 %v3232_v18, %v3103_v60 }
 0x286   :  { %4596 = vst [vmem:[#allocation74_spill] sm:$0xff] %v3133_v53  ;;  %v3153_v53 = vmul.f32 %v3135_v34, %v3097_v33  ;;  %4601 = vst [vmem:[#allocation79_spill] sm:$0xff] %v3177_v17  ;;  %v1345_v17 = vmul.f32 %v3101_v30, %v2905_v54 }
 0x287   :  { %1139 = vrot.lane.b32.xlu0 %v1131_v16, %s2538_s11  ;;  %1079 = vrot.lane.b32.xlu1 %v1070_v62, %s2538_s11  ;;  %v3119_v16 = vmul.f32 %v3109_v27, %v3097_v33  ;;  %v3129_v62 = vmul.f32 %v3095_v4, %v3103_v60 }
 0x288   :  { %4597 = vst [vmem:[#allocation75_spill] sm:$0xff] %v3153_v53  ;;  %v3173_v53 = vmul.f32 %v3101_v30, %v3137_v21  ;;  %v3344_v30 = vstv %s3223_s18 }
 0x289   :  { %4594 = vst [vmem:[#allocation72_spill] sm:$0xff] %v3119_v16  ;;  %4595 = vst [vmem:[#allocation73_spill] sm:$0xff] %v3129_v62  ;;  %v3161_v62 = vmul.f32 %v3009_v13, %v3097_v33  ;;  %v3165_v16 = vmul.f32 %v3034_v61, %v3097_v33 }
 0x28a   :  { %4600 = vst [vmem:[#allocation78_spill] sm:$0xff] %v3173_v53  ;;  %v3201_v53 = vmul.f32 %v2995_v31, %v3103_v60  ;;  %4625 = vst [vmem:[#allocation103_spill] sm:$0xff] %v3344_v30 }
 0x28b   :  { %1291 = vrot.lane.b32.xlu0 %v1283_v5, %s2537_s10  ;;  %1293 = vrot.lane.b32.xlu1 %v1284_v28, %s2537_s10  ;;  %v1310_v28 = vmul.f32 %v3115_v24, %v2891_v42  ;;  %v1309_v5 = vmul.f32 %v3115_v24, %v2889_v45  ;;  %4598 = vst [vmem:[#allocation76_spill] sm:$0xff] %v3161_v62  ;;  %4599 = vst [vmem:[#allocation77_spill] sm:$0xff] %v3165_v16 }
 0x28c   :  { %v3181_v62 = vmul.f32 %v3109_v27, %v3137_v21  ;;  %v1524_v16 = vmul.f32 %v2985_v20, %v2891_v42  ;;  %4606 = vst [vmem:[#allocation84_spill] sm:$0xff] %v3201_v53  ;;  %v1371_v53 = vmul.f32 %v3109_v27, %v2905_v54  ;;  %v796_v24 = vmul.f32 %v3258_v35, %v3103_v60  ;;  %v3327_v20 = vld [vmem:[%s4465_s4 + $0x38] sm:$0x1] }
 0x28d   :  { %v3330_v27 = vstv %s3207_s17 }
 0x28e   :  { %4602 = vst [vmem:[#allocation80_spill] sm:$0xff] %v3181_v62  ;;  %v3197_v62 = vmul.f32 %v2987_v26, %v3103_v60  ;;  %4622 = vst [vmem:[#allocation100_spill] sm:$0xff] %v3330_v27 }
 0x28f   :  { %1319 = vrot.lane.b32.xlu0 %v1310_v28, %s2538_s11  ;;  %1317 = vrot.lane.b32.xlu1 %v1309_v5, %s2538_s11  ;;  %v3187_v28 = vmul.f32 %v2961_v50, %v3103_v60  ;;  %v3191_v5 = vmul.f32 %v2971_v57, %v3103_v60 }
 0x290   :  { %4605 = vst [vmem:[#allocation83_spill] sm:$0xff] %v3197_v62  ;;  %v3219_v62 = vmul.f32 %v3006_v39, %v3103_v60 }
 0x291   :  { %4603 = vst [vmem:[#allocation81_spill] sm:$0xff] %v3187_v28  ;;  %4604 = vst [vmem:[#allocation82_spill] sm:$0xff] %v3191_v5  ;;  %v3205_v28 = vmul.f32 %v3039_v29, %v3097_v33  ;;  %v3211_v5 = vmul.f32 %v3135_v34, %v3137_v21 }
 0x292   :  { %4610 = vst [vmem:[#allocation88_spill] sm:$0xff] %v3219_v62  ;;  %v3238_v62 = vstv %s3139_s2 }
 0x293   :  { %4607 = vst [vmem:[#allocation85_spill] sm:$0xff] %v3205_v28  ;;  %4608 = vst [vmem:[#allocation86_spill] sm:$0xff] %v3211_v5  ;;  %1533 = vrot.lane.b32.xlu0 %v1524_v16, %s2537_s10  ;;  %1353 = vrot.lane.b32.xlu1 %v1345_v17, %s2537_s10  ;;  %v3229_v5 = vmul.f32 %v3049_v6, %v3097_v33  ;;  %v3235_v28 = vstv %s3125_s0  ;;  %v3241_v16 = vstv %s3141_s3  ;;  %s2314_s0 = sld [smem:[#allocation3 + $0x35]] }
 0x294   :  { %v1549_v17 = vmul.f32 %v2961_v50, %v2889_v45  ;;  %v3255_v33 = vmul.f32 %v3034_v61, %v3137_v21  ;;  %v3297_v3 = vmul.f32 %v3238_v62, %v3137_v21 }
 0x295   :  { %4611 = vst [vmem:[#allocation89_spill] sm:$0xff] %v3229_v5  ;;  %v3251_v5 = vmul.f32 %v3009_v13, %v3137_v21 }
 0x296   :  { %4613 = vst [vmem:[#allocation91_spill] sm:$0xff] %v3255_v33  ;;  %v3278_v33 = vmul.f32 %v3039_v29, %v3137_v21  ;;  %4619 = vst [vmem:[#allocation97_spill] sm:$0xff] %v3297_v3 }
 0x297   :  { %4612 = vst [vmem:[#allocation90_spill] sm:$0xff] %v3251_v5  ;;  %1557 = vrot.lane.b32.xlu0 %v1549_v17, %s2538_s11  ;;  %1379 = vrot.lane.b32.xlu1 %v1371_v53, %s2538_s11  ;;  %v3282_v5 = vmul.f32 %v3046_v23, %v3137_v21  ;;  %v3289_v53 = vld [vmem:[%s4465_s4 + $0x8] sm:$0x1]  ;;  %v3293_v17 = vmul.f32 %v3049_v6, %v3137_v21 }
 0x298   :  { %4616 = vst [vmem:[#allocation94_spill] sm:$0xff] %v3278_v33  ;;  %v3303_v33 = vmul.f32 %v3241_v16, %v3137_v21  ;;  %v3315_v3 = vadd.f32 %v302_v25, %v3289_v53  ;;  %v3337_v25 = vmul.f32 %v3264_v32, %v3137_v21 }
 0x299   :  { %4617 = vst [vmem:[#allocation95_spill] sm:$0xff] %v3282_v5  ;;  %4618 = vst [vmem:[#allocation96_spill] sm:$0xff] %v3293_v17  ;;  %v556_v5 = vmul.f32 %v3235_v28, %v3103_v60  ;;  %v3312_v17 = vld [vmem:[%s4465_s4 + $0x18] sm:$0x1] }
 0x29a   :  { %4620 = vst [vmem:[#allocation98_spill] sm:$0xff] %v3303_v33  ;;  %4621 = vst [vmem:[#allocation99_spill] sm:$0xff] %v3315_v3  ;;  %v3322_v33 = vld [vmem:[%s4465_s4 + $0x28] sm:$0x1]  ;;  %v1036_v3 = vmul.f32 %v3261_v8, %v3103_v60 }
 0x29b   :  { %v3333_v4 = vadd.f32 %v3312_v17, %v556_v5  ;;  %4624 = vst [vmem:[#allocation102_spill] sm:$0xff] %v3337_v25  ;;  %1771 = vrot.lane.b32.xlu0 %v1763_v58, %s2537_s10  ;;  %1531 = vrot.lane.b32.xlu1 %v1523_v0, %s2537_s10  ;;  %v3350_v15 = vadd.f32 %v3322_v33, %v796_v24 }
 0x29c   :  { %v3354_v5 = vmul.f32 %v3267_v19, %v3137_v21  ;;  %v1789_v25 = vmul.f32 %v2987_v26, %v2889_v45  ;;  %v3362_v58 = vadd.f32 %v3327_v20, %v1036_v3  ;;  %v1276_v0 = vmul.f32 %v3272_v14, %v3103_v60 }
 0x29d   :  { %4623 = vst [vmem:[#allocation101_spill] sm:$0xff] %v3333_v4  ;;  %4627 = vst [vmem:[#allocation105_spill] sm:$0xff] %v3350_v15  ;;  %v3359_v4 = vstv %s3243_s20  ;;  %v1550_v24 = vmul.f32 %v2961_v50, %v2891_v42  ;;  %v3371_v15 = vld [vmem:[%s4465_s4 + $0x48] sm:$0x1]  ;;  %v1516_v19 = vmul.f32 %v3330_v27, %v3103_v60  ;;  %v1756_v3 = vmul.f32 %v3347_v9, %v3103_v60 }
 0x29e   :  { %4628 = vst [vmem:[#allocation106_spill] sm:$0xff] %v3354_v5  ;;  %4629 = vst [vmem:[#allocation107_spill] sm:$0xff] %v3362_v58  ;;  %v3375_v5 = vmul.f32 %v3344_v30, %v3137_v21  ;;  %v3384_v58 = vld [vmem:[%s4465_s4 + $0x58] sm:$0x1]  ;;  %v3389_v50 = vld [vmem:[%s4465_s4 + $0x68] sm:$0x1]  ;;  %v3392_v14 = vadd.f32 %v3371_v15, %v1276_v0  ;;  %v3401_v60 = vstv %s3274_s21 }
 0x29f   :  { %1797 = vrot.lane.b32.xlu0 %v1789_v25, %s2538_s11  ;;  %1559 = vrot.lane.b32.xlu1 %v1550_v24, %s2538_s11  ;;  %v3404_v9 = vadd.f32 %v3384_v58, %v1516_v19  ;;  %v3407_v27 = vadd.f32 %v3389_v50, %v1756_v3  ;;  %v3411_v0 = vmul.f32 %v3401_v60, %v3137_v21 }
 0x2a0   :  { %4630 = vst [vmem:[#allocation108_spill] sm:$0xff] %v3375_v5  ;;  %4631 = vst [vmem:[#allocation109_spill] sm:$0xff] %v3392_v14  ;;  %v3396_v5 = vmul.f32 %v3359_v4, %v3137_v21  ;;  %v2003_v14 = vmul.f32 %v2995_v31, %v2889_v45  ;;  %v1764_v25 = vmul.f32 %v2971_v57, %v2891_v42 }
 0x2a1   :  { %4633 = vst [vmem:[#allocation111_spill] sm:$0xff] %v3404_v9  ;;  %4634 = vst [vmem:[#allocation112_spill] sm:$0xff] %v3407_v27  ;;  %v1585_v19 = vmul.f32 %v3135_v34, %v2905_v54  ;;  %v1790_v24 = vmul.f32 %v2987_v26, %v2891_v42  ;;  %v2029_v3 = vmul.f32 %v3006_v39, %v2889_v45 }
 0x2a2   :  { %4632 = vst [vmem:[#allocation110_spill] sm:$0xff] %v3396_v5  ;;  %4635 = vst [vmem:[#allocation113_spill] sm:$0xff] %v3411_v0  ;;  %v2004_v57 = vmul.f32 %v2995_v31, %v2891_v42  ;;  %v2030_v26 = vmul.f32 %v3006_v39, %v2891_v42  ;;  %v1825_v31 = vmul.f32 %v3034_v61, %v2905_v54 }
 0x2a3   :  { %2011 = vrot.lane.b32.xlu0 %v2003_v14, %s2537_s10  ;;  %1773 = vrot.lane.b32.xlu1 %v1764_v25, %s2537_s10  ;;  %v1611_v14 = vmul.f32 %v3009_v13, %v2905_v54  ;;  %v311_v25 = vmul.f32 %v2887_v44, %v2959_v47  ;;  %v337_v13 = vmul.f32 %v2897_v51, %v2959_v47 }
 0x2a4   :  { %v1851_v39 = vmul.f32 %v3039_v29, %v2905_v54  ;;  %v831_v27 = vmul.f32 %v2979_v37, %v2959_v47 }
 0x2a7   :  { %1593 = vrot.lane.b32.xlu0 %v1585_v19, %s2537_s10  ;;  %1799 = vrot.lane.b32.xlu1 %v1790_v24, %s2538_s11  ;;  %v3447_v19 = vld [vmem:[#allocation2 + $0x2] sm:$0xff]  ;;  %v2065_v24 = vmul.f32 %v3046_v23, %v2905_v54  ;;  %v372_v23 = vmul.f32 %v2909_v56, %v2977_v36 }
 0x2a8   :  { %v433_v61 = vmul.f32 %v2694_v43, %v3447_v19  ;;  %v459_v29 = vmul.f32 %v2701_v46, %v3447_v19  ;;  %v713_v0 = vmul.f32 %v2755_v10, %v3447_v19 }
 0x2ab   :  { %2037 = vrot.lane.b32.xlu0 %v2029_v3, %s2538_s11  ;;  %2013 = vrot.lane.b32.xlu1 %v2004_v57, %s2537_s10  ;;  %v2091_v3 = vmul.f32 %v3049_v6, %v2905_v54  ;;  %v565_v57 = vmul.f32 %v2907_v55, %v2959_v47  ;;  %v398_v6 = vmul.f32 %v2919_v38, %v2977_v36 }
 0x2af   :  { %1619 = vrot.lane.b32.xlu0 %v1611_v14, %s2538_s11  ;;  %2039 = vrot.lane.b32.xlu1 %v2030_v26, %s2538_s11  ;;  %v626_v14 = vmul.f32 %v2927_v48, %v2977_v36  ;;  %v591_v26 = vmul.f32 %v2917_v59, %v2959_v47 }
 0x2b3   :  { %1833 = vrot.lane.b32.xlu0 %v1825_v31, %s2537_s10  ;;  %321 = vrot.lane.b32.xlu1 %v311_v25, %s2537_s10  ;;  %v652_v25 = vmul.f32 %v2935_v41, %v2977_v36  ;;  %v300_v31 = vmul.f32 %v3232_v18, %v2891_v42 }
 0x2b7   :  { %1859 = vrot.lane.b32.xlu0 %v1851_v39, %s2538_s11  ;;  %347 = vrot.lane.b32.xlu1 %v337_v13, %s2538_s11  ;;  %v299_v13 = vmul.f32 %v3232_v18, %v2889_v45  ;;  %v3488_v39 = vld [vmem:[%s4465_s4] sm:$0xff] }
 0x2bb   :  { %2073 = vrot.lane.b32.xlu0 %v2065_v24, %s2537_s10  ;;  %441 = vrot.lane.b32.xlu1 %v433_v61, %s2537_s10 }
 0x2bf   :  { %2099 = vrot.lane.b32.xlu0 %v2091_v3, %s2538_s11  ;;  %467 = vrot.lane.b32.xlu1 %v459_v29, %s2538_s11  ;;  %v687_v3 = vmul.f32 %v2748_v7, %v3447_v19  ;;  %v805_v29 = vmul.f32 %v2949_v40, %v2959_v47 }
 0x2c3   :  { %381 = vrot.lane.b32.xlu0 %v372_v23, %s2537_s10  ;;  %575 = vrot.lane.b32.xlu1 %v565_v57, %s2537_s10  ;;  %v304_v23 = vadd.f32 %v300_v31, %v3289_v53  ;;  %v303_v57 = vadd.f32 %v299_v13, %v3488_v39  ;;  %v361_v53 = vmul.f32 %v3238_v62, %v2905_v54 }
 0x2c4   :  { %v362_v31 = vmul.f32 %v3238_v62, %v2977_v36 }
 0x2c7   :  { %407 = vrot.lane.b32.xlu0 %v398_v6, %s2538_s11  ;;  %635 = vrot.lane.b32.xlu1 %v626_v14, %s2537_s10 }
 0x2cb   :  { %601 = vrot.lane.b32.xlu0 %v591_v26, %s2538_s11  ;;  %661 = vrot.lane.b32.xlu1 %v652_v25, %s2538_s11 }
 0x2cd   :  { %v320_v24 = vpop.permute.xlu0 %319  ;;  %v318_v61 = vpop.permute.xlu1 %317 }
 0x2ce   :  { %v330_v6 = vadd.f32 %v320_v24, %v304_v23  ;;  %v329_v14 = vadd.f32 %v318_v61, %v303_v57  ;;  %v927_v23 = vmul.f32 %v2709_v49, %v3447_v19  ;;  %v3516_v57 = vstv %s2253_s13 }
 0x2cf   :  { %695 = vrot.lane.b32.xlu0 %v687_v3, %s2537_s10  ;;  %815 = vrot.lane.b32.xlu1 %v805_v29, %s2537_s10  ;;  %v866_v29 = vmul.f32 %v3031_v2, %v2977_v36  ;;  %4637 = vst [vmem:[#allocation115_spill] sm:$0xff] %v3516_v57 }
 0x2d1   :  { %v346_v26 = vpop.permute.xlu0 %345  ;;  %v344_v25 = vpop.permute.xlu1 %343 }
 0x2d2   :  { %v356_v5 = vadd.f32 %v346_v26, %v330_v6  ;;  %v355_v9 = vadd.f32 %v344_v25, %v329_v14  ;;  %v892_v6 = vmul.f32 %v3071_v22, %v2977_v36  ;;  %v953_v14 = vmul.f32 %v2717_v52, %v3447_v19  ;;  %v3527_v26 = vld [vmem:[%s4465_s4 + $0x10] sm:$0xff] }
 0x2d3   :  { %721 = vrot.lane.b32.xlu0 %v713_v0, %s2538_s11  ;;  %841 = vrot.lane.b32.xlu1 %v831_v27, %s2538_s11  ;;  %v553_v27 = vmul.f32 %v3235_v28, %v2889_v45  ;;  %v554_v25 = vmul.f32 %v3235_v28, %v2891_v42 }
 0x2d4   :  { %v365_v13 = vadd.f32 %v361_v53, %v355_v9  ;;  %v3508_v24 = vadd.f32 %v362_v31, %v356_v5  ;;  %v423_v31 = vmul.f32 %v3516_v57, %v3447_v19 }
 0x2d5   :  { %v574_v61 = vpop.permute.xlu0 %573  ;;  %v380_v3 = vpop.permute.xlu1 %379 }
 0x2d6   :  { %4636 = vst [vmem:[#allocation114_spill] sm:$0xff] %v3508_v24  ;;  %v391_v0 = vadd.f32 %v380_v3, %v365_v13  ;;  %v557_v13 = vadd.f32 %v3527_v26, %v553_v27  ;;  %v1071_v24 = vmul.f32 %v3068_v1, %v2959_v47  ;;  %v615_v27 = vmul.f32 %v3241_v16, %v2905_v54 }
 0x2d7   :  { %875 = vrot.lane.b32.xlu0 %v866_v29, %s2537_s10  ;;  %935 = vrot.lane.b32.xlu1 %v927_v23, %s2537_s10  ;;  %v1106_v1 = vmul.f32 %v3079_v11, %v2977_v36 }
 0x2d9   :  { %v598_v9 = vpop.permute.xlu0 %597  ;;  %v406_v5 = vpop.permute.xlu1 %405 }
 0x2da   :  { %v417_v53 = vadd.f32 %v406_v5, %v391_v0  ;;  %v1045_v0 = vmul.f32 %v3028_v63, %v2959_v47  ;;  %v558_v5 = vadd.f32 %v3312_v17, %v554_v25  ;;  %v793_v17 = vmul.f32 %v3258_v35, %v2889_v45 }
 0x2db   :  { %901 = vrot.lane.b32.xlu0 %v892_v6, %s2538_s11  ;;  %961 = vrot.lane.b32.xlu1 %v953_v14, %s2538_s11 }
 0x2dc   :  { %v3536_v3 = vadd.f32 %v423_v31, %v417_v53  ;;  %v584_v6 = vadd.f32 %v574_v61, %v558_v5  ;;  %v794_v61 = vmul.f32 %v3258_v35, %v2891_v42 }
 0x2dd   :  { %v634_v29 = vpop.permute.xlu0 %633  ;;  %v572_v23 = vpop.permute.xlu1 %571 }
 0x2de   :  { %4638 = vst [vmem:[#allocation116_spill] sm:$0xff] %v3536_v3  ;;  %v583_v57 = vadd.f32 %v572_v23, %v557_v13  ;;  %v1167_v3 = vmul.f32 %v2763_v12, %v3447_v19  ;;  %v3564_v13 = vstv %s2266_s16  ;;  %v798_v11 = vadd.f32 %v3322_v33, %v794_v61 }
 0x2df   :  { %1081 = vrot.lane.b32.xlu0 %v1071_v24, %s2538_s11  ;;  %1055 = vrot.lane.b32.xlu1 %v1045_v0, %s2537_s10  ;;  %4639 = vst [vmem:[#allocation117_spill] sm:$0xff] %v3564_v13  ;;  %v677_v63 = vmul.f32 %v3564_v13, %v3447_v19  ;;  %v4655_v13 = vld [vmem:[#allocation92_spill] sm:$0xff] }
 0x2e0   :  { %v609_v14 = vadd.f32 %v598_v9, %v583_v57  ;;  %v616_v57 = vmul.f32 %v3241_v16, %v2977_v36  ;;  %v3562_v9 = vld [vmem:[%s4465_s4 + $0x20] sm:$0xff] }
 0x2e1   :  { %v660_v53 = vpop.permute.xlu0 %659  ;;  %v600_v31 = vpop.permute.xlu1 %599 }
 0x2e2   :  { %v619_v25 = vadd.f32 %v615_v27, %v609_v14  ;;  %v610_v24 = vadd.f32 %v600_v31, %v584_v6  ;;  %v4641_v14 = vld [vmem:[#allocation12_spill] sm:$0xff] }
 0x2e3   :  { %1175 = vrot.lane.b32.xlu0 %v1167_v3, %s2537_s10  ;;  %1115 = vrot.lane.b32.xlu1 %v1106_v1, %s2537_s10  ;;  %v1193_v27 = vmul.f32 %v4641_v14, %v3447_v19  ;;  %v4642_v31 = vld [vmem:[#allocation64_spill] sm:$0xff]  ;;  %v797_v1 = vadd.f32 %v3562_v9, %v793_v17  ;;  %v4645_v17 = vld [vmem:[#allocation65_spill] sm:$0xff] }
 0x2e4   :  { %v645_v23 = vadd.f32 %v634_v29, %v619_v25  ;;  %v3566_v0 = vadd.f32 %v616_v57, %v610_v24  ;;  %v1132_v3 = vmul.f32 %v4642_v31, %v2977_v36  ;;  %v1285_v33 = vmul.f32 %v4645_v17, %v2959_v47  ;;  %v4650_v17 = vld [vmem:[#allocation9_spill] sm:$0xff] }
 0x2e5   :  { %v812_v5 = vpop.permute.xlu0 %811  ;;  %v814_v6 = vpop.permute.xlu1 %813 }
 0x2e6   :  { %4640 = vst [vmem:[#allocation118_spill] sm:$0xff] %v3566_v0  ;;  %v671_v12 = vadd.f32 %v660_v53, %v645_v23  ;;  %v823_v29 = vadd.f32 %v812_v5, %v797_v1  ;;  %v824_v25 = vadd.f32 %v814_v6, %v798_v11  ;;  %v4644_v53 = vld [vmem:[#allocation67_spill] sm:$0xff]  ;;  %v4647_v6 = vld [vmem:[#allocation69_spill] sm:$0xff] }
 0x2e7   :  { %1201 = vrot.lane.b32.xlu0 %v1193_v27, %s2538_s11  ;;  %1141 = vrot.lane.b32.xlu1 %v1132_v3, %s2538_s11  ;;  %v1346_v23 = vmul.f32 %v4644_v53, %v2977_v36  ;;  %v855_v27 = vmul.f32 %v3264_v32, %v2905_v54  ;;  %v856_v3 = vmul.f32 %v3264_v32, %v2977_v36 }
 0x2e8   :  { %v3578_v24 = vadd.f32 %v677_v63, %v671_v12  ;;  %v1372_v1 = vmul.f32 %v4647_v6, %v2977_v36 }
 0x2e9   :  { %v840_v57 = vpop.permute.xlu0 %839  ;;  %v838_v0 = vpop.permute.xlu1 %837 }
 0x2ea   :  { %4643 = vst [vmem:[#allocation119_spill] sm:$0xff] %v3578_v24  ;;  %v850_v61 = vadd.f32 %v840_v57, %v824_v25  ;;  %v849_v14 = vadd.f32 %v838_v0, %v823_v29  ;;  %v4648_v0 = vld [vmem:[#allocation71_spill] sm:$0xff]  ;;  %v3598_v25 = vstv %s2278_s19  ;;  %v4653_v24 = vld [vmem:[#allocation10_spill] sm:$0xff] }
 0x2eb   :  { %1355 = vrot.lane.b32.xlu0 %v1346_v23, %s2537_s10  ;;  %1295 = vrot.lane.b32.xlu1 %v1285_v33, %s2537_s10  ;;  %v1311_v29 = vmul.f32 %v4648_v0, %v2959_v47  ;;  %4649 = vst [vmem:[#allocation65_spill] sm:$0xff] %v3598_v25  ;;  %v1407_v33 = vmul.f32 %v4650_v17, %v3447_v19 }
 0x2ec   :  { %v859_v12 = vadd.f32 %v855_v27, %v849_v14  ;;  %v3590_v63 = vadd.f32 %v856_v3, %v850_v61  ;;  %v1033_v14 = vmul.f32 %v3261_v8, %v2889_v45  ;;  %v3607_v61 = vld [vmem:[%s4465_s4 + $0x30] sm:$0xff]  ;;  %v1034_v27 = vmul.f32 %v3261_v8, %v2891_v42 }
 0x2ed   :  { %v1054_v11 = vpop.permute.xlu0 %1053  ;;  %v874_v5 = vpop.permute.xlu1 %873 }
 0x2ee   :  { %4646 = vst [vmem:[#allocation67_spill] sm:$0xff] %v3590_v63  ;;  %v885_v57 = vadd.f32 %v874_v5, %v859_v12  ;;  %v917_v12 = vmul.f32 %v3598_v25, %v3447_v19  ;;  %v4651_v5 = vld [vmem:[#allocation50_spill] sm:$0xff]  ;;  %v1037_v6 = vadd.f32 %v3607_v61, %v1033_v14  ;;  %v1433_v63 = vmul.f32 %v4653_v24, %v3447_v19  ;;  %v4654_v25 = vld [vmem:[#allocation51_spill] sm:$0xff] }
 0x2ef   :  { %1381 = vrot.lane.b32.xlu0 %v1372_v1, %s2538_s11  ;;  %1321 = vrot.lane.b32.xlu1 %v1311_v29, %s2538_s11  ;;  %v1095_v14 = vmul.f32 %v4655_v13, %v2905_v54 }
 0x2f1   :  { %v1078_v53 = vpop.permute.xlu0 %1077  ;;  %v900_v23 = vpop.permute.xlu1 %899 }
 0x2f2   :  { %v911_v3 = vadd.f32 %v900_v23, %v885_v57  ;;  %v1038_v57 = vadd.f32 %v3327_v20, %v1034_v27  ;;  %v3642_v27 = vstv %s2290_s22 }
 0x2f3   :  { %1561 = vrot.lane.b32.xlu0 %v4651_v5, %s2538_s11  ;;  %1415 = vrot.lane.b32.xlu1 %v1407_v33, %s2537_s10  ;;  %4660 = vst [vmem:[#allocation50_spill] sm:$0xff] %v3642_v27 }
 0x2f4   :  { %v3617_v1 = vadd.f32 %v917_v12, %v911_v3  ;;  %v1064_v5 = vadd.f32 %v1054_v11, %v1038_v57  ;;  %v4658_v11 = vld [vmem:[#allocation53_spill] sm:$0xff] }
 0x2f5   :  { %v1114_v0 = vpop.permute.xlu0 %1113  ;;  %v1052_v29 = vpop.permute.xlu1 %1051 }
 0x2f6   :  { %4652 = vst [vmem:[#allocation69_spill] sm:$0xff] %v3617_v1  ;;  %v1063_v23 = vadd.f32 %v1052_v29, %v1037_v6  ;;  %v4656_v1 = vld [vmem:[#allocation93_spill] sm:$0xff] }
 0x2f7   :  { %1775 = vrot.lane.b32.xlu0 %v4654_v25, %s2537_s10  ;;  %1441 = vrot.lane.b32.xlu1 %v1433_v63, %s2538_s11  ;;  %v1273_v17 = vmul.f32 %v4656_v1, %v2889_v45  ;;  %v1274_v20 = vmul.f32 %v4656_v1, %v2891_v42  ;;  %v1096_v25 = vmul.f32 %v4655_v13, %v2977_v36  ;;  %v4657_v63 = vld [vmem:[#allocation52_spill] sm:$0xff] }
 0x2f8   :  { %v1089_v33 = vadd.f32 %v1078_v53, %v1063_v23  ;;  %v3640_v53 = vld [vmem:[%s4465_s4 + $0x40] sm:$0xff] }
 0x2f9   :  { %v1140_v3 = vpop.permute.xlu0 %1139  ;;  %v1080_v12 = vpop.permute.xlu1 %1079  ;;  %4659 = vst [vmem:[#allocation71_spill] sm:$0xff] %v3640_v53 }
 0x2fa   :  { %v1099_v31 = vadd.f32 %v1095_v14, %v1089_v33  ;;  %v1090_v24 = vadd.f32 %v1080_v12, %v1064_v5  ;;  %v1586_v5 = vmul.f32 %v3135_v34, %v2977_v36  ;;  %v1277_v14 = vadd.f32 %v3640_v53, %v1273_v17 }
 0x2fb   :  { %1801 = vrot.lane.b32.xlu0 %v4657_v63, %s2538_s11  ;;  %1535 = vrot.lane.b32.xlu1 %v4658_v11, %s2537_s10  ;;  %v1278_v12 = vadd.f32 %v3371_v15, %v1274_v20  ;;  %v1157_v63 = vmul.f32 %v3642_v27, %v3447_v19  ;;  %v4662_v11 = vld [vmem:[#allocation54_spill] sm:$0xff]  ;;  %v1335_v15 = vmul.f32 %v3344_v30, %v2905_v54  ;;  %v4664_v20 = vld [vmem:[#allocation55_spill] sm:$0xff] }
 0x2fc   :  { %v1125_v6 = vadd.f32 %v1114_v0, %v1099_v31  ;;  %v3644_v29 = vadd.f32 %v1096_v25, %v1090_v24  ;;  %v1336_v17 = vmul.f32 %v3344_v30, %v2977_v36 }
 0x2fd   :  { %v1292_v57 = vpop.permute.xlu0 %1291  ;;  %v1294_v23 = vpop.permute.xlu1 %1293 }
 0x2fe   :  { %4661 = vst [vmem:[#allocation51_spill] sm:$0xff] %v3644_v29  ;;  %v1151_v33 = vadd.f32 %v1140_v3, %v1125_v6  ;;  %v1303_v31 = vadd.f32 %v1292_v57, %v1277_v14  ;;  %v1304_v24 = vadd.f32 %v1294_v23, %v1278_v12  ;;  %v4667_v12 = vld [vmem:[#allocation13_spill] sm:$0xff] }
 0x2ff   :  { %2015 = vrot.lane.b32.xlu0 %v4662_v11, %s2537_s10  ;;  %1595 = vrot.lane.b32.xlu1 %v1586_v5, %s2537_s10  ;;  %v4665_v5 = vld [vmem:[#allocation56_spill] sm:$0xff]  ;;  %v4668_v11 = vld [vmem:[#allocation58_spill] sm:$0xff] }
 0x300   :  { %v3655_v0 = vadd.f32 %v1157_v63, %v1151_v33  ;;  %v1647_v63 = vmul.f32 %v4667_v12, %v3447_v19 }
 0x301   :  { %v1320_v25 = vpop.permute.xlu0 %1319  ;;  %v1318_v34 = vpop.permute.xlu1 %1317 }
 0x302   :  { %4663 = vst [vmem:[#allocation92_spill] sm:$0xff] %v3655_v0  ;;  %v1330_v3 = vadd.f32 %v1320_v25, %v1304_v24  ;;  %v1329_v6 = vadd.f32 %v1318_v34, %v1303_v31  ;;  %v3672_v31 = vstv %s2302_s25  ;;  %v4670_v25 = vld [vmem:[#allocation100_spill] sm:$0xff]  ;;  %v4674_v0 = vld [vmem:[#allocation59_spill] sm:$0xff] }
 0x303   :  { %2041 = vrot.lane.b32.xlu0 %v4664_v20, %s2538_s11  ;;  %1621 = vrot.lane.b32.xlu1 %v4665_v5, %s2538_s11  ;;  %4669 = vst [vmem:[#allocation52_spill] sm:$0xff] %v3672_v31  ;;  %v1513_v34 = vmul.f32 %v4670_v25, %v2889_v45  ;;  %v1514_v5 = vmul.f32 %v4670_v25, %v2891_v42  ;;  %v4677_v25 = vld [vmem:[#allocation60_spill] sm:$0xff] }
 0x304   :  { %v1339_v57 = vadd.f32 %v1335_v15, %v1329_v6  ;;  %v3665_v23 = vadd.f32 %v1336_v17, %v1330_v3  ;;  %v4671_v3 = vld [vmem:[#allocation14_spill] sm:$0xff] }
 0x305   :  { %v1534_v33 = vpop.permute.xlu0 %1533  ;;  %v1354_v14 = vpop.permute.xlu1 %1353  ;;  %v1673_v15 = vmul.f32 %v4671_v3, %v3447_v19  ;;  %v3681_v17 = vld [vmem:[%s4465_s4 + $0x50] sm:$0xff] }
 0x306   :  { %4666 = vst [vmem:[#allocation93_spill] sm:$0xff] %v3665_v23  ;;  %v1365_v24 = vadd.f32 %v1354_v14, %v1339_v57  ;;  %4672 = vst [vmem:[#allocation53_spill] sm:$0xff] %v3681_v17  ;;  %v1397_v14 = vmul.f32 %v3672_v31, %v3447_v19  ;;  %v3695_v23 = vld [vmem:[%s4465_s4 + $0x60] sm:$0xff]  ;;  %v1517_v27 = vadd.f32 %v3681_v17, %v1513_v34  ;;  %v4676_v3 = vld [vmem:[#allocation15_spill] sm:$0xff] }
 0x307   :  { %1655 = vrot.lane.b32.xlu0 %v1647_v63, %s2537_s10  ;;  %1835 = vrot.lane.b32.xlu1 %v4668_v11, %s2537_s10  ;;  %v4673_v11 = vld [vmem:[#allocation104_spill] sm:$0xff]  ;;  %v1887_v31 = vmul.f32 %v4676_v3, %v3447_v19 }
 0x308   :  { %v1753_v57 = vmul.f32 %v4673_v11, %v2889_v45  ;;  %v4678_v3 = vld [vmem:[#allocation16_spill] sm:$0xff] }
 0x309   :  { %v1558_v20 = vpop.permute.xlu0 %1557  ;;  %v1380_v6 = vpop.permute.xlu1 %1379  ;;  %v1913_v17 = vmul.f32 %v4678_v3, %v3447_v19 }
 0x30a   :  { %v1391_v63 = vadd.f32 %v1380_v6, %v1365_v24  ;;  %v1757_v12 = vadd.f32 %v3695_v23, %v1753_v57 }
 0x30b   :  { %1681 = vrot.lane.b32.xlu0 %v1673_v15, %s2538_s11  ;;  %1861 = vrot.lane.b32.xlu1 %v4674_v0, %s2538_s11  ;;  %v1518_v15 = vadd.f32 %v3384_v58, %v1514_v5  ;;  %v1754_v58 = vmul.f32 %v4673_v11, %v2891_v42 }
 0x30c   :  { %v3698_v24 = vadd.f32 %v1397_v14, %v1391_v63  ;;  %v1575_v63 = vmul.f32 %v3359_v4, %v2905_v54 }
 0x30d   :  { %v1772_v6 = vpop.permute.xlu0 %1771  ;;  %v1532_v29 = vpop.permute.xlu1 %1531  ;;  %v1544_v30 = vadd.f32 %v1534_v33, %v1518_v15  ;;  %v1576_v33 = vmul.f32 %v3359_v4, %v2977_v36 }
 0x30e   :  { %4675 = vst [vmem:[#allocation54_spill] sm:$0xff] %v3698_v24  ;;  %v1543_v0 = vadd.f32 %v1532_v29, %v1517_v27  ;;  %v1783_v53 = vadd.f32 %v1772_v6, %v1757_v12  ;;  %v1815_v27 = vmul.f32 %v3401_v60, %v2905_v54  ;;  %v4679_v12 = vld [vmem:[#allocation61_spill] sm:$0xff] }
 0x30f   :  { %1895 = vrot.lane.b32.xlu0 %v1887_v31, %s2537_s10  ;;  %2075 = vrot.lane.b32.xlu1 %v4677_v25, %s2537_s10 }
 0x310   :  { %v1569_v34 = vadd.f32 %v1558_v20, %v1543_v0  ;;  %v3720_v20 = vstv %s2332_s1  ;;  %v1758_v0 = vadd.f32 %v3389_v50, %v1754_v58  ;;  %v3744_v50 = vld [vmem:[#allocation2 + $0x12] sm:$0xff]  ;;  %s2507_s1 = scalar_lea.vmem %s2237_s29, 32 }
 0x311   :  { %v1798_v14 = vpop.permute.xlu0 %1797  ;;  %v1560_v24 = vpop.permute.xlu1 %1559  ;;  %p2508_p5 = scmp.ne.s32.totalorder %s2237_s29, %s2507_s1  ;;  %p2513_p7 = scmp.lt.s32.totalorder %s2507_s1, %s2507_s1 }
 0x312   :  { %v1809_v29 = vadd.f32 %v1798_v14, %v1783_v53  ;;  %v1570_v31 = vadd.f32 %v1560_v24, %v1544_v30  ;;  %v1579_v25 = vadd.f32 %v1575_v63, %v1569_v34  ;;  %v4681_v30 = vld [vmem:[#allocation17_spill] sm:$0xff]  ;;  %v4682_v24 = vld [vmem:[#allocation66_spill] sm:$0xff] }
 0x313   :  { %1921 = vrot.lane.b32.xlu0 %v1913_v17, %s2538_s11  ;;  %2101 = vrot.lane.b32.xlu1 %v4679_v12, %s2538_s11  ;;  %v2127_v53 = vmul.f32 %v4681_v30, %v3447_v19  ;;  %v373_v15 = vmul.f32 %v2909_v56, %v4682_v24  ;;  %v1993_v17 = vmul.f32 %v3720_v20, %v2889_v45  ;;  %v3736_v34 = vld [vmem:[%s4465_s4 + $0x70] sm:$0xff]  ;;  %p2514_p8 = por %p2513_p7, %p2512_p6 }
 0x314   :  { %v3722_v5 = vadd.f32 %v1815_v27, %v1809_v29  ;;  %v3724_v57 = vadd.f32 %v1576_v33, %v1570_v31  ;;  %v4683_v29 = vld [vmem:[#allocation18_spill] sm:$0xff]  ;;  %v399_v45 = vmul.f32 %v2919_v38, %v4682_v24  ;;  %v1994_v12 = vmul.f32 %v3720_v20, %v2891_v42  ;;  %v4686_v42 = vld [vmem:[#allocation68_spill] sm:$0xff] }
 0x315   :  { %v2012_v6 = vpop.permute.xlu0 %2011  ;;  %v1774_v54 = vpop.permute.xlu1 %1773  ;;  %v2153_v31 = vmul.f32 %v4683_v29, %v3447_v19  ;;  %v1997_v58 = vadd.f32 %v3736_v34, %v1993_v17  ;;  %v2488_v29 = vld [vmem:[#allocation2 + $0x1] sm:$0xff]  ;;  %p2515_p9 = pnand %p2514_p8, %p2508_p5 }
 0x316   :  { %4680 = vst [vmem:[#allocation55_spill] sm:$0xff] %v3724_v57  ;;  %v1784_v63 = vadd.f32 %v1774_v54, %v1758_v0  ;;  %v3756_v54 = vld [vmem:[%s4465_s4 + $0x78] sm:$0x1]  ;;  %v312_v57 = vmul.f32 %v2887_v44, %v4686_v42  ;;  %s2326_s4 = sld [smem:[#allocation3 + $0x36]] }
 0x317   :  { %2135 = vrot.lane.b32.xlu0 %v2127_v53, %s2537_s10  ;;  %383 = vrot.lane.b32.xlu1 %v373_v15, %s2537_s10  ;;  %v1816_v53 = vmul.f32 %v3401_v60, %v2977_v36  ;;  %v3758_v15 = vstv %s2335_s30  ;;  %v2023_v0 = vadd.f32 %v2012_v6, %v1997_v58  ;;  %v3770_v6 = vstv %s2314_s0 }
 0x318   :  { %4684 = vst [vmem:[#allocation56_spill] sm:$0xff] %v3758_v15  ;;  %v2055_v3 = vmul.f32 %v2488_v29, %v3758_v15  ;;  %v301_v29 = vmul.f32 %v3232_v18, %v2959_v47  ;;  %v374_v18 = vmul.f32 %v2909_v56, %v3137_v21  ;;  %v566_v47 = vmul.f32 %v2907_v55, %v4686_v42 }
 0x319   :  { %v1594_v14 = vpop.permute.xlu0 %1593  ;;  %v1800_v27 = vpop.permute.xlu1 %1799  ;;  %v400_v56 = vmul.f32 %v2919_v38, %v3137_v21  ;;  %v592_v55 = vmul.f32 %v2917_v59, %v4686_v42  ;;  %v627_v59 = vmul.f32 %v2927_v48, %v4682_v24 }
 0x31a   :  { %v1810_v33 = vadd.f32 %v1800_v27, %v1784_v63  ;;  %v1605_v58 = vadd.f32 %v1594_v14, %v1579_v25  ;;  %v2056_v25 = vmul.f32 %v3758_v15, %v2977_v36  ;;  %v305_v14 = vadd.f32 %v301_v29, %v3488_v39 }
 0x31b   :  { %2161 = vrot.lane.b32.xlu0 %v2153_v31, %s2538_s11  ;;  %409 = vrot.lane.b32.xlu1 %v399_v45, %s2538_s11  ;;  %v435_v31 = vmul.f32 %v2694_v43, %v3744_v50  ;;  %v1998_v45 = vadd.f32 %v3756_v54, %v1994_v12  ;;  %v338_v43 = vmul.f32 %v2897_v51, %v4686_v42 }
 0x31c   :  { %v3760_v17 = vadd.f32 %v1816_v53, %v1810_v33  ;;  %v461_v12 = vmul.f32 %v2701_v46, %v3744_v50  ;;  %v3795_v36 = vstv %s2326_s4  ;;  %v628_v29 = vmul.f32 %v2927_v48, %v3137_v21 }
 0x31d   :  { %v2038_v63 = vpop.permute.xlu0 %2037  ;;  %v2014_v27 = vpop.permute.xlu1 %2013 }
 0x31e   :  { %4685 = vst [vmem:[#allocation58_spill] sm:$0xff] %v3760_v17  ;;  %v2049_v30 = vadd.f32 %v2038_v63, %v2023_v0  ;;  %v2024_v33 = vadd.f32 %v2014_v27, %v1998_v45  ;;  %v1637_v63 = vmul.f32 %v3770_v6, %v3447_v19 }
 0x31f   :  { %323 = vrot.lane.b32.xlu0 %v312_v57, %s2537_s10  ;;  %445 = vrot.lane.b32.xlu1 %v435_v31, %s2537_s10 }
 0x320   :  { %v2059_v53 = vadd.f32 %v2055_v3, %v2049_v30 }
 0x321   :  { %v1620_v44 = vpop.permute.xlu0 %1619  ;;  %v2040_v17 = vpop.permute.xlu1 %2039 }
 0x322   :  { %v1631_v57 = vadd.f32 %v1620_v44, %v1605_v58  ;;  %v2050_v0 = vadd.f32 %v2040_v17, %v2024_v33  ;;  %v1877_v33 = vmul.f32 %v3795_v36, %v3447_v19  ;;  %v363_v44 = vmul.f32 %v3238_v62, %v4682_v24 }
 0x323   :  { %349 = vrot.lane.b32.xlu0 %v338_v43, %s2538_s11  ;;  %471 = vrot.lane.b32.xlu1 %v461_v12, %s2538_s11  ;;  %v3820_v62 = vstv %s2338_s12 }
 0x324   :  { %v3784_v3 = vadd.f32 %v1637_v63, %v1631_v57  ;;  %v3786_v51 = vadd.f32 %v2056_v25, %v2050_v0  ;;  %4688 = vst [vmem:[#allocation59_spill] sm:$0xff] %v3820_v62  ;;  %v653_v25 = vmul.f32 %v2935_v41, %v4682_v24  ;;  %v2117_v48 = vmul.f32 %v3820_v62, %v3447_v19 }
 0x325   :  { %v1834_v46 = vpop.permute.xlu0 %1833  ;;  %v322_v30 = vpop.permute.xlu1 %321 }
 0x326   :  { %4687 = vst [vmem:[#allocation104_spill] sm:$0xff] %v3786_v51  ;;  %v1845_v17 = vadd.f32 %v1834_v46, %v3722_v5  ;;  %v331_v27 = vadd.f32 %v322_v30, %v305_v14  ;;  %v654_v46 = vmul.f32 %v2935_v41, %v3137_v21  ;;  %v689_v14 = vmul.f32 %v2748_v7, %v3744_v50  ;;  %v3840_v41 = vld [vmem:[#allocation2 + $0x10] sm:$0xff]  ;;  %v4100_v51 = vld [vmem:[#allocation2 + $0xa] sm:$0x1] }
 0x327   :  { %385 = vrot.lane.b32.xlu0 %v374_v18, %s2537_s10  ;;  %577 = vrot.lane.b32.xlu1 %v566_v47, %s2537_s10  ;;  %v555_v19 = vmul.f32 %v3840_v41, %v3235_v28  ;;  %v893_v7 = vmul.f32 %v3071_v22, %v4682_v24 }
 0x329   :  { %v1860_v31 = vpop.permute.xlu0 %1859  ;;  %v348_v45 = vpop.permute.xlu1 %347 }
 0x32a   :  { %v1871_v58 = vadd.f32 %v1860_v31, %v1845_v17  ;;  %v357_v39 = vadd.f32 %v348_v45, %v331_v27  ;;  %v867_v17 = vmul.f32 %v3031_v2, %v4682_v24  ;;  %v715_v45 = vmul.f32 %v2755_v10, %v3744_v50 }
 0x32b   :  { %411 = vrot.lane.b32.xlu0 %v400_v56, %s2538_s11  ;;  %603 = vrot.lane.b32.xlu1 %v592_v55, %s2538_s11  ;;  %v559_v56 = vadd.f32 %v3527_v26, %v555_v19  ;;  %v617_v26 = vmul.f32 %v3241_v16, %v4682_v24 }
 0x32c   :  { %v3808_v5 = vadd.f32 %v1877_v33, %v1871_v58  ;;  %v3810_v43 = vadd.f32 %v363_v44, %v357_v39  ;;  %v806_v39 = vmul.f32 %v2949_v40, %v4686_v42  ;;  %v929_v33 = vmul.f32 %v2709_v49, %v3744_v50 }
 0x32d   :  { %v2074_v38 = vpop.permute.xlu0 %2073  ;;  %v3812_v12 = vpop.permute.xlu1 %441  ;;  %v795_v44 = vmul.f32 %v3840_v41, %v3258_v35  ;;  %v832_v40 = vmul.f32 %v2979_v37, %v4686_v42  ;;  %v955_v49 = vmul.f32 %v2717_v52, %v3744_v50  ;;  %v857_v52 = vmul.f32 %v3264_v32, %v4682_v24 }
 0x32e   :  { %v2085_v57 = vadd.f32 %v2074_v38, %v2059_v53  ;;  %v1035_v32 = vmul.f32 %v3840_v41, %v3261_v8 }
 0x32f   :  { %637 = vrot.lane.b32.xlu0 %v627_v59, %s2537_s10  ;;  %639 = vrot.lane.b32.xlu1 %v628_v29, %s2537_s10  ;;  %v799_v35 = vadd.f32 %v3562_v9, %v795_v44 }
 0x331   :  { %v2100_v0 = vpop.permute.xlu0 %2099  ;;  %v3822_v63 = vpop.permute.xlu1 %467 }
 0x332   :  { %v2111_v30 = vadd.f32 %v2100_v0, %v2085_v57 }
 0x333   :  { %663 = vrot.lane.b32.xlu0 %v653_v25, %s2538_s11  ;;  %665 = vrot.lane.b32.xlu1 %v654_v46, %s2538_s11  ;;  %v868_v25 = vmul.f32 %v3031_v2, %v3137_v21  ;;  %v4690_v46 = vld [vmem:[#allocation57_spill] sm:$0xff]  ;;  %v894_v2 = vmul.f32 %v3071_v22, %v3137_v21 }
 0x334   :  { %v3832_v18 = vadd.f32 %v2117_v48, %v2111_v30  ;;  %v1046_v30 = vmul.f32 %v4690_v46, %v4686_v42  ;;  %v1275_v46 = vmul.f32 %v3840_v41, %v4656_v1 }
 0x335   :  { %v3834_v53 = vpop.permute.xlu0 %381  ;;  %v576_v47 = vpop.permute.xlu1 %575 }
 0x336   :  { %4689 = vst [vmem:[#allocation60_spill] sm:$0xff] %v3832_v18  ;;  %v585_v28 = vadd.f32 %v576_v47, %v559_v56 }
 0x337   :  { %699 = vrot.lane.b32.xlu0 %v689_v14, %s2537_s10  ;;  %877 = vrot.lane.b32.xlu1 %v867_v17, %s2537_s10  ;;  %v4691_v14 = vld [vmem:[#allocation62_spill] sm:$0xff] }
 0x338   :  { %v1072_v17 = vmul.f32 %v4691_v14, %v4686_v42  ;;  %v1039_v42 = vadd.f32 %v3607_v61, %v1035_v32 }
 0x339   :  { %v3846_v27 = vpop.permute.xlu0 %407  ;;  %v3848_v31 = vpop.permute.xlu1 %635 }
 0x33b   :  { %725 = vrot.lane.b32.xlu0 %v715_v45, %s2538_s11  ;;  %903 = vrot.lane.b32.xlu1 %v893_v7, %s2538_s11  ;;  %v3908_v45 = vld [vmem:[#allocation2 + $0x11] sm:$0xff] }
 0x33c   :  { %v4692_v7 = vld [vmem:[#allocation63_spill] sm:$0xff] }
 0x33d   :  { %v602_v55 = vpop.permute.xlu0 %601  ;;  %v3857_v58 = vpop.permute.xlu1 %661  ;;  %v1107_v56 = vmul.f32 %v3908_v45, %v4692_v7  ;;  %v1108_v22 = vmul.f32 %v4692_v7, %v3137_v21  ;;  %v4700_v7 = vld [vmem:[#allocation73_spill] sm:$0xff] }
 0x33e   :  { %v611_v10 = vadd.f32 %v602_v55, %v585_v28  ;;  %v4693_v55 = vld [vmem:[#allocation64_spill] sm:$0xff] }
 0x33f   :  { %817 = vrot.lane.b32.xlu0 %v806_v39, %s2537_s10  ;;  %939 = vrot.lane.b32.xlu1 %v929_v33, %s2537_s10  ;;  %v1133_v39 = vmul.f32 %v3908_v45, %v4693_v55  ;;  %v1134_v33 = vmul.f32 %v4693_v55, %v3137_v21  ;;  %v4695_v21 = vld [vmem:[#allocation70_spill] sm:$0xff]  ;;  %v4702_v55 = vld [vmem:[#allocation103_spill] sm:$0xff] }
 0x340   :  { %v3869_v38 = vadd.f32 %v617_v26, %v611_v10  ;;  %v1097_v26 = vmul.f32 %v3908_v45, %v4655_v13  ;;  %v4696_v13 = vld [vmem:[#allocation12_spill] sm:$0xff] }
 0x341   :  { %v3871_v59 = vpop.permute.xlu0 %695  ;;  %v816_v29 = vpop.permute.xlu1 %815 }
 0x342   :  { %v825_v16 = vadd.f32 %v816_v29, %v799_v35 }
 0x343   :  { %843 = vrot.lane.b32.xlu0 %v832_v40, %s2538_s11  ;;  %965 = vrot.lane.b32.xlu1 %v955_v49, %s2538_s11  ;;  %v4694_v40 = vld [vmem:[#allocation11_spill] sm:$0xff] }
 0x344   :  { %v1169_v49 = vmul.f32 %v4694_v40, %v3744_v50  ;;  %v1755_v40 = vmul.f32 %v3840_v41, %v4673_v11 }
 0x345   :  { %v3880_v57 = vpop.permute.xlu0 %721  ;;  %v842_v0 = vpop.permute.xlu1 %841 }
 0x346   :  { %v851_v37 = vadd.f32 %v842_v0, %v825_v16 }
 0x347   :  { %879 = vrot.lane.b32.xlu0 %v868_v25, %s2537_s10  ;;  %1057 = vrot.lane.b32.xlu1 %v1046_v30, %s2537_s10  ;;  %v1195_v25 = vmul.f32 %v4696_v13, %v3744_v50  ;;  %v4697_v30 = vld [vmem:[#allocation72_spill] sm:$0xff] }
 0x348   :  { %v3890_v9 = vadd.f32 %v857_v52, %v851_v37  ;;  %v4706_v13 = vld [vmem:[#allocation100_spill] sm:$0xff] }
 0x349   :  { %v3892_v48 = vpop.permute.xlu0 %875  ;;  %v3894_v47 = vpop.permute.xlu1 %935 }
 0x34b   :  { %905 = vrot.lane.b32.xlu0 %v894_v2, %s2538_s11  ;;  %1083 = vrot.lane.b32.xlu1 %v1072_v17, %s2538_s11  ;;  %v4698_v2 = vld [vmem:[#allocation9_spill] sm:$0xff]  ;;  %v4699_v17 = vld [vmem:[#allocation71_spill] sm:$0xff] }
 0x34c   :  { %v1409_v14 = vmul.f32 %v4698_v2, %v3744_v50  ;;  %v1279_v32 = vadd.f32 %v4699_v17, %v1275_v46  ;;  %v4707_v2 = vld [vmem:[#allocation80_spill] sm:$0xff]  ;;  %v4709_v17 = vld [vmem:[#allocation53_spill] sm:$0xff] }
 0x34d   :  { %v3904_v24 = vpop.permute.xlu0 %901  ;;  %v3906_v19 = vpop.permute.xlu1 %961 }
 0x34f   :  { %1117 = vrot.lane.b32.xlu0 %v1107_v56, %s2537_s10  ;;  %1119 = vrot.lane.b32.xlu1 %v1108_v22, %s2537_s10 }
 0x351   :  { %v1082_v28 = vpop.permute.xlu0 %1081  ;;  %v1056_v8 = vpop.permute.xlu1 %1055 }
 0x352   :  { %v1065_v10 = vadd.f32 %v1056_v8, %v1039_v42  ;;  %v4701_v42 = vld [vmem:[#allocation10_spill] sm:$0xff] }
 0x353   :  { %1143 = vrot.lane.b32.xlu0 %v1133_v39, %s2538_s11  ;;  %1145 = vrot.lane.b32.xlu1 %v1134_v33, %s2538_s11  ;;  %v1337_v39 = vmul.f32 %v3908_v45, %v4702_v55  ;;  %v4703_v33 = vld [vmem:[#allocation74_spill] sm:$0xff] }
 0x354   :  { %v1091_v44 = vadd.f32 %v1082_v28, %v1065_v10  ;;  %v1435_v28 = vmul.f32 %v4701_v42, %v3744_v50  ;;  %v4711_v55 = vld [vmem:[#allocation82_spill] sm:$0xff] }
 0x355   :  { %v3925_v29 = vpop.permute.xlu0 %1175  ;;  %v3927_v61 = vpop.permute.xlu1 %1115 }
 0x356   :  { %v3931_v35 = vadd.f32 %v1097_v26, %v1091_v44 }
 0x357   :  { %1179 = vrot.lane.b32.xlu0 %v1169_v49, %s2537_s10  ;;  %1357 = vrot.lane.b32.xlu1 %v4695_v21, %s2537_s10  ;;  %v4704_v49 = vld [vmem:[#allocation78_spill] sm:$0xff]  ;;  %v4705_v21 = vld [vmem:[#allocation79_spill] sm:$0xff] }
 0x359   :  { %v3936_v16 = vpop.permute.xlu0 %1201  ;;  %v3938_v0 = vpop.permute.xlu1 %1141 }
 0x35b   :  { %1205 = vrot.lane.b32.xlu0 %v1195_v25, %s2538_s11  ;;  %1383 = vrot.lane.b32.xlu1 %v4697_v30, %s2538_s11  ;;  %v1515_v25 = vmul.f32 %v3840_v41, %v4706_v13 }
 0x35d   :  { %v3947_v37 = vpop.permute.xlu0 %1355  ;;  %v1296_v52 = vpop.permute.xlu1 %1295 }
 0x35e   :  { %v1305_v56 = vadd.f32 %v1296_v52, %v1279_v32  ;;  %v1759_v52 = vadd.f32 %v3695_v23, %v1755_v40  ;;  %v1519_v32 = vadd.f32 %v4709_v17, %v1515_v25  ;;  %v4710_v23 = vld [vmem:[#allocation75_spill] sm:$0xff] }
 0x35f   :  { %1297 = vrot.lane.b32.xlu0 %v4700_v7, %s2537_s10  ;;  %1419 = vrot.lane.b32.xlu1 %v1409_v14, %s2537_s10  ;;  %v4708_v14 = vld [vmem:[#allocation81_spill] sm:$0xff]  ;;  %v4713_v25 = vld [vmem:[#allocation83_spill] sm:$0xff] }
 0x361   :  { %v3955_v1 = vpop.permute.xlu0 %1381  ;;  %v1322_v22 = vpop.permute.xlu1 %1321 }
 0x362   :  { %v1331_v8 = vadd.f32 %v1322_v22, %v1305_v56 }
 0x363   :  { %1323 = vrot.lane.b32.xlu0 %v4703_v33, %s2538_s11  ;;  %1445 = vrot.lane.b32.xlu1 %v1435_v28, %s2538_s11  ;;  %v1995_v28 = vmul.f32 %v3840_v41, %v3720_v20  ;;  %v1577_v33 = vmul.f32 %v3908_v45, %v3359_v4 }
 0x364   :  { %v3964_v10 = vadd.f32 %v1337_v39, %v1331_v8  ;;  %v1817_v8 = vmul.f32 %v3908_v45, %v3401_v60  ;;  %v4712_v60 = vld [vmem:[#allocation76_spill] sm:$0xff] }
 0x365   :  { %v1562_v44 = vpop.permute.xlu0 %1561  ;;  %v3966_v26 = vpop.permute.xlu1 %1415  ;;  %v1999_v41 = vadd.f32 %v3736_v34, %v1995_v28  ;;  %v4715_v34 = vld [vmem:[#allocation84_spill] sm:$0xff] }
 0x366   :  { %v4720_v28 = vld [vmem:[#allocation88_spill] sm:$0xff] }
 0x367   :  { %1359 = vrot.lane.b32.xlu0 %v4704_v49, %s2537_s10  ;;  %1537 = vrot.lane.b32.xlu1 %v4705_v21, %s2537_s10 }
 0x369   :  { %v1776_v46 = vpop.permute.xlu0 %1775  ;;  %v3976_v30 = vpop.permute.xlu1 %1441 }
 0x36a   :  { %v1785_v11 = vadd.f32 %v1776_v46, %v1759_v52 }
 0x36b   :  { %1385 = vrot.lane.b32.xlu0 %v4707_v2, %s2538_s11  ;;  %1563 = vrot.lane.b32.xlu1 %v4708_v14, %s2538_s11  ;;  %v2057_v2 = vmul.f32 %v3908_v45, %v3758_v15  ;;  %v4714_v14 = vld [vmem:[#allocation77_spill] sm:$0xff]  ;;  %v4762_v15 = vld [vmem:[#allocation52_spill] sm:$0xff] }
 0x36d   :  { %v1802_v7 = vpop.permute.xlu0 %1801  ;;  %v1536_v56 = vpop.permute.xlu1 %1535 }
 0x36e   :  { %v1811_v22 = vadd.f32 %v1802_v7, %v1785_v11  ;;  %v1545_v42 = vadd.f32 %v1536_v56, %v1519_v32  ;;  %v4717_v7 = vld [vmem:[#allocation85_spill] sm:$0xff]  ;;  %v4718_v56 = vld [vmem:[#allocation86_spill] sm:$0xff] }
 0x36f   :  { %1597 = vrot.lane.b32.xlu0 %v4710_v23, %s2537_s10  ;;  %1777 = vrot.lane.b32.xlu1 %v4711_v55, %s2537_s10  ;;  %v4722_v55 = vld [vmem:[#allocation13_spill] sm:$0xff] }
 0x370   :  { %v1571_v39 = vadd.f32 %v1562_v44, %v1545_v42  ;;  %v3994_v40 = vadd.f32 %v1817_v8, %v1811_v22  ;;  %v4719_v42 = vld [vmem:[#allocation87_spill] sm:$0xff] }
 0x371   :  { %v2016_v49 = vpop.permute.xlu0 %2015  ;;  %v3996_v21 = vpop.permute.xlu1 %1595 }
 0x372   :  { %v3999_v13 = vadd.f32 %v1577_v33, %v1571_v39  ;;  %v2025_v46 = vadd.f32 %v2016_v49, %v1999_v41  ;;  %v1649_v39 = vmul.f32 %v4722_v55, %v3744_v50  ;;  %v4723_v33 = vld [vmem:[#allocation90_spill] sm:$0xff] }
 0x373   :  { %1623 = vrot.lane.b32.xlu0 %v4712_v60, %s2538_s11  ;;  %1803 = vrot.lane.b32.xlu1 %v4713_v25, %s2538_s11  ;;  %v4725_v60 = vld [vmem:[#allocation89_spill] sm:$0xff]  ;;  %v4726_v25 = vld [vmem:[#allocation91_spill] sm:$0xff] }
 0x375   :  { %v2042_v44 = vpop.permute.xlu0 %2041  ;;  %v4005_v52 = vpop.permute.xlu1 %1621 }
 0x376   :  { %v2051_v4 = vadd.f32 %v2042_v44, %v2025_v46 }
 0x377   :  { %1837 = vrot.lane.b32.xlu0 %v4714_v14, %s2537_s10  ;;  %2017 = vrot.lane.b32.xlu1 %v4715_v34, %s2537_s10  ;;  %v4729_v14 = vld [vmem:[#allocation94_spill] sm:$0xff] }
 0x378   :  { %v4013_v11 = vadd.f32 %v2057_v2, %v2051_v4  ;;  %v4728_v4 = vld [vmem:[#allocation14_spill] sm:$0xff] }
 0x379   :  { %v4015_v17 = vpop.permute.xlu0 %1655  ;;  %v4017_v32 = vpop.permute.xlu1 %1835  ;;  %v1675_v2 = vmul.f32 %v4728_v4, %v3744_v50 }
 0x37a   :  { %4716 = vst [vmem:[#allocation61_spill] sm:$0xff] %v4013_v11 }
 0x37b   :  { %1863 = vrot.lane.b32.xlu0 %v4717_v7, %s2538_s11  ;;  %1599 = vrot.lane.b32.xlu1 %v4718_v56, %s2537_s10 }
 0x37d   :  { %v4023_v22 = vpop.permute.xlu0 %1681  ;;  %v4025_v45 = vpop.permute.xlu1 %1861 }
 0x37f   :  { %2077 = vrot.lane.b32.xlu0 %v4719_v42, %s2537_s10  ;;  %2043 = vrot.lane.b32.xlu1 %v4720_v28, %s2538_s11  ;;  %v4731_v42 = vld [vmem:[#allocation15_spill] sm:$0xff] }
 0x380   :  { %v1889_v28 = vmul.f32 %v4731_v42, %v3744_v50 }
 0x381   :  { %v4031_v8 = vpop.permute.xlu0 %1895  ;;  %v4033_v23 = vpop.permute.xlu1 %2075 }
 0x382   :  { %4721 = vst [vmem:[#allocation66_spill] sm:$0xff] %v4033_v23 }
 0x383   :  { %1659 = vrot.lane.b32.xlu0 %v1649_v39, %s2537_s10  ;;  %1625 = vrot.lane.b32.xlu1 %v4723_v33, %s2538_s11  ;;  %v4732_v39 = vld [vmem:[#allocation115_spill] sm:$0xff] }
 0x384   :  { %v425_v33 = vmul.f32 %v4732_v39, %v3744_v50 }
 0x385   :  { %v4040_v49 = vpop.permute.xlu0 %1921  ;;  %v4042_v41 = vpop.permute.xlu1 %2101 }
 0x386   :  { %4724 = vst [vmem:[#allocation68_spill] sm:$0xff] %v4042_v41 }
 0x387   :  { %2103 = vrot.lane.b32.xlu0 %v4725_v60, %s2538_s11  ;;  %1839 = vrot.lane.b32.xlu1 %v4726_v25, %s2537_s10  ;;  %v4733_v60 = vld [vmem:[#allocation95_spill] sm:$0xff] }
 0x389   :  { %v4048_v46 = vpop.permute.xlu0 %2135  ;;  %v384_v44 = vpop.permute.xlu1 %383 }
 0x38a   :  { %4727 = vst [vmem:[#allocation57_spill] sm:$0xff] %v4048_v46  ;;  %v393_v34 = vadd.f32 %v384_v44, %v3810_v43  ;;  %v4734_v43 = vld [vmem:[#allocation16_spill] sm:$0xff] }
 0x38b   :  { %1685 = vrot.lane.b32.xlu0 %v1675_v2, %s2538_s11  ;;  %1865 = vrot.lane.b32.xlu1 %v4729_v14, %s2538_s11  ;;  %v1915_v44 = vmul.f32 %v4734_v43, %v3744_v50  ;;  %v4735_v14 = vld [vmem:[#allocation96_spill] sm:$0xff]  ;;  %v4740_v43 = vld [vmem:[#allocation97_spill] sm:$0xff] }
 0x38d   :  { %v4056_v7 = vpop.permute.xlu0 %2161  ;;  %v410_v56 = vpop.permute.xlu1 %409 }
 0x38e   :  { %4730 = vst [vmem:[#allocation62_spill] sm:$0xff] %v4056_v7  ;;  %v419_v55 = vadd.f32 %v410_v56, %v393_v34  ;;  %v4074_v34 = vld [vmem:[#allocation2 + $0x1a] sm:$0x1]  ;;  %v4737_v56 = vld [vmem:[#allocation18_spill] sm:$0xff]  ;;  %v4739_v7 = vld [vmem:[#allocation17_spill] sm:$0xff] }
 0x38f   :  { %1899 = vrot.lane.b32.xlu0 %v1889_v28, %s2537_s10  ;;  %2079 = vrot.lane.b32.xlu1 %v4733_v60, %s2537_s10  ;;  %4736 = vst [vmem:[#allocation63_spill] sm:$0xff] %v4074_v34  ;;  %v2156_v42 = vmul.f32 %v4074_v34, %v4737_v56  ;;  %v4738_v28 = vld [vmem:[#allocation99_spill] sm:$0xff]  ;;  %v2129_v46 = vmul.f32 %v4739_v7, %v3744_v50 }
 0x390   :  { %v4065_v25 = vadd.f32 %v425_v33, %v419_v55  ;;  %v1398_v34 = vmul.f32 %v4100_v51, %v4762_v15 }
 0x391   :  { %v324_v4 = vpop.permute.xlu0 %323  ;;  %v4067_v2 = vpop.permute.xlu1 %445 }
 0x392   :  { %v332_v60 = vadd.f32 %v324_v4, %v4738_v28  ;;  %v2155_v4 = vmul.f32 %v4737_v56, %v3744_v50  ;;  %v4743_v28 = vld [vmem:[#allocation101_spill] sm:$0xff] }
 0x393   :  { %1925 = vrot.lane.b32.xlu0 %v1915_v44, %s2538_s11  ;;  %2105 = vrot.lane.b32.xlu1 %v4735_v14, %s2538_s11 }
 0x395   :  { %v350_v55 = vpop.permute.xlu0 %349  ;;  %v4079_v33 = vpop.permute.xlu1 %471 }
 0x396   :  { %v358_v18 = vadd.f32 %v350_v55, %v332_v60 }
 0x397   :  { %2139 = vrot.lane.b32.xlu0 %v2129_v46, %s2537_s10  ;;  %2167 = vrot.lane.b32.xlu1 %v2156_v42, %s2538_s11  ;;  %v4745_v46 = vld [vmem:[#allocation98_spill] sm:$0xff] }
 0x398   :  { %v4086_v44 = vadd.f32 %v4740_v43, %v358_v18  ;;  %v4746_v43 = vld [vmem:[#allocation114_spill] sm:$0xff] }
 0x399   :  { %v4088_v14 = vpop.permute.xlu0 %385  ;;  %v578_v11 = vpop.permute.xlu1 %577 }
 0x39a   :  { %4741 = vst [vmem:[#allocation64_spill] sm:$0xff] %v4086_v44  ;;  %4742 = vst [vmem:[#allocation11_spill] sm:$0xff] %v4088_v14  ;;  %v586_v41 = vadd.f32 %v578_v11, %v4743_v28  ;;  %v392_v14 = vadd.f32 %v3834_v53, %v4746_v43  ;;  %v424_v11 = vmul.f32 %v4100_v51, %v4732_v39 }
 0x39b   :  { %2165 = vrot.lane.b32.xlu0 %v2155_v4, %s2538_s11  ;;  %v4747_v4 = vld [vmem:[#allocation118_spill] sm:$0xff] }
 0x39c   :  { %v418_v56 = vadd.f32 %v3846_v27, %v392_v14 }
 0x39d   :  { %v4094_v62 = vpop.permute.xlu0 %411  ;;  %v604_v7 = vpop.permute.xlu1 %603 }
 0x39e   :  { %4744 = vst [vmem:[#allocation70_spill] sm:$0xff] %v4094_v62  ;;  %v612_v60 = vadd.f32 %v604_v7, %v586_v41  ;;  %v646_v41 = vadd.f32 %v3848_v31, %v4747_v4  ;;  %v428_v43 = vadd.f32 %v424_v11, %v418_v56  ;;  %v4750_v4 = vld [vmem:[#allocation67_spill] sm:$0xff]  ;;  %v4752_v62 = vld [vmem:[#allocation65_spill] sm:$0xff] }
 0x39f   :  { %v918_v39 = vmul.f32 %v4100_v51, %v4752_v62  ;;  %v919_v56 = vmul.f32 %v4752_v62, %v3744_v50 }
 0x3a0   :  { %v622_v55 = vadd.f32 %v4745_v46, %v612_v60 }
 0x3a1   :  { %v638_v42 = vpop.permute.xlu0 %637  ;;  %v640_v23 = vpop.permute.xlu1 %639 }
 0x3a2   :  { %v648_v18 = vadd.f32 %v640_v23, %v622_v55  ;;  %v647_v44 = vadd.f32 %v638_v42, %v3869_v38  ;;  %v4749_v23 = vld [vmem:[#allocation117_spill] sm:$0xff]  ;;  %v672_v55 = vadd.f32 %v3857_v58, %v646_v41 }
 0x3a3   :  { %v679_v53 = vmul.f32 %v4749_v23, %v3744_v50  ;;  %v678_v38 = vmul.f32 %v4100_v51, %v4749_v23 }
 0x3a5   :  { %v664_v28 = vpop.permute.xlu0 %663  ;;  %v666_v7 = vpop.permute.xlu1 %665  ;;  %v682_v31 = vadd.f32 %v678_v38, %v672_v55  ;;  %v4754_v38 = vld [vmem:[#allocation116_spill] sm:$0xff] }
 0x3a6   :  { %v673_v60 = vadd.f32 %v664_v28, %v647_v44  ;;  %v4107_v46 = vadd.f32 %v666_v7, %v648_v18  ;;  %v886_v44 = vadd.f32 %v3892_v48, %v4750_v4  ;;  %v4751_v28 = vld [vmem:[#allocation25_spill] sm:$0xff]  ;;  %v453_v48 = vadd.f32 %v3812_v12, %v4754_v38  ;;  %v4756_v4 = vld [vmem:[#allocation50_spill] sm:$0xff] }
 0x3a7   :  { %v454_v7 = vadd.f32 %v4751_v28, %v428_v43  ;;  %v4759_v38 = vld [vmem:[#allocation105_spill] sm:$0xff] }
 0x3a8   :  { %4748 = vst [vmem:[#allocation12_spill] sm:$0xff] %v4107_v46  ;;  %v4114_v42 = vadd.f32 %v679_v53, %v673_v60  ;;  %v912_v46 = vadd.f32 %v3904_v24, %v886_v44  ;;  %v4753_v60 = vld [vmem:[#allocation19_spill] sm:$0xff]  ;;  %v1158_v24 = vmul.f32 %v4100_v51, %v4756_v4  ;;  %v479_v62 = vadd.f32 %v3822_v63, %v453_v48 }
 0x3a9   :  { %v4116_v27 = vpop.permute.xlu0 %699  ;;  %v878_v14 = vpop.permute.xlu1 %877  ;;  %v708_v53 = vadd.f32 %v4753_v60, %v682_v31  ;;  %v4758_v31 = vld [vmem:[#allocation119_spill] sm:$0xff] }
 0x3aa   :  { %v887_v18 = vadd.f32 %v878_v14, %v3890_v9  ;;  %v4755_v9 = vld [vmem:[#allocation51_spill] sm:$0xff]  ;;  %v922_v14 = vadd.f32 %v918_v39, %v912_v46  ;;  %v707_v60 = vadd.f32 %v3871_v59, %v4758_v31  ;;  %v4761_v46 = vld [vmem:[#allocation21_spill] sm:$0xff] }
 0x3ab   :  { %v1126_v55 = vadd.f32 %v3927_v61, %v4755_v9 }
 0x3ac   :  { %v733_v9 = vadd.f32 %v3880_v57, %v707_v60 }
 0x3ad   :  { %v4125_v58 = vpop.permute.xlu0 %725  ;;  %v904_v41 = vpop.permute.xlu1 %903  ;;  %v1152_v12 = vadd.f32 %v3938_v0, %v1126_v55  ;;  %v483_v55 = vmax.f32 %v479_v62, 0.0 }
 0x3ae   :  { %v913_v11 = vadd.f32 %v904_v41, %v887_v18  ;;  %v4757_v18 = vld [vmem:[#allocation29_spill] sm:$0xff]  ;;  %v737_v60 = vmax.f32 %v733_v9, 0.0 }
 0x3af   :  { %v480_v41 = vadd.f32 %v4757_v18, %v454_v7  ;;  %v4763_v7 = vld [vmem:[#allocation33_spill] sm:$0xff]  ;;  %v1162_v31 = vadd.f32 %v1158_v24, %v1152_v12 }
 0x3b0   :  { %v4134_v43 = vadd.f32 %v919_v56, %v913_v11  ;;  %v4760_v11 = vld [vmem:[#allocation93_spill] sm:$0xff]  ;;  %v734_v56 = vadd.f32 %v4761_v46, %v708_v53  ;;  %v948_v18 = vadd.f32 %v4763_v7, %v922_v14 }
 0x3b1   :  { %v818_v44 = vpop.permute.xlu0 %817  ;;  %v4138_v28 = vpop.permute.xlu1 %939  ;;  %v1366_v39 = vadd.f32 %v3947_v37, %v4760_v11  ;;  %v484_v0 = vmax.f32 %v480_v41, 0.0  ;;  %v4765_v11 = vld [vmem:[#allocation55_spill] sm:$0xff]  ;;  %v1638_v41 = vmul.f32 %v4100_v51, %v3770_v6  ;;  %v4767_v24 = vld [vmem:[#allocation37_spill] sm:$0xff] }
 0x3b2   :  { %v826_v61 = vadd.f32 %v818_v44, %v4759_v38  ;;  %v4764_v44 = vld [vmem:[#allocation69_spill] sm:$0xff]  ;;  %v738_v57 = vmax.f32 %v734_v56, 0.0  ;;  %v1606_v14 = vadd.f32 %v3996_v21, %v4765_v11  ;;  %v974_v12 = vadd.f32 %v4767_v24, %v948_v18  ;;  %v4771_v18 = vld [vmem:[#allocation107_spill] sm:$0xff] }
 0x3b3   :  { %v1392_v63 = vadd.f32 %v3955_v1, %v1366_v39  ;;  %v947_v37 = vadd.f32 %v3894_v47, %v4764_v44  ;;  %v4766_v1 = vld [vmem:[#allocation102_spill] sm:$0xff]  ;;  %v492_v47 = vsel %vm491_vm8, %v484_v0, 0.0  ;;  %v488_v21 = vsel %vm487_vm9, %v483_v55, 0.0  ;;  %v4772_v55 = vld [vmem:[#allocation41_spill] sm:$0xff] }
 0x3b4   :  { %v1632_v9 = vadd.f32 %v4005_v52, %v1606_v14  ;;  %v744_v52 = vsel %vm491_vm8, %v738_v57, 0.0 }
 0x3b5   :  { %v844_v48 = vpop.permute.xlu0 %843  ;;  %v4154_v59 = vpop.permute.xlu1 %965  ;;  %v973_v38 = vadd.f32 %v3906_v19, %v947_v37  ;;  %v1402_v46 = vadd.f32 %v1398_v34, %v1392_v63  ;;  %v4770_v63 = vld [vmem:[#allocation58_spill] sm:$0xff]  ;;  %v1878_v37 = vmul.f32 %v4100_v51, %v3795_v36 }
 0x3b6   :  { %v852_v53 = vadd.f32 %v844_v48, %v826_v61  ;;  %v4768_v61 = vld [vmem:[#allocation23_spill] sm:$0xff]  ;;  %v4769_v48 = vld [vmem:[#allocation92_spill] sm:$0xff]  ;;  %v1846_v44 = vadd.f32 %v4017_v32, %v4770_v63  ;;  %v978_v32 = vmax.f32 %v974_v12, 0.0  ;;  %v4776_v12 = vld [vmem:[#allocation45_spill] sm:$0xff] }
 0x3b7   :  { %v1188_v56 = vadd.f32 %v4768_v61, %v1162_v31  ;;  %v1187_v34 = vadd.f32 %v3925_v29, %v4769_v48  ;;  %v977_v0 = vmax.f32 %v973_v38, 0.0  ;;  %v741_v31 = vsel %vm487_vm9, %v737_v60, 0.0  ;;  %v4773_v38 = vld [vmem:[#allocation26_spill] sm:$0xff] }
 0x3b8   :  { %v862_v39 = vadd.f32 %v4766_v1, %v852_v53  ;;  %v1428_v14 = vadd.f32 %v4772_v55, %v1402_v46  ;;  %v1872_v29 = vadd.f32 %v4025_v45, %v1846_v44  ;;  %v4774_v60 = vld [vmem:[#allocation54_spill] sm:$0xff]  ;;  %v1667_v44 = vadd.f32 %v4015_v17, %v3784_v3 }
 0x3b9   :  { %v880_v62 = vpop.permute.xlu0 %879  ;;  %v1058_v7 = vpop.permute.xlu1 %1057  ;;  %v1213_v11 = vadd.f32 %v3936_v16, %v1187_v34  ;;  %v1427_v57 = vadd.f32 %v3966_v26, %v4774_v60  ;;  %v4775_v61 = vld [vmem:[#allocation106_spill] sm:$0xff]  ;;  %v981_v63 = vsel %vm487_vm9, %v977_v0, 0.0 }
 0x3ba   :  { %v888_v19 = vadd.f32 %v880_v62, %v862_v39  ;;  %493 = vadd.xlane.f32.xlu0 %v492_v47  ;;  %v1066_v53 = vadd.f32 %v1058_v7, %v4771_v18  ;;  %v1642_v62 = vadd.f32 %v1638_v41, %v1632_v9  ;;  %v1214_v7 = vadd.f32 %v4773_v38, %v1188_v56  ;;  %v4777_v34 = vld [vmem:[#allocation30_spill] sm:$0xff] }
 0x3bb   :  { %489 = vadd.xlane.f32.xlu1 %v488_v21  ;;  %v1217_v46 = vmax.f32 %v1213_v11, 0.0  ;;  %v1882_v21 = vadd.f32 %v1878_v37, %v1872_v29  ;;  %v984_v41 = vsel %vm491_vm8, %v978_v32, 0.0  ;;  %v1454_v9 = vadd.f32 %v4776_v12, %v1428_v14  ;;  %v4779_v17 = vld [vmem:[#allocation34_spill] sm:$0xff] }
 0x3bc   :  { %v1668_v56 = vadd.f32 %v4777_v34, %v1642_v62  ;;  %v1218_v26 = vmax.f32 %v1214_v7, 0.0  ;;  %v1159_v18 = vmul.f32 %v4756_v4, %v3744_v50  ;;  %v4780_v38 = vld [vmem:[#allocation42_spill] sm:$0xff]  ;;  %v1399_v34 = vmul.f32 %v4762_v15, %v3744_v50 }
 0x3bd   :  { %v906_v1 = vpop.permute.xlu0 %905  ;;  %v1084_v39 = vpop.permute.xlu1 %1083  ;;  %v1221_v55 = vsel %vm487_vm9, %v1217_v46, 0.0  ;;  %v1458_v0 = vmax.f32 %v1454_v9, 0.0  ;;  %v455_v46 = vadd.f32 %v4067_v2, %v4065_v25  ;;  %v709_v25 = vadd.f32 %v4116_v27, %v4114_v42 }
 0x3be   :  { %v4181_v47 = vadd.f32 %v906_v1, %v888_v19  ;;  %v1092_v24 = vadd.f32 %v1084_v39, %v1066_v53  ;;  %742 = vadd.xlane.f32.xlu0 %v741_v31  ;;  %v1453_v19 = vadd.f32 %v3976_v30, %v1427_v57  ;;  %v1693_v53 = vadd.f32 %v4023_v22, %v1667_v44  ;;  %v4778_v31 = vld [vmem:[#allocation38_spill] sm:$0xff] }
 0x3bf   :  { %745 = vadd.xlane.f32.xlu1 %v744_v52  ;;  %v1908_v52 = vadd.f32 %v4778_v31, %v1882_v21  ;;  %v1224_v3 = vsel %vm491_vm8, %v1218_v26, 0.0  ;;  %v1907_v1 = vadd.f32 %v4031_v8, %v3808_v5  ;;  %v481_v8 = vadd.f32 %v4079_v33, %v455_v46 }
 0x3c0   :  { %v4187_v16 = vadd.f32 %v4775_v61, %v1092_v24  ;;  %v1457_v14 = vmax.f32 %v1453_v19, 0.0  ;;  %v1697_v39 = vmax.f32 %v1693_v53, 0.0  ;;  %v1464_v24 = vsel %vm491_vm8, %v1458_v0, 0.0  ;;  %v4782_v0 = vld [vmem:[#allocation108_spill] sm:$0xff] }
 0x3c1   :  { %v1118_v45 = vpop.permute.xlu0 %1117  ;;  %v4189_v48 = vpop.permute.xlu1 %1119  ;;  %v1934_v7 = vadd.f32 %v4780_v38, %v1908_v52  ;;  %v1933_v60 = vadd.f32 %v4040_v49, %v1907_v1  ;;  %v485_v2 = vmax.f32 %v481_v8, 0.0  ;;  %v735_v33 = vadd.f32 %v4125_v58, %v709_v25 }
 0x3c2   :  { %985 = vadd.xlane.f32.xlu0 %v984_v41  ;;  %v1127_v37 = vadd.f32 %v1118_v45, %v3931_v35  ;;  %v1694_v35 = vadd.f32 %v4779_v17, %v1668_v56  ;;  %v1461_v57 = vsel %vm487_vm9, %v1457_v14, 0.0  ;;  %v1701_v41 = vsel %vm487_vm9, %v1697_v39, 0.0 }
 0x3c3   :  { %982 = vadd.xlane.f32.xlu1 %v981_v63  ;;  %v1938_v12 = vmax.f32 %v1934_v7, 0.0  ;;  %v1937_v9 = vmax.f32 %v1933_v60, 0.0  ;;  %v739_v31 = vmax.f32 %v735_v33, 0.0  ;;  %v495_v58 = vsel %vm487_vm9, %v485_v2, 0.0  ;;  %v4784_v7 = vld [vmem:[#allocation110_spill] sm:$0xff] }
 0x3c4   :  { %v1698_v61 = vmax.f32 %v1694_v35, 0.0 }
 0x3c5   :  { %v1144_v30 = vpop.permute.xlu0 %1143  ;;  %v4203_v11 = vpop.permute.xlu1 %1145  ;;  %v1944_v26 = vsel %vm491_vm8, %v1938_v12, 0.0  ;;  %v1941_v44 = vsel %vm487_vm9, %v1937_v9, 0.0 }
 0x3c6   :  { %v1153_v29 = vadd.f32 %v1144_v30, %v1127_v37  ;;  %1222 = vadd.xlane.f32.xlu0 %v1221_v55  ;;  %v1704_v49 = vsel %vm491_vm8, %v1698_v61, 0.0  ;;  %v949_v37 = vadd.f32 %v4138_v28, %v4134_v43  ;;  %v747_v28 = vsel %vm487_vm9, %v739_v31, 0.0 }
 0x3c7   :  { %1225 = vadd.xlane.f32.xlu1 %v1224_v3  ;;  %v1879_v31 = vmul.f32 %v3795_v36, %v3744_v50 }
 0x3c8   :  { %v1163_v22 = vadd.f32 %v1159_v18, %v1153_v29  ;;  %v4781_v18 = vld [vmem:[#allocation109_spill] sm:$0xff]  ;;  %v975_v42 = vadd.f32 %v4154_v59, %v949_v37  ;;  %v4783_v59 = vld [vmem:[#allocation111_spill] sm:$0xff] }
 0x3c9   :  { %v1180_v32 = vpop.permute.xlu0 %1179  ;;  %v1358_v62 = vpop.permute.xlu1 %1357 }
 0x3ca   :  { %1465 = vadd.xlane.f32.xlu0 %v1464_v24  ;;  %v1367_v5 = vadd.f32 %v1358_v62, %v3964_v10  ;;  %v1189_v55 = vadd.f32 %v1180_v32, %v1163_v22  ;;  %v979_v29 = vmax.f32 %v975_v42, 0.0 }
 0x3cb   :  { %1462 = vadd.xlane.f32.xlu1 %v1461_v57 }
 0x3cc   :  { %v987_v22 = vsel %vm487_vm9, %v979_v29, 0.0  ;;  %v2494_v29 = vld [vmem:[#allocation2 + $0x19] sm:$0x1] }
 0x3cd   :  { %v1206_v21 = vpop.permute.xlu0 %1205  ;;  %v1384_v45 = vpop.permute.xlu1 %1383 }
 0x3ce   :  { %v1393_v19 = vadd.f32 %v1384_v45, %v1367_v5  ;;  %1702 = vadd.xlane.f32.xlu0 %v1701_v41  ;;  %v1215_v3 = vadd.f32 %v1206_v21, %v1189_v55  ;;  %v4785_v21 = vld [vmem:[#allocation112_spill] sm:$0xff] }
 0x3cf   :  { %1705 = vadd.xlane.f32.xlu1 %v1704_v49 }
 0x3d0   :  { %v1403_v10 = vadd.f32 %v1399_v34, %v1393_v19  ;;  %v1219_v39 = vmax.f32 %v1215_v3, 0.0  ;;  %v1639_v34 = vmul.f32 %v3770_v6, %v3744_v50 }
 0x3d1   :  { %v1298_v56 = vpop.permute.xlu0 %1297  ;;  %v1420_v63 = vpop.permute.xlu1 %1419 }
 0x3d2   :  { %1945 = vadd.xlane.f32.xlu0 %v1944_v26  ;;  %v1306_v53 = vadd.f32 %v1298_v56, %v4781_v18  ;;  %v1429_v35 = vadd.f32 %v1420_v63, %v1403_v10  ;;  %v1227_v5 = vsel %vm487_vm9, %v1219_v39, 0.0  ;;  %v4786_v10 = vld [vmem:[#allocation113_spill] sm:$0xff]  ;;  %v2493_v63 = vld [vmem:[#allocation2 + $0x18] sm:$0x1] }
 0x3d3   :  { %1942 = vadd.xlane.f32.xlu1 %v1941_v44 }
 0x3d5   :  { %v1324_v27 = vpop.permute.xlu0 %1323  ;;  %v1446_v52 = vpop.permute.xlu1 %1445 }
 0x3d6   :  { %v1332_v30 = vadd.f32 %v1324_v27, %v1306_v53  ;;  %496 = vadd.xlane.f32.xlu0 %v495_v58  ;;  %v1455_v62 = vadd.f32 %v1446_v52, %v1429_v35  ;;  %v4787_v52 = vld [vmem:[#allocation63_spill] sm:$0xff] }
 0x3d7   :  { %v680_v58 = vmul.f32 %v4787_v52, %v4749_v23  ;;  %v1160_v39 = vmul.f32 %v4787_v52, %v4756_v4  ;;  %v4799_v4 = vld [vmem:[#allocation20_spill] sm:$0xff] }
 0x3d8   :  { %v4233_v14 = vadd.f32 %v4782_v0, %v1332_v30  ;;  %v1459_v57 = vmax.f32 %v1455_v62, 0.0 }
 0x3d9   :  { %v4235_v17 = vpop.permute.xlu0 %1359  ;;  %v1538_v43 = vpop.permute.xlu1 %1537 }
 0x3da   :  { %748 = vadd.xlane.f32.xlu0 %v747_v28  ;;  %v1546_v1 = vadd.f32 %v1538_v43, %v4783_v59  ;;  %v1467_v9 = vsel %vm487_vm9, %v1459_v57, 0.0  ;;  %v4790_v28 = vld [vmem:[#allocation66_spill] sm:$0xff]  ;;  %v4791_v59 = vld [vmem:[#allocation12_spill] sm:$0xff]  ;;  %v4794_v57 = vld [vmem:[#allocation59_spill] sm:$0xff] }
 0x3dd   :  { %v4239_v24 = vpop.permute.xlu0 %1385  ;;  %v1564_v38 = vpop.permute.xlu1 %1563 }
 0x3de   :  { %v1572_v32 = vadd.f32 %v1564_v38, %v1546_v1  ;;  %988 = vadd.xlane.f32.xlu0 %v987_v22  ;;  %v684_v1 = vadd.f32 %v680_v58, %v4791_v59  ;;  %v4792_v22 = vld [vmem:[#allocation64_spill] sm:$0xff] }
 0x3e0   :  { %v1582_v60 = vadd.f32 %v4784_v7, %v1572_v32  ;;  %v4793_v32 = vld [vmem:[#allocation11_spill] sm:$0xff] }
 0x3e1   :  { %v1598_v61 = vpop.permute.xlu0 %1597  ;;  %v1778_v46 = vpop.permute.xlu1 %1777  ;;  %v394_v7 = vadd.f32 %v4793_v32, %v4792_v22  ;;  %v4807_v22 = vld [vmem:[#allocation49_spill] sm:$0xff] }
 0x3e2   :  { %1228 = vadd.xlane.f32.xlu0 %v1227_v5  ;;  %v1607_v8 = vadd.f32 %v1598_v61, %v3999_v13  ;;  %v1786_v45 = vadd.f32 %v1778_v46, %v4785_v21  ;;  %v1996_v13 = vmul.f32 %v2493_v63, %v3720_v20  ;;  %v4788_v20 = vld [vmem:[#allocation56_spill] sm:$0xff]  ;;  %v2118_v61 = vmul.f32 %v4100_v51, %v4794_v57  ;;  %v4796_v46 = vld [vmem:[#allocation115_spill] sm:$0xff] }
 0x3e3   :  { %v2058_v3 = vmul.f32 %v2494_v29, %v4788_v20  ;;  %v426_v5 = vmul.f32 %v4787_v52, %v4796_v46  ;;  %v4804_v29 = vld [vmem:[#allocation27_spill] sm:$0xff] }
 0x3e4   :  { %v2000_v18 = vadd.f32 %v3756_v54, %v1996_v13  ;;  %v4789_v54 = vld [vmem:[#allocation104_spill] sm:$0xff]  ;;  %v4800_v13 = vld [vmem:[#allocation65_spill] sm:$0xff] }
 0x3e5   :  { %v1624_v41 = vpop.permute.xlu0 %1623  ;;  %v1804_v12 = vpop.permute.xlu1 %1803  ;;  %v2086_v35 = vadd.f32 %v4790_v28, %v4789_v54 }
 0x3e6   :  { %v1633_v19 = vadd.f32 %v1624_v41, %v1607_v8  ;;  %v1812_v49 = vadd.f32 %v1804_v12, %v1786_v45  ;;  %1468 = vadd.xlane.f32.xlu0 %v1467_v9  ;;  %v4797_v8 = vld [vmem:[#allocation70_spill] sm:$0xff]  ;;  %v4798_v45 = vld [vmem:[#allocation61_spill] sm:$0xff]  ;;  %v710_v12 = vadd.f32 %v4799_v4, %v684_v1  ;;  %v4805_v1 = vld [vmem:[#allocation28_spill] sm:$0xff] }
 0x3e7   :  { %v420_v21 = vadd.f32 %v4797_v8, %v394_v7  ;;  %v4808_v7 = vld [vmem:[#allocation35_spill] sm:$0xff]  ;;  %v4809_v8 = vld [vmem:[#allocation32_spill] sm:$0xff] }
 0x3e8   :  { %v1643_v25 = vadd.f32 %v1639_v34, %v1633_v19  ;;  %v1822_v2 = vadd.f32 %v4786_v10, %v1812_v49  ;;  %v2119_v34 = vmul.f32 %v4794_v57, %v3744_v50 }
 0x3e9   :  { %v1838_v33 = vpop.permute.xlu0 %1837  ;;  %v2018_v56 = vpop.permute.xlu1 %2017  ;;  %v430_v51 = vadd.f32 %v426_v5, %v420_v21 }
 0x3ea   :  { %v1847_v26 = vadd.f32 %v1838_v33, %v3994_v40  ;;  %v2026_v42 = vadd.f32 %v2018_v56, %v2000_v18  ;;  %v1128_v40 = vadd.f32 %v4189_v48, %v4187_v16  ;;  %v4795_v16 = vld [vmem:[#allocation68_spill] sm:$0xff] }
 0x3eb   :  { %v2112_v48 = vadd.f32 %v4795_v16, %v2086_v35  ;;  %v456_v20 = vadd.f32 %v4804_v29, %v430_v51  ;;  %v4819_v29 = vld [vmem:[#allocation62_spill] sm:$0xff] }
 0x3ec   :  { %v1154_v23 = vadd.f32 %v4203_v11, %v1128_v40 }
 0x3ed   :  { %v1864_v44 = vpop.permute.xlu0 %1863  ;;  %v1600_v37 = vpop.permute.xlu1 %1599  ;;  %v2122_v10 = vadd.f32 %v2118_v61, %v2112_v48 }
 0x3ee   :  { %v1873_v53 = vadd.f32 %v1864_v44, %v1847_v26  ;;  %v1164_v11 = vadd.f32 %v1160_v39, %v1154_v23  ;;  %v1608_v33 = vadd.f32 %v1600_v37, %v1582_v60  ;;  %v920_v26 = vmul.f32 %v4787_v52, %v4800_v13  ;;  %v4801_v44 = vld [vmem:[#allocation24_spill] sm:$0xff]  ;;  %v4803_v37 = vld [vmem:[#allocation46_spill] sm:$0xff] }
 0x3ef   :  { %v1368_v60 = vadd.f32 %v4235_v17, %v4233_v14  ;;  %v1880_v14 = vmul.f32 %v4787_v52, %v3795_v36 }
 0x3f0   :  { %v1883_v27 = vadd.f32 %v1879_v31, %v1873_v53  ;;  %v1190_v18 = vadd.f32 %v4801_v44, %v1164_v11  ;;  %v924_v54 = vadd.f32 %v920_v26, %v4181_v47 }
 0x3f1   :  { %v2078_v30 = vpop.permute.xlu0 %2077  ;;  %v2044_v55 = vpop.permute.xlu1 %2043  ;;  %v1394_v28 = vadd.f32 %v4239_v24, %v1368_v60  ;;  %v4817_v60 = vld [vmem:[#allocation60_spill] sm:$0xff] }
 0x3f2   :  { %v2052_v0 = vadd.f32 %v2044_v55, %v2026_v42  ;;  %v2087_v41 = vadd.f32 %v2078_v30, %v4798_v45  ;;  %v4802_v42 = vld [vmem:[#allocation22_spill] sm:$0xff]  ;;  %v1640_v30 = vmul.f32 %v4787_v52, %v3770_v6  ;;  %v1216_v39 = vadd.f32 %v4805_v1, %v1190_v18 }
 0x3f3   :  { %v736_v58 = vadd.f32 %v4802_v42, %v710_v12  ;;  %v950_v61 = vadd.f32 %v4808_v7, %v924_v54 }
 0x3f4   :  { %v2062_v43 = vadd.f32 %v2058_v3, %v2052_v0  ;;  %v2148_v0 = vadd.f32 %v4803_v37, %v2122_v10  ;;  %v1220_v5 = vmax.f32 %v1216_v39, 0.0 }
 0x3f5   :  { %v1660_v62 = vpop.permute.xlu0 %1659  ;;  %v1626_v38 = vpop.permute.xlu1 %1625  ;;  %v740_v59 = vmax.f32 %v736_v58, 0.0  ;;  %v4815_v58 = vld [vmem:[#allocation47_spill] sm:$0xff] }
 0x3f6   :  { %v1669_v56 = vadd.f32 %v1660_v62, %v1643_v25  ;;  %v1634_v55 = vadd.f32 %v1626_v38, %v1608_v33  ;;  %v1400_v25 = vmul.f32 %v4787_v52, %v4762_v15  ;;  %v4806_v38 = vld [vmem:[#allocation31_spill] sm:$0xff]  ;;  %v2174_v32 = vadd.f32 %v4807_v22, %v2148_v0  ;;  %v4813_v33 = vld [vmem:[#allocation36_spill] sm:$0xff] }
 0x3f7   :  { %v482_v24 = vadd.f32 %v4806_v38, %v456_v20  ;;  %v750_v36 = vsel %vm491_vm8, %v740_v59, 0.0  ;;  %v1230_v12 = vsel %vm491_vm8, %v1220_v5, 0.0 }
 0x3f8   :  { %v1644_v23 = vadd.f32 %v1640_v30, %v1634_v55  ;;  %v1404_v16 = vadd.f32 %v1400_v25, %v1394_v28  ;;  %v4816_v55 = vld [vmem:[#allocation44_spill] sm:$0xff]  ;;  %v4818_v25 = vld [vmem:[#allocation57_spill] sm:$0xff] }
 0x3f9   :  { %v2104_v9 = vpop.permute.xlu0 %2103  ;;  %v1840_v19 = vpop.permute.xlu1 %1839  ;;  %v486_v11 = vmax.f32 %v482_v24, 0.0  ;;  %v2147_v37 = vadd.f32 %v4818_v25, %v4817_v60 }
 0x3fa   :  { %v2113_v49 = vadd.f32 %v2104_v9, %v2087_v41  ;;  %v1848_v3 = vadd.f32 %v1840_v19, %v1822_v2  ;;  %v2120_v2 = vmul.f32 %v4787_v52, %v4794_v57  ;;  %v1670_v21 = vadd.f32 %v4809_v8, %v1644_v23  ;;  %v4811_v9 = vld [vmem:[#allocation39_spill] sm:$0xff] }
 0x3fb   :  { %v2178_v52 = vmax.f32 %v2174_v32, 0.0  ;;  %v976_v19 = vadd.f32 %v4811_v9, %v950_v61  ;;  %v498_v26 = vsel %vm491_vm8, %v486_v11, 0.0  ;;  %v2173_v20 = vadd.f32 %v4819_v29, %v2147_v37 }
 0x3fc   :  { %v4278_v63 = vadd.f32 %v2119_v34, %v2113_v49  ;;  %v4812_v49 = vld [vmem:[#allocation40_spill] sm:$0xff] }
 0x3fd   :  { %v1686_v53 = vpop.permute.xlu0 %1685  ;;  %v1866_v31 = vpop.permute.xlu1 %1865  ;;  %v2184_v44 = vsel %vm491_vm8, %v2178_v52, 0.0  ;;  %v980_v18 = vmax.f32 %v976_v19, 0.0  ;;  %v2177_v1 = vmax.f32 %v2173_v20, 0.0 }
 0x3fe   :  { %v1695_v50 = vadd.f32 %v1686_v53, %v1669_v56  ;;  %v1874_v15 = vadd.f32 %v1866_v31, %v1848_v3  ;;  %v1696_v56 = vadd.f32 %v4813_v33, %v1670_v21  ;;  %v4814_v53 = vld [vmem:[#allocation48_spill] sm:$0xff] }
 0x3ff   :  { %v990_v3 = vsel %vm491_vm8, %v980_v18, 0.0 }
 0x400   :  { %v1699_v40 = vmax.f32 %v1695_v50, 0.0  ;;  %v1884_v45 = vadd.f32 %v1880_v14, %v1874_v15  ;;  %v1700_v42 = vmax.f32 %v1696_v56, 0.0 }
 0x401   :  { %v1900_v35 = vpop.permute.xlu0 %1899  ;;  %v2080_v6 = vpop.permute.xlu1 %2079 }
 0x402   :  { %v1707_v17 = vsel %vm487_vm9, %v1699_v40, 0.0  ;;  %v1909_v62 = vadd.f32 %v1900_v35, %v1883_v27  ;;  %v2088_v47 = vadd.f32 %v2080_v6, %v2062_v43  ;;  %v4810_v43 = vld [vmem:[#allocation43_spill] sm:$0xff]  ;;  %v1910_v34 = vadd.f32 %v4812_v49, %v1884_v45 }
 0x403   :  { %1708 = vadd.xlane.f32.xlu0 %v1707_v17  ;;  %v1430_v57 = vadd.f32 %v4810_v43, %v1404_v16  ;;  %v1710_v54 = vsel %vm491_vm8, %v1700_v42, 0.0  ;;  %v505_v45 = vlaneseq }
 0x404   :  { %v1936_v50 = vadd.f32 %v4816_v55, %v1910_v34 }
 0x405   :  { %v1926_v48 = vpop.permute.xlu0 %1925  ;;  %v2106_v46 = vpop.permute.xlu1 %2105  ;;  %v1456_v30 = vadd.f32 %v4815_v58, %v1430_v57  ;;  %v508_v43 = vshrl.u32 %v505_v45, 7 }
 0x406   :  { %v1935_v41 = vadd.f32 %v1926_v48, %v1909_v62  ;;  %v2114_v4 = vadd.f32 %v2106_v46, %v2088_v47  ;;  %v1940_v35 = vmax.f32 %v1936_v50, 0.0 }
 0x407   :  { %751 = vadd.xlane.f32.xlu0 %v750_v36  ;;  %v1460_v28 = vmax.f32 %v1456_v30, 0.0 }
 0x408   :  { %v1939_v27 = vmax.f32 %v1935_v41, 0.0  ;;  %v2124_v10 = vadd.f32 %v2120_v2, %v2114_v4  ;;  %v1950_v15 = vsel %vm491_vm8, %v1940_v35, 0.0  ;;  %v2181_v2 = vsel %vm487_vm9, %v2177_v1, 0.0 }
 0x409   :  { %v2140_v13 = vpop.permute.xlu0 %2139  ;;  %v2168_v0 = vpop.permute.xlu1 %2167  ;;  %v1470_v14 = vsel %vm491_vm8, %v1460_v28, 0.0 }
 0x40a   :  { %v1947_v51 = vsel %vm487_vm9, %v1939_v27, 0.0  ;;  %v2150_v31 = vadd.f32 %v4814_v53, %v2124_v10  ;;  %v2149_v59 = vadd.f32 %v2140_v13, %v4278_v63  ;;  %v506_v27 = vand.u32 127, %v505_v45 }
 0x40b   :  { %1948 = vadd.xlane.f32.xlu1 %v1947_v51  ;;  %1231 = vadd.xlane.f32.xlu0 %v1230_v12 }
 0x40c   :  { %v2176_v40 = vadd.f32 %v2168_v0, %v2150_v31  ;;  %v511_v57 = vadd.s32 4294967288, %v506_v27  ;;  %v4345_v19 = vsub.s32 %v506_v27, %v508_v43 }
 0x40d   :  { %v2166_v6 = vpop.permute.xlu0 %2165 }
 0x40e   :  { %v2180_v39 = vmax.f32 %v2176_v40, 0.0  ;;  %v2175_v23 = vadd.f32 %v2166_v6, %v2149_v59  ;;  %v4343_v9 = vsub.s32 %v511_v57, %v508_v43 }
 0x40f   :  { %499 = vadd.xlane.f32.xlu1 %v498_v26  ;;  %2185 = vadd.xlane.f32.xlu0 %v2184_v44 }
 0x410   :  { %v2179_v17 = vmax.f32 %v2175_v23, 0.0  ;;  %v2190_v62 = vsel %vm491_vm8, %v2180_v39, 0.0 }
 0x412   :  { %v2187_v47 = vsel %vm487_vm9, %v2179_v17, 0.0 }
 0x413   :  { %991 = vadd.xlane.f32.xlu1 %v990_v3  ;;  %1711 = vadd.xlane.f32.xlu0 %v1710_v54 }
 0x417   :  { %1471 = vadd.xlane.f32.xlu1 %v1470_v14  ;;  %1951 = vadd.xlane.f32.xlu0 %v1950_v15 }
 0x41b   :  { %2182 = vadd.xlane.f32.xlu1 %v2181_v2  ;;  %2191 = vadd.xlane.f32.xlu0 %v2190_v62 }
 0x41f   :  { %2188 = vadd.xlane.f32.xlu1 %v2187_v47 }
 0x447   :  { %v494_v63 = vpop.xlane.xlu0 %493 }
 0x448   :  { %v490_v16 = vpop.xlane.xlu1 %489  ;;  %v515_v50 = vrot.slane %v494_v63, %v4343_v9 }
 0x449   :  { %v510_v60 = vrot.slane %v490_v16, %v4345_v19 }
 0x44b   :  { %v743_v38 = vpop.xlane.xlu0 %742  ;;  %v517_v1 = vsel %vm516_vm11, %v515_v50, %v510_v60  ;;  %v2256_v50 = vld [vmem:[%s4466_s5] ss:$0 sm:$0xff] }
 0x44c   :  { %v746_v46 = vpop.xlane.xlu1 %745  ;;  %v760_v49 = vrot.slane %v743_v38, %v4345_v19 }
 0x44d   :  { %v764_v34 = vrot.slane %v746_v46, %v4343_v9 }
 0x44f   :  { %v4327_v24 = vpop.xlane.xlu0 %985  ;;  %v765_v44 = vsel %vm516_vm11, %v764_v34, %v760_v49 }
 0x450   :  { %v4335_v5 = vpop.xlane.xlu1 %982  ;;  %v1004_v28 = vrot.slane %v4327_v24, %v4343_v9 }
 0x451   :  { %v1000_v35 = vrot.slane %v4335_v5, %v4345_v19 }
 0x453   :  { %v1223_v22 = vpop.xlane.xlu0 %1222 }
 0x454   :  { %v1226_v21 = vpop.xlane.xlu1 %1225  ;;  %v1240_v13 = vrot.slane %v1223_v22, %v4345_v19 }
 0x455   :  { %v1244_v26 = vrot.slane %v1226_v21, %v4343_v9 }
 0x457   :  { %v4329_v32 = vpop.xlane.xlu0 %1465  ;;  %v1245_v25 = vsel %vm516_vm11, %v1244_v26, %v1240_v13 }
 0x458   :  { %v4339_v4 = vpop.xlane.xlu1 %1462  ;;  %v1484_v38 = vrot.slane %v4329_v32, %v4343_v9 }
 0x459   :  { %v1480_v24 = vrot.slane %v4339_v4, %v4345_v19 }
 0x45b   :  { %v4331_v7 = vpop.xlane.xlu0 %1702 }
 0x45c   :  { %v1706_v12 = vpop.xlane.xlu1 %1705  ;;  %v1720_v6 = vrot.slane %v4331_v7, %v4345_v19  ;;  %v1005_v7 = vsel %vm516_vm11, %v1004_v28, %v1000_v35 }
 0x45d   :  { %v1724_v59 = vrot.slane %v1706_v12, %v4343_v9 }
 0x45f   :  { %v4333_v61 = vpop.xlane.xlu0 %1945  ;;  %v1725_v22 = vsel %vm516_vm11, %v1724_v59, %v1720_v6  ;;  %v2293_v6 = vld [vmem:[%s4466_s5 + $0x3] ss:$0 sm:$0xff] }
 0x460   :  { %v4349_v10 = vpop.xlane.xlu1 %1942  ;;  %v1964_v16 = vrot.slane %v4333_v61, %v4343_v9 }
 0x463   :  { %v497_v48 = vpop.xlane.xlu0 %496 }
 0x464   :  { %v521_v3 = vrot.slane %v497_v48, %v4345_v19  ;;  %v1960_v48 = vrot.slane %v4349_v10, %v4345_v19 }
 0x466   :  { %v1965_v10 = vsel %vm516_vm11, %v1964_v16, %v1960_v48 }
 0x467   :  { %v749_v36 = vpop.xlane.xlu0 %748 }
 0x468   :  { %v769_v33 = vrot.slane %v749_v36, %v4345_v19 }
 0x46b   :  { %v4337_v8 = vpop.xlane.xlu0 %988 }
 0x46c   :  { %v1009_v23 = vrot.slane %v4337_v8, %v4345_v19 }
 0x46f   :  { %v1229_v41 = vpop.xlane.xlu0 %1228 }
 0x470   :  { %v1249_v58 = vrot.slane %v1229_v41, %v4345_v19 }
 0x473   :  { %v4341_v52 = vpop.xlane.xlu0 %1468 }
 0x474   :  { %v1489_v32 = vrot.slane %v4341_v52, %v4345_v19  ;;  %v1485_v52 = vsel %vm516_vm11, %v1484_v38, %v1480_v24  ;;  %v2329_v24 = vld [vmem:[%s4466_s5 + $0x6] ss:$0 sm:$0xff] }
 0x490   :  { %v1709_v11 = vpop.xlane.xlu0 %1708 }
 0x491   :  { %v1729_v2 = vrot.slane %v1709_v11, %v4345_v19 }
 0x494   :  { %v752_v51 = vpop.xlane.xlu0 %751 }
 0x495   :  { %v773_v56 = vrot.slane %v752_v51, %v4343_v9 }
 0x497   :  { %v774_v18 = vsel %vm516_vm11, %v773_v56, %v769_v33 }
 0x498   :  { %v1232_v53 = vpop.xlane.xlu0 %1231  ;;  %v1949_v31 = vpop.xlane.xlu1 %1948  ;;  %v775_v42 = vsel %vm527_vm10, %v774_v18, %v765_v44 }
 0x499   :  { %v1253_v30 = vrot.slane %v1232_v53, %v4343_v9  ;;  %v777_v55 = vsel %vm530_vm12, %v775_v42, 0.0  ;;  %v1969_v5 = vrot.slane %v1949_v31, %v4345_v19 }
 0x49a   :  { %778 = vadd.xlane.f32.xlu1 %v777_v55 }
 0x49b   :  { %v1254_v37 = vsel %vm516_vm11, %v1253_v30, %v1249_v58 }
 0x49c   :  { %v2186_v0 = vpop.xlane.xlu0 %2185  ;;  %v500_v29 = vpop.xlane.xlu1 %499  ;;  %v1255_v20 = vsel %vm527_vm10, %v1254_v37, %v1245_v25  ;;  %v2269_v25 = vld [vmem:[%s4466_s5 + $0x1] ss:$0 sm:$0xff] }
 0x49d   :  { %v525_v40 = vrot.slane %v500_v29, %v4343_v9  ;;  %v1257_v54 = vsel %vm530_vm12, %v1255_v20, 0.0  ;;  %v2204_v26 = vrot.slane %v2186_v0, %v4343_v9  ;;  %v2257_v0 = vld [vmem:[%s4467_s6] ss:$0 sm:$0xff]  ;;  %v2281_v20 = vld [vmem:[%s4466_s5 + $0x2] ss:$0 sm:$0xff] }
 0x49e   :  { %1258 = vadd.xlane.f32.xlu1 %v1257_v54 }
 0x49f   :  { %v526_v39 = vsel %vm516_vm11, %v525_v40, %v521_v3 }
 0x4a0   :  { %v1712_v14 = vpop.xlane.xlu0 %1711  ;;  %v992_v15 = vpop.xlane.xlu1 %991  ;;  %v528_v17 = vsel %vm527_vm10, %v526_v39, %v517_v1 }
 0x4a1   :  { %v1733_v62 = vrot.slane %v1712_v14, %v4343_v9  ;;  %v1013_v47 = vrot.slane %v992_v15, %v4343_v9  ;;  %v531_v63 = vsel %vm530_vm12, %v528_v17, 0.0 }
 0x4a2   :  { %532 = vadd.xlane.f32.xlu0 %v531_v63 }
 0x4a3   :  { %v1734_v46 = vsel %vm516_vm11, %v1733_v62, %v1729_v2  ;;  %v1014_v36 = vsel %vm516_vm11, %v1013_v47, %v1009_v23  ;;  %v2305_v23 = vld [vmem:[%s4466_s5 + $0x4] ss:$0 sm:$0xff]  ;;  %v2317_v47 = vld [vmem:[%s4466_s5 + $0x5] ss:$0 sm:$0xff] }
 0x4a4   :  { %v1952_v8 = vpop.xlane.xlu0 %1951  ;;  %v1472_v21 = vpop.xlane.xlu1 %1471  ;;  %v1735_v45 = vsel %vm527_vm10, %v1734_v46, %v1725_v22  ;;  %v1015_v41 = vsel %vm527_vm10, %v1014_v36, %v1005_v7 }
 0x4a5   :  { %v1973_v61 = vrot.slane %v1952_v8, %v4343_v9  ;;  %v1493_v4 = vrot.slane %v1472_v21, %v4343_v9  ;;  %v1737_v27 = vsel %vm530_vm12, %v1735_v45, 0.0  ;;  %v1017_v43 = vsel %vm530_vm12, %v1015_v41, 0.0 }
 0x4a6   :  { %1738 = vadd.xlane.f32.xlu1 %v1737_v27  ;;  %1018 = vadd.xlane.f32.xlu0 %v1017_v43 }
 0x4a7   :  { %v1494_v57 = vsel %vm516_vm11, %v1493_v4, %v1489_v32  ;;  %v1974_v12 = vsel %vm516_vm11, %v1973_v61, %v1969_v5  ;;  %v2341_v32 = vld [vmem:[%s4466_s5 + $0x7] ss:$0 sm:$0xff] }
 0x4a8   :  { %v2183_v11 = vpop.xlane.xlu1 %2182  ;;  %v1495_v49 = vsel %vm527_vm10, %v1494_v57, %v1485_v52  ;;  %v2192_v51 = vpop.xlane.xlu0 %2191  ;;  %v1975_v33 = vsel %vm527_vm10, %v1974_v12, %v1965_v10 }
 0x4a9   :  { %v1497_v34 = vsel %vm530_vm12, %v1495_v49, 0.0  ;;  %v2200_v56 = vrot.slane %v2183_v11, %v4345_v19  ;;  %v2213_v44 = vrot.slane %v2192_v51, %v4343_v9  ;;  %v1977_v53 = vsel %vm530_vm12, %v1975_v33, 0.0 }
 0x4aa   :  { %1498 = vadd.xlane.f32.xlu0 %v1497_v34 }
 0x4ab   :  { %v2205_v31 = vsel %vm516_vm11, %v2204_v26, %v2200_v56 }
 0x4ac   :  { %v2189_v13 = vpop.xlane.xlu1 %2188 }
 0x4ad   :  { %v2209_v18 = vrot.slane %v2189_v13, %v4345_v19 }
 0x4ae   :  { %1978 = vadd.xlane.f32.xlu0 %v1977_v53 }
 0x4af   :  { %v2214_v42 = vsel %vm516_vm11, %v2213_v44, %v2209_v18 }
 0x4b0   :  { %v2215_v58 = vsel %vm527_vm10, %v2214_v42, %v2205_v31 }
 0x4b1   :  { %v2217_v30 = vsel %vm530_vm12, %v2215_v58, 0.0 }
 0x4b2   :  { %2218 = vadd.xlane.f32.xlu1 %v2217_v30 }
 0x527   :  { %v779_v55 = vpop.xlane.xlu1 %778 }
 0x528   :  { %v780_v60 = vmul.f32 0.0069444445, %v779_v55 }
 0x52a   :  { %v786_v40 = vmul.f32 %v2269_v25, %v780_v60 }
 0x52b   :  { %v1259_v37 = vpop.xlane.xlu1 %1258 }
 0x52c   :  { %v1260_v54 = vmul.f32 0.0069444445, %v1259_v37 }
 0x52e   :  { %v1266_v15 = vmul.f32 %v2293_v6, %v1260_v54 }
 0x52f   :  { %v533_v9 = vpop.xlane.xlu0 %532 }
 0x530   :  { %v534_v19 = vmul.f32 0.0069444445, %v533_v9 }
 0x532   :  { %v540_v29 = vmul.f32 %v2256_v50, %v534_v19 }
 0x533   :  { %v1019_v3 = vpop.xlane.xlu0 %1018  ;;  %v1739_v59 = vpop.xlane.xlu1 %1738 }
 0x534   :  { %v547_v28 = vadd.f32 %v2257_v0, %v540_v29  ;;  %v1020_v35 = vmul.f32 0.0069444445, %v1019_v3  ;;  %v1740_v2 = vmul.f32 0.0069444445, %v1739_v59 }
 0x536   :  { %v787_v1 = vadd.f32 %v786_v40, %v547_v28  ;;  %v1026_v39 = vmul.f32 %v2281_v20, %v1020_v35  ;;  %v1746_v7 = vmul.f32 %v2317_v47, %v1740_v2 }
 0x537   :  { %v1499_v14 = vpop.xlane.xlu0 %1498 }
 0x538   :  { %v1027_v17 = vadd.f32 %v1026_v39, %v787_v1  ;;  %v1500_v62 = vmul.f32 0.0069444445, %v1499_v14 }
 0x53a   :  { %v1267_v63 = vadd.f32 %v1266_v15, %v1027_v17  ;;  %v1506_v38 = vmul.f32 %v2305_v23, %v1500_v62 }
 0x53b   :  { %v1979_v22 = vpop.xlane.xlu0 %1978 }
 0x53c   :  { %v1507_v16 = vadd.f32 %v1506_v38, %v1267_v63  ;;  %v1980_v48 = vmul.f32 0.0069444445, %v1979_v22 }
 0x53e   :  { %v1747_v46 = vadd.f32 %v1746_v7, %v1507_v16  ;;  %v1986_v36 = vmul.f32 %v2329_v24, %v1980_v48 }
 0x53f   :  { %v2219_v5 = vpop.xlane.xlu1 %2218 }
 0x540   :  { %v2220_v8 = vmul.f32 0.0069444445, %v2219_v5  ;;  %v1987_v21 = vadd.f32 %v1986_v36, %v1747_v46 }
 0x542   :  { %v2226_v45 = vmul.f32 %v2341_v32, %v2220_v8 }
 0x544   :  { %v2227_v41 = vadd.f32 %v2226_v45, %v1987_v21 }
 0x546   :  { %2229 = vst.msk [vmem:[#allocation6] sm:$0x3] %vm2228_vm13, %v2227_v41 }
 0x547   :  { %2518 = shalt.err (!%p2515_p9)
}
 0x548   :  { %s2519_s5 = scalar_lea.hbm %s4468_s7, 32 }
 0x549   :  { %p2520_p10 = scmp.ne.s32.totalorder %s4468_s7, %s2519_s5  ;;  %p2523_p11 = scmp.lt.u32.totalorder %s2519_s5, %s4468_s7 }
 0x54b   :  { %p2525_p12 = pnand %p2523_p11, %p2520_p10 }
 0x54d   :  { %2528 = shalt.err (!%p2525_p12)
}
 0x54e   :  { %2239 = dma.vmem_to_hbm [thread:$0]  %s2237_s29, 32, %s4468_s7, [#allocation4]  }
 0x54f   :  { %2531 = dma.done.wait [#allocation4], 32  }
 0x550   :  { %2532 = vsyncadd [#allocation4], 4294967264 }
 0x551   :  { %2243 = vsyncpa [#allocation4], 1 }
 0x552   :  { %2244 = vsyncpa [#allocation5], 1 }

</bundles_post_ra>
